<compile_context>
chip_gen: v7x
topology: tpu7x:2x2x1
jax: 0.10.0
libtpu: 0.0.40
codegen_flags: <defaults>
</compile_context>

<pallas_src>
import jax
import jax.numpy as jnp
from jax.experimental import pallas as pl
from jax.experimental.pallas import tpu as pltpu


# ----------------------------- Pallas kernels ------------------------------

def _fused_convnet_kernel(p1_ref, w1_ref, b1_ref, w2_ref, b2_ref,
                          w3_ref, b3_ref, sel_ref, out_ref, a1_ref, a2_ref):
    f32 = jnp.float32
    bf16 = jnp.bfloat16

    # ---- conv1 + ReLU: one matmul over im2col patches (960, 32) @ (32, 128).
    # Rows are ordered (r, c) with row stride 32 (cols 0..29 valid).
    y1 = jnp.dot(p1_ref[0], w1_ref[...], preferred_element_type=f32)   # (960,128)
    y1 = jnp.maximum(y1 + b1_ref[...], 0.0)

    # ---- pool1 (2x2), fused.  H: aligned pairwise max.  W: max against a
    # shift-by-1 copy; the pooled value for column c lands at column 2c.
    y1 = y1.reshape(15, 64, 128)                       # layout-preserving (64 % 8 == 0)
    h1 = jnp.maximum(y1[:, :32, :], y1[:, 32:, :])     # (15, 32, 128)
    h1s = jnp.concatenate([h1[:, 1:, :], h1[:, :1, :]], axis=1)
    m1 = jnp.maximum(h1, h1s)                          # valid at even columns
    a1_ref[...] = m1.reshape(480, 128).astype(bf16)    # (r, c) -> row 32*r + 2*c

    # ---- conv2 + ReLU: 9 shifted matmuls over the stretch-2 flat input.
    acc2 = None
    for di in range(3):
        for dj in range(3):
            x = a1_ref[pl.ds(di * 32 + 2 * dj, 384), :]                # (384,128) bf16
            t = jnp.dot(x, w2_ref[di * 3 + dj], preferred_element_type=f32)
            acc2 = t if acc2 is None else acc2 + t
    y2 = jnp.maximum(acc2 + b2_ref[...], 0.0)          # 12 rows x width 32, valid even cols

    # ---- pool2 (2x2) in the stretched layout (W partner is 2 columns away).
    y2 = y2.reshape(6, 64, 128)
    h2 = jnp.maximum(y2[:, :32, :], y2[:, 32:, :])     # (6, 32, 128)
    h2s = jnp.concatenate([h2[:, 2:, :], h2[:, :2, :]], axis=1)
    m2 = jnp.maximum(h2, h2s)                          # valid at columns = 0 (mod 4)
    a2_ref[...] = m2.reshape(192, 128).astype(bf16)    # (r, c) -> row 32*r + 4*c

    # ---- conv3 + ReLU: 9 shifted matmuls over the stretch-4 flat input.
    acc3 = None
    for di in range(3):
        for dj in range(3):
            x = a2_ref[pl.ds(di * 32 + 4 * dj, 112), :]                # (112,128) bf16
            t = jnp.dot(x, w3_ref[di * 3 + dj], preferred_element_type=f32)
            acc3 = t if acc3 is None else acc3 + t
    y3 = jnp.maximum(acc3 + b3_ref[...], 0.0).astype(bf16)   # valid rows: 32*r + 4*c

    # ---- compact the 16 valid rows (m = r*4 + c) with a 0/1 selection matmul.
    c16 = jnp.dot(sel_ref[...], y3, preferred_element_type=f32)        # (16,128)
    out_ref[0] = c16.astype(out_ref.dtype)


def _fc_kernel(x_ref, w_ref, b_ref, o_ref):
    # x: (B, 2048) bf16, w: (2048, 128) bf16 (out dim padded 10 -> 128).
    o_ref[...] = (jnp.dot(x_ref[...], w_ref[...],
                          preferred_element_type=jnp.float32) + b_ref[...])


# ------------------------------ wrappers ------------------------------------

def _fused_convnet(p1, w1, b1, w2, b2, w3, b3, sel):
    B = p1.shape[0]
    flops = B * (2 * 960 * 32 * 128 + 9 * 2 * 384 * 128 * 128
                 + 9 * 2 * 112 * 128 * 128 + 2 * 16 * 112 * 128)
    bytes_accessed = (p1.size * 2 + w1.size * 2 + w2.size * 2 + w3.size * 2
                      + sel.size * 2 + (b1.size + b2.size + b3.size) * 4
                      + B * 16 * 128 * 2)
    return pl.pallas_call(
        _fused_convnet_kernel,
        out_shape=jax.ShapeDtypeStruct((B, 16, 128), jnp.bfloat16),
        grid_spec=pltpu.PrefetchScalarGridSpec(
            num_scalar_prefetch=0,
            grid=(B,),
            in_specs=[
                pl.BlockSpec((1, 960, 32), lambda b: (b, 0, 0)),      # conv1 patches
                pl.BlockSpec((32, 128), lambda b: (0, 0)),            # w1 (K padded)
                pl.BlockSpec((1, 128), lambda b: (0, 0)),             # b1
                pl.BlockSpec((9, 128, 128), lambda b: (0, 0, 0)),     # w2 taps
                pl.BlockSpec((1, 128), lambda b: (0, 0)),             # b2
                pl.BlockSpec((9, 128, 128), lambda b: (0, 0, 0)),     # w3 taps
                pl.BlockSpec((1, 128), lambda b: (0, 0)),             # b3
                pl.BlockSpec((16, 112), lambda b: (0, 0)),            # row selection
            ],
            out_specs=pl.BlockSpec((1, 16, 128), lambda b: (b, 0, 0)),
            scratch_shapes=[
                pltpu.VMEM((480, 128), jnp.bfloat16),   # pooled conv1, stretch 2
                pltpu.VMEM((192, 128), jnp.bfloat16),   # pooled conv2, stretch 4
            ],
        ),
        compiler_params=pltpu.CompilerParams(
            dimension_semantics=("parallel",)),
        cost_estimate=pl.CostEstimate(flops=flops, transcendentals=0,
                                      bytes_accessed=bytes_accessed),
    )(p1, w1, b1, w2, b2, w3, b3, sel)


def _fc(x2, wf, bfc):
    B = x2.shape[0]
    return pl.pallas_call(
        _fc_kernel,
        out_shape=jax.ShapeDtypeStruct((B, 128), jnp.float32),
        grid_spec=pltpu.PrefetchScalarGridSpec(
            num_scalar_prefetch=0,
            grid=(1,),
            in_specs=[
                pl.BlockSpec((B, 2048), lambda i: (0, 0)),
                pl.BlockSpec((2048, 128), lambda i: (0, 0)),
                pl.BlockSpec((1, 128), lambda i: (0, 0)),
            ],
            out_specs=pl.BlockSpec((B, 128), lambda i: (0, 0)),
        ),
    )(x2, wf, bfc)


# ------------------------------ full forward --------------------------------

@jax.jit
def cnn_cifar_forward(x_nchw, params):
    B = x_nchw.shape[0]
    f32, bf16 = jnp.float32, jnp.bfloat16

    # NCHW -> NHWC; conv1 patches with width padded 30->32 and K padded 27->32.
    x = jnp.transpose(x_nchw, (0, 2, 3, 1)).astype(f32)               # (B,32,32,3)
    xp = jnp.pad(x, ((0, 0), (0, 0), (0, 2), (0, 0)))                 # (B,32,34,3)
    cols = [xp[:, di:di + 30, dj:dj + 32, :]
            for di in range(3) for dj in range(3)]
    p = jnp.concatenate(cols, axis=-1)                                # (B,30,32,27)
    p = jnp.pad(p, ((0, 0), (0, 0), (0, 0), (0, 5)))                  # K 27 -> 32
    p1 = p.reshape(B, 960, 32).astype(bf16)

    # Weight rearrangement (tap-major, channel-minor; matches the kernel).
    w1 = jnp.transpose(params["conv1_w"], (2, 3, 1, 0)).reshape(27, 128)
    w1 = jnp.pad(w1, ((0, 5), (0, 0))).astype(bf16)                   # (32,128)
    b1 = params["conv1_b"].reshape(1, 128).astype(f32)
    w2 = jnp.transpose(params["conv2_w"], (2, 3, 1, 0)).reshape(9, 128, 128).astype(bf16)
    b2 = params["conv2_b"].reshape(1, 128).astype(f32)
    w3 = jnp.transpose(params["conv3_w"], (2, 3, 1, 0)).reshape(9, 128, 128).astype(bf16)
    b3 = params["conv3_b"].reshape(1, 128).astype(f32)

    # Selection matrix: output row m = r*4 + c picks conv3 flat row 32*r + 4*c.
    sel_idx = jnp.array([r * 32 + 4 * c for r in range(4) for c in range(4)],
                        jnp.int32)
    sel = jax.nn.one_hot(sel_idx, 112, dtype=bf16)                    # (16,112)

    feat = _fused_convnet(p1, w1, b1, w2, b2, w3, b3, sel)            # (B,16,128) bf16
    x2 = feat.reshape(B, 16 * 128)                                    # (m, ch) order

    # FC weights permuted from PyTorch's (ch, r, c) flatten order to our
    # (m=r*4+c, ch) order; output dim padded 10 -> 128 for lane-dense stores.
    wf = params["fc1_w"].reshape(10, 128, 16)                         # [n, ch, m]
    wf = jnp.transpose(wf, (2, 1, 0)).reshape(16 * 128, 10)           # [(m,ch), n]
    wf = jnp.pad(wf, ((0, 0), (0, 118))).astype(bf16)                 # (2048,128)
    bfc = jnp.pad(params["fc1_b"], (0, 118)).reshape(1, 128).astype(f32)

    logits = _fc(x2, wf, bfc)                                         # (B,128) f32
    return logits[:, :10]


# Pure-JAX reference.  It applies the same bf16 rounding of matmul operands as
# the kernels (f32 accumulation), so it checks the layout/fusion logic tightly.
@jax.jit
def reference_forward(x_nchw, params):
    f32 = jnp.float32
    bf = lambda a: a.astype(jnp.bfloat16).astype(f32)
    x = jnp.transpose(x_nchw, (0, 2, 3, 1)).astype(f32)

    def conv(x, w, b):
        y = jax.lax.conv_general_dilated(
            bf(x), bf(jnp.transpose(w, (2, 3, 1, 0))), (1, 1), "VALID",
            dimension_numbers=("NHWC", "HWIO", "NHWC"),
            precision=jax.lax.Precision.HIGHEST)
        return jax.nn.relu(y + b)

    def pool(x):
        return jax.lax.reduce_window(x, -jnp.inf, jax.lax.max,
                                     (1, 2, 2, 1), (1, 2, 2, 1), "VALID")

    x = pool(conv(x, params["conv1_w"], params["conv1_b"]))
    x = pool(conv(x, params["conv2_w"], params["conv2_b"]))
    x = conv(x, params["conv3_w"], params["conv3_b"])
    x = jnp.transpose(x, (0, 3, 1, 2)).reshape(x.shape[0], -1)        # PyTorch flatten
    return (jnp.dot(bf(x), bf(params["fc1_w"].T),
                    precision=jax.lax.Precision.HIGHEST) + params["fc1_b"])


def init_params(key):
    ks = jax.random.split(key, 8)

    def w(k, shape, fan_in):
        return jax.random.normal(k, shape, jnp.float32) / jnp.sqrt(fan_in)

    return {
        "conv1_w": w(ks[0], (128, 3, 3, 3), 3 * 3 * 3),
        "conv1_b": w(ks[1], (128,), 3 * 3 * 3),
        "conv2_w": w(ks[2], (128, 128, 3, 3), 128 * 3 * 3),
        "conv2_b": w(ks[3], (128,), 128 * 3 * 3),
        "conv3_w": w(ks[4], (128, 128, 3, 3), 128 * 3 * 3),
        "conv3_b": w(ks[5], (128,), 128 * 3 * 3),
        "fc1_w":   w(ks[6], (10, 128 * 4 * 4), 128 * 4 * 4),
        "fc1_b":   w(ks[7], (10,), 128 * 4 * 4),
    }


if __name__ == "__main__":
    key = jax.random.PRNGKey(0)
    pkey, xkey = jax.random.split(key)
    params = init_params(pkey)
    # CIFAR-shaped input: fc1 = Linear(128*4*4, 10) forces 32x32 spatial.
    x = jax.random.normal(xkey, (2, 3, 32, 32), jnp.float32)

    out = jax.block_until_ready(cnn_cifar_forward(x, params))
    assert out.shape == (2, 10), out.shape

    ref = jax.block_until_ready(reference_forward(x, params))
    assert jnp.allclose(out, ref, rtol=1e-2, atol=1e-2), (
        float(jnp.max(jnp.abs(out - ref))))

    print("KERNEL_OK")
</pallas_src>

<mosaic_0001>
module attributes {stable_mosaic.version = 11 : i64} {
  func.func @_fused_convnet_kernel(%arg0: i32, %arg1: memref<1x960x32xbf16, #tpu.memory_space<vmem>>, %arg2: memref<32x128xbf16, #tpu.memory_space<vmem>>, %arg3: memref<1x128xf32, #tpu.memory_space<vmem>>, %arg4: memref<9x128x128xbf16, #tpu.memory_space<vmem>>, %arg5: memref<1x128xf32, #tpu.memory_space<vmem>>, %arg6: memref<9x128x128xbf16, #tpu.memory_space<vmem>>, %arg7: memref<1x128xf32, #tpu.memory_space<vmem>>, %arg8: memref<16x112xbf16, #tpu.memory_space<vmem>>, %arg9: memref<1x16x128xbf16, #tpu.memory_space<vmem>>, %arg10: memref<480x128xbf16, #tpu.memory_space<vmem>>, %arg11: memref<192x128xbf16, #tpu.memory_space<vmem>>) attributes {dimension_semantics = [#tpu.dimension_semantics<parallel>], iteration_bounds = array<i64: 2>, scalar_prefetch = 0 : i64, scratch_operands = 2 : i64, tpu.core_type = #tpu.core_type<tc>, window_params = [{transform_indices = @transform_0, window_bounds = array<i64: 1, 960, 32>}, {pipeline_mode = #tpu.pipeline_mode<synchronous>, transform_indices = @transform_1, window_bounds = array<i64: 32, 128>}, {pipeline_mode = #tpu.pipeline_mode<synchronous>, transform_indices = @transform_2, window_bounds = array<i64: 1, 128>}, {pipeline_mode = #tpu.pipeline_mode<synchronous>, transform_indices = @transform_3, window_bounds = array<i64: 9, 128, 128>}, {pipeline_mode = #tpu.pipeline_mode<synchronous>, transform_indices = @transform_4, window_bounds = array<i64: 1, 128>}, {pipeline_mode = #tpu.pipeline_mode<synchronous>, transform_indices = @transform_5, window_bounds = array<i64: 9, 128, 128>}, {pipeline_mode = #tpu.pipeline_mode<synchronous>, transform_indices = @transform_6, window_bounds = array<i64: 1, 128>}, {pipeline_mode = #tpu.pipeline_mode<synchronous>, transform_indices = @transform_7, window_bounds = array<i64: 16, 112>}, {transform_indices = @transform_8, window_bounds = array<i64: 1, 16, 128>}]} {
    %c0 = arith.constant 0 : index
    %c0_0 = arith.constant 0 : index
    %c0_1 = arith.constant 0 : index
    %0 = vector.load %arg1[%c0, %c0_0, %c0_1] : memref<1x960x32xbf16, #tpu.memory_space<vmem>>, vector<1x960x32xbf16>
    %1 = vector.shape_cast %0 : vector<1x960x32xbf16> to vector<960x32xbf16>
    %c0_2 = arith.constant 0 : index
    %c0_3 = arith.constant 0 : index
    %2 = vector.load %arg2[%c0_2, %c0_3] : memref<32x128xbf16, #tpu.memory_space<vmem>>, vector<32x128xbf16>
    %cst = arith.constant dense<0.000000e+00> : vector<960x128xf32>
    %3 = tpu.matmul %1, %2, %cst {dimension_numbers = #tpu.dot_dimension_numbers<[1], [0], [0], [1], [0, 0, 1, 1], [], []>} : vector<960x32xbf16>, vector<32x128xbf16>, vector<960x128xf32> -> vector<960x128xf32>
    %c0_4 = arith.constant 0 : index
    %c0_5 = arith.constant 0 : index
    %4 = vector.load %arg3[%c0_4, %c0_5] : memref<1x128xf32, #tpu.memory_space<vmem>>, vector<1x128xf32>
    %5 = vector.broadcast %4 : vector<1x128xf32> to vector<960x128xf32>
    %6 = arith.addf %3, %5 : vector<960x128xf32>
    %cst_6 = arith.constant 0.000000e+00 : f32
    %7 = vector.broadcast %cst_6 : f32 to vector<960x128xf32>
    %8 = arith.maximumf %6, %7 : vector<960x128xf32>
    %9 = vector.shape_cast %8 : vector<960x128xf32> to vector<15x64x128xf32>
    %10 = vector.extract_strided_slice %9 {offsets = [0, 0, 0], sizes = [15, 32, 128], strides = [1, 1, 1]} : vector<15x64x128xf32> to vector<15x32x128xf32>
    %11 = vector.extract_strided_slice %9 {offsets = [0, 32, 0], sizes = [15, 32, 128], strides = [1, 1, 1]} : vector<15x64x128xf32> to vector<15x32x128xf32>
    %12 = arith.maximumf %10, %11 : vector<15x32x128xf32>
    %13 = vector.extract_strided_slice %12 {offsets = [0, 1, 0], sizes = [15, 31, 128], strides = [1, 1, 1]} : vector<15x32x128xf32> to vector<15x31x128xf32>
    %14 = vector.extract_strided_slice %12 {offsets = [0, 0, 0], sizes = [15, 1, 128], strides = [1, 1, 1]} : vector<15x32x128xf32> to vector<15x1x128xf32>
    %15 = tpu.concatenate %13, %14 in 1 : vector<15x31x128xf32>, vector<15x1x128xf32> -> vector<15x32x128xf32>
    %16 = arith.maximumf %12, %15 : vector<15x32x128xf32>
    %17 = vector.shape_cast %16 : vector<15x32x128xf32> to vector<480x128xf32>
    %18 = arith.truncf %17 : vector<480x128xf32> to vector<480x128xbf16>
    %c0_7 = arith.constant 0 : index
    %c0_8 = arith.constant 0 : index
    %19 = vector.load %arg10[%c0_7, %c0_8] : memref<480x128xbf16, #tpu.memory_space<vmem>>, vector<480x128xbf16>
    tpu.vector_store %arg10[%c0_7, %c0_8], %18 {strides = array<i32>} : memref<480x128xbf16, #tpu.memory_space<vmem>>, vector<480x128xbf16>,
    %c0_9 = arith.constant 0 : index
    %c0_10 = arith.constant 0 : index
    %20 = vector.load %arg10[%c0_9, %c0_10] : memref<480x128xbf16, #tpu.memory_space<vmem>>, vector<384x128xbf16>
    %c0_11 = arith.constant 0 : index
    %c0_12 = arith.constant 0 : index
    %c0_13 = arith.constant 0 : index
    %21 = vector.load %arg4[%c0_11, %c0_12, %c0_13] : memref<9x128x128xbf16, #tpu.memory_space<vmem>>, vector<1x128x128xbf16>
    %22 = vector.shape_cast %21 : vector<1x128x128xbf16> to vector<128x128xbf16>
    %cst_14 = arith.constant dense<0.000000e+00> : vector<384x128xf32>
    %23 = tpu.matmul %20, %22, %cst_14 {dimension_numbers = #tpu.dot_dimension_numbers<[1], [0], [0], [1], [0, 0, 1, 1], [], []>} : vector<384x128xbf16>, vector<128x128xbf16>, vector<384x128xf32> -> vector<384x128xf32>
    %c2 = arith.constant 2 : index
    %c0_15 = arith.constant 0 : index
    %24 = vector.load %arg10[%c2, %c0_15] : memref<480x128xbf16, #tpu.memory_space<vmem>>, vector<384x128xbf16>
    %c1 = arith.constant 1 : index
    %c0_16 = arith.constant 0 : index
    %c0_17 = arith.constant 0 : index
    %25 = vector.load %arg4[%c1, %c0_16, %c0_17] : memref<9x128x128xbf16, #tpu.memory_space<vmem>>, vector<1x128x128xbf16>
    %26 = vector.shape_cast %25 : vector<1x128x128xbf16> to vector<128x128xbf16>
    %cst_18 = arith.constant dense<0.000000e+00> : vector<384x128xf32>
    %27 = tpu.matmul %24, %26, %cst_18 {dimension_numbers = #tpu.dot_dimension_numbers<[1], [0], [0], [1], [0, 0, 1, 1], [], []>} : vector<384x128xbf16>, vector<128x128xbf16>, vector<384x128xf32> -> vector<384x128xf32>
    %28 = arith.addf %23, %27 : vector<384x128xf32>
    %c4 = arith.constant 4 : index
    %c0_19 = arith.constant 0 : index
    %29 = vector.load %arg10[%c4, %c0_19] : memref<480x128xbf16, #tpu.memory_space<vmem>>, vector<384x128xbf16>
    %c2_20 = arith.constant 2 : index
    %c0_21 = arith.constant 0 : index
    %c0_22 = arith.constant 0 : index
    %30 = vector.load %arg4[%c2_20, %c0_21, %c0_22] : memref<9x128x128xbf16, #tpu.memory_space<vmem>>, vector<1x128x128xbf16>
    %31 = vector.shape_cast %30 : vector<1x128x128xbf16> to vector<128x128xbf16>
    %cst_23 = arith.constant dense<0.000000e+00> : vector<384x128xf32>
    %32 = tpu.matmul %29, %31, %cst_23 {dimension_numbers = #tpu.dot_dimension_numbers<[1], [0], [0], [1], [0, 0, 1, 1], [], []>} : vector<384x128xbf16>, vector<128x128xbf16>, vector<384x128xf32> -> vector<384x128xf32>
    %33 = arith.addf %28, %32 : vector<384x128xf32>
    %c32 = arith.constant 32 : index
    %c0_24 = arith.constant 0 : index
    %34 = vector.load %arg10[%c32, %c0_24] : memref<480x128xbf16, #tpu.memory_space<vmem>>, vector<384x128xbf16>
    %c3 = arith.constant 3 : index
    %c0_25 = arith.constant 0 : index
    %c0_26 = arith.constant 0 : index
    %35 = vector.load %arg4[%c3, %c0_25, %c0_26] : memref<9x128x128xbf16, #tpu.memory_space<vmem>>, vector<1x128x128xbf16>
    %36 = vector.shape_cast %35 : vector<1x128x128xbf16> to vector<128x128xbf16>
    %cst_27 = arith.constant dense<0.000000e+00> : vector<384x128xf32>
    %37 = tpu.matmul %34, %36, %cst_27 {dimension_numbers = #tpu.dot_dimension_numbers<[1], [0], [0], [1], [0, 0, 1, 1], [], []>} : vector<384x128xbf16>, vector<128x128xbf16>, vector<384x128xf32> -> vector<384x128xf32>
    %38 = arith.addf %33, %37 : vector<384x128xf32>
    %c34 = arith.constant 34 : index
    %c0_28 = arith.constant 0 : index
    %39 = vector.load %arg10[%c34, %c0_28] : memref<480x128xbf16, #tpu.memory_space<vmem>>, vector<384x128xbf16>
    %c4_29 = arith.constant 4 : index
    %c0_30 = arith.constant 0 : index
    %c0_31 = arith.constant 0 : index
    %40 = vector.load %arg4[%c4_29, %c0_30, %c0_31] : memref<9x128x128xbf16, #tpu.memory_space<vmem>>, vector<1x128x128xbf16>
    %41 = vector.shape_cast %40 : vector<1x128x128xbf16> to vector<128x128xbf16>
    %cst_32 = arith.constant dense<0.000000e+00> : vector<384x128xf32>
    %42 = tpu.matmul %39, %41, %cst_32 {dimension_numbers = #tpu.dot_dimension_numbers<[1], [0], [0], [1], [0, 0, 1, 1], [], []>} : vector<384x128xbf16>, vector<128x128xbf16>, vector<384x128xf32> -> vector<384x128xf32>
    %43 = arith.addf %38, %42 : vector<384x128xf32>
    %c36 = arith.constant 36 : index
    %c0_33 = arith.constant 0 : index
    %44 = vector.load %arg10[%c36, %c0_33] : memref<480x128xbf16, #tpu.memory_space<vmem>>, vector<384x128xbf16>
    %c5 = arith.constant 5 : index
    %c0_34 = arith.constant 0 : index
    %c0_35 = arith.constant 0 : index
    %45 = vector.load %arg4[%c5, %c0_34, %c0_35] : memref<9x128x128xbf16, #tpu.memory_space<vmem>>, vector<1x128x128xbf16>
    %46 = vector.shape_cast %45 : vector<1x128x128xbf16> to vector<128x128xbf16>
    %cst_36 = arith.constant dense<0.000000e+00> : vector<384x128xf32>
    %47 = tpu.matmul %44, %46, %cst_36 {dimension_numbers = #tpu.dot_dimension_numbers<[1], [0], [0], [1], [0, 0, 1, 1], [], []>} : vector<384x128xbf16>, vector<128x128xbf16>, vector<384x128xf32> -> vector<384x128xf32>
    %48 = arith.addf %43, %47 : vector<384x128xf32>
    %c64 = arith.constant 64 : index
    %c0_37 = arith.constant 0 : index
    %49 = vector.load %arg10[%c64, %c0_37] : memref<480x128xbf16, #tpu.memory_space<vmem>>, vector<384x128xbf16>
    %c6 = arith.constant 6 : index
    %c0_38 = arith.constant 0 : index
    %c0_39 = arith.constant 0 : index
    %50 = vector.load %arg4[%c6, %c0_38, %c0_39] : memref<9x128x128xbf16, #tpu.memory_space<vmem>>, vector<1x128x128xbf16>
    %51 = vector.shape_cast %50 : vector<1x128x128xbf16> to vector<128x128xbf16>
    %cst_40 = arith.constant dense<0.000000e+00> : vector<384x128xf32>
    %52 = tpu.matmul %49, %51, %cst_40 {dimension_numbers = #tpu.dot_dimension_numbers<[1], [0], [0], [1], [0, 0, 1, 1], [], []>} : vector<384x128xbf16>, vector<128x128xbf16>, vector<384x128xf32> -> vector<384x128xf32>
    %53 = arith.addf %48, %52 : vector<384x128xf32>
    %c66 = arith.constant 66 : index
    %c0_41 = arith.constant 0 : index
    %54 = vector.load %arg10[%c66, %c0_41] : memref<480x128xbf16, #tpu.memory_space<vmem>>, vector<384x128xbf16>
    %c7 = arith.constant 7 : index
    %c0_42 = arith.constant 0 : index
    %c0_43 = arith.constant 0 : index
    %55 = vector.load %arg4[%c7, %c0_42, %c0_43] : memref<9x128x128xbf16, #tpu.memory_space<vmem>>, vector<1x128x128xbf16>
    %56 = vector.shape_cast %55 : vector<1x128x128xbf16> to vector<128x128xbf16>
    %cst_44 = arith.constant dense<0.000000e+00> : vector<384x128xf32>
    %57 = tpu.matmul %54, %56, %cst_44 {dimension_numbers = #tpu.dot_dimension_numbers<[1], [0], [0], [1], [0, 0, 1, 1], [], []>} : vector<384x128xbf16>, vector<128x128xbf16>, vector<384x128xf32> -> vector<384x128xf32>
    %58 = arith.addf %53, %57 : vector<384x128xf32>
    %c68 = arith.constant 68 : index
    %c0_45 = arith.constant 0 : index
    %59 = vector.load %arg10[%c68, %c0_45] : memref<480x128xbf16, #tpu.memory_space<vmem>>, vector<384x128xbf16>
    %c8 = arith.constant 8 : index
    %c0_46 = arith.constant 0 : index
    %c0_47 = arith.constant 0 : index
    %60 = vector.load %arg4[%c8, %c0_46, %c0_47] : memref<9x128x128xbf16, #tpu.memory_space<vmem>>, vector<1x128x128xbf16>
    %61 = vector.shape_cast %60 : vector<1x128x128xbf16> to vector<128x128xbf16>
    %cst_48 = arith.constant dense<0.000000e+00> : vector<384x128xf32>
    %62 = tpu.matmul %59, %61, %cst_48 {dimension_numbers = #tpu.dot_dimension_numbers<[1], [0], [0], [1], [0, 0, 1, 1], [], []>} : vector<384x128xbf16>, vector<128x128xbf16>, vector<384x128xf32> -> vector<384x128xf32>
    %63 = arith.addf %58, %62 : vector<384x128xf32>
    %c0_49 = arith.constant 0 : index
    %c0_50 = arith.constant 0 : index
    %64 = vector.load %arg5[%c0_49, %c0_50] : memref<1x128xf32, #tpu.memory_space<vmem>>, vector<1x128xf32>
    %65 = vector.broadcast %64 : vector<1x128xf32> to vector<384x128xf32>
    %66 = arith.addf %63, %65 : vector<384x128xf32>
    %cst_51 = arith.constant 0.000000e+00 : f32
    %67 = vector.broadcast %cst_51 : f32 to vector<384x128xf32>
    %68 = arith.maximumf %66, %67 : vector<384x128xf32>
    %69 = vector.shape_cast %68 : vector<384x128xf32> to vector<6x64x128xf32>
    %70 = vector.extract_strided_slice %69 {offsets = [0, 0, 0], sizes = [6, 32, 128], strides = [1, 1, 1]} : vector<6x64x128xf32> to vector<6x32x128xf32>
    %71 = vector.extract_strided_slice %69 {offsets = [0, 32, 0], sizes = [6, 32, 128], strides = [1, 1, 1]} : vector<6x64x128xf32> to vector<6x32x128xf32>
    %72 = arith.maximumf %70, %71 : vector<6x32x128xf32>
    %73 = vector.extract_strided_slice %72 {offsets = [0, 2, 0], sizes = [6, 30, 128], strides = [1, 1, 1]} : vector<6x32x128xf32> to vector<6x30x128xf32>
    %74 = vector.extract_strided_slice %72 {offsets = [0, 0, 0], sizes = [6, 2, 128], strides = [1, 1, 1]} : vector<6x32x128xf32> to vector<6x2x128xf32>
    %75 = tpu.concatenate %73, %74 in 1 : vector<6x30x128xf32>, vector<6x2x128xf32> -> vector<6x32x128xf32>
    %76 = arith.maximumf %72, %75 : vector<6x32x128xf32>
    %77 = vector.shape_cast %76 : vector<6x32x128xf32> to vector<192x128xf32>
    %78 = arith.truncf %77 : vector<192x128xf32> to vector<192x128xbf16>
    %c0_52 = arith.constant 0 : index
    %c0_53 = arith.constant 0 : index
    %79 = vector.load %arg11[%c0_52, %c0_53] : memref<192x128xbf16, #tpu.memory_space<vmem>>, vector<192x128xbf16>
    tpu.vector_store %arg11[%c0_52, %c0_53], %78 {strides = array<i32>} : memref<192x128xbf16, #tpu.memory_space<vmem>>, vector<192x128xbf16>,
    %c0_54 = arith.constant 0 : index
    %c0_55 = arith.constant 0 : index
    %80 = vector.load %arg11[%c0_54, %c0_55] : memref<192x128xbf16, #tpu.memory_space<vmem>>, vector<112x128xbf16>
    %c0_56 = arith.constant 0 : index
    %c0_57 = arith.constant 0 : index
    %c0_58 = arith.constant 0 : index
    %81 = vector.load %arg6[%c0_56, %c0_57, %c0_58] : memref<9x128x128xbf16, #tpu.memory_space<vmem>>, vector<1x128x128xbf16>
    %82 = vector.shape_cast %81 : vector<1x128x128xbf16> to vector<128x128xbf16>
    %cst_59 = arith.constant dense<0.000000e+00> : vector<112x128xf32>
    %83 = tpu.matmul %80, %82, %cst_59 {dimension_numbers = #tpu.dot_dimension_numbers<[1], [0], [0], [1], [0, 0, 1, 1], [], []>} : vector<112x128xbf16>, vector<128x128xbf16>, vector<112x128xf32> -> vector<112x128xf32>
    %c4_60 = arith.constant 4 : index
    %c0_61 = arith.constant 0 : index
    %84 = vector.load %arg11[%c4_60, %c0_61] : memref<192x128xbf16, #tpu.memory_space<vmem>>, vector<112x128xbf16>
    %c1_62 = arith.constant 1 : index
    %c0_63 = arith.constant 0 : index
    %c0_64 = arith.constant 0 : index
    %85 = vector.load %arg6[%c1_62, %c0_63, %c0_64] : memref<9x128x128xbf16, #tpu.memory_space<vmem>>, vector<1x128x128xbf16>
    %86 = vector.shape_cast %85 : vector<1x128x128xbf16> to vector<128x128xbf16>
    %cst_65 = arith.constant dense<0.000000e+00> : vector<112x128xf32>
    %87 = tpu.matmul %84, %86, %cst_65 {dimension_numbers = #tpu.dot_dimension_numbers<[1], [0], [0], [1], [0, 0, 1, 1], [], []>} : vector<112x128xbf16>, vector<128x128xbf16>, vector<112x128xf32> -> vector<112x128xf32>
    %88 = arith.addf %83, %87 : vector<112x128xf32>
    %c8_66 = arith.constant 8 : index
    %c0_67 = arith.constant 0 : index
    %89 = vector.load %arg11[%c8_66, %c0_67] : memref<192x128xbf16, #tpu.memory_space<vmem>>, vector<112x128xbf16>
    %c2_68 = arith.constant 2 : index
    %c0_69 = arith.constant 0 : index
    %c0_70 = arith.constant 0 : index
    %90 = vector.load %arg6[%c2_68, %c0_69, %c0_70] : memref<9x128x128xbf16, #tpu.memory_space<vmem>>, vector<1x128x128xbf16>
    %91 = vector.shape_cast %90 : vector<1x128x128xbf16> to vector<128x128xbf16>
    %cst_71 = arith.constant dense<0.000000e+00> : vector<112x128xf32>
    %92 = tpu.matmul %89, %91, %cst_71 {dimension_numbers = #tpu.dot_dimension_numbers<[1], [0], [0], [1], [0, 0, 1, 1], [], []>} : vector<112x128xbf16>, vector<128x128xbf16>, vector<112x128xf32> -> vector<112x128xf32>
    %93 = arith.addf %88, %92 : vector<112x128xf32>
    %c32_72 = arith.constant 32 : index
    %c0_73 = arith.constant 0 : index
    %94 = vector.load %arg11[%c32_72, %c0_73] : memref<192x128xbf16, #tpu.memory_space<vmem>>, vector<112x128xbf16>
    %c3_74 = arith.constant 3 : index
    %c0_75 = arith.constant 0 : index
    %c0_76 = arith.constant 0 : index
    %95 = vector.load %arg6[%c3_74, %c0_75, %c0_76] : memref<9x128x128xbf16, #tpu.memory_space<vmem>>, vector<1x128x128xbf16>
    %96 = vector.shape_cast %95 : vector<1x128x128xbf16> to vector<128x128xbf16>
    %cst_77 = arith.constant dense<0.000000e+00> : vector<112x128xf32>
    %97 = tpu.matmul %94, %96, %cst_77 {dimension_numbers = #tpu.dot_dimension_numbers<[1], [0], [0], [1], [0, 0, 1, 1], [], []>} : vector<112x128xbf16>, vector<128x128xbf16>, vector<112x128xf32> -> vector<112x128xf32>
    %98 = arith.addf %93, %97 : vector<112x128xf32>
    %c36_78 = arith.constant 36 : index
    %c0_79 = arith.constant 0 : index
    %99 = vector.load %arg11[%c36_78, %c0_79] : memref<192x128xbf16, #tpu.memory_space<vmem>>, vector<112x128xbf16>
    %c4_80 = arith.constant 4 : index
    %c0_81 = arith.constant 0 : index
    %c0_82 = arith.constant 0 : index
    %100 = vector.load %arg6[%c4_80, %c0_81, %c0_82] : memref<9x128x128xbf16, #tpu.memory_space<vmem>>, vector<1x128x128xbf16>
    %101 = vector.shape_cast %100 : vector<1x128x128xbf16> to vector<128x128xbf16>
    %cst_83 = arith.constant dense<0.000000e+00> : vector<112x128xf32>
    %102 = tpu.matmul %99, %101, %cst_83 {dimension_numbers = #tpu.dot_dimension_numbers<[1], [0], [0], [1], [0, 0, 1, 1], [], []>} : vector<112x128xbf16>, vector<128x128xbf16>, vector<112x128xf32> -> vector<112x128xf32>
    %103 = arith.addf %98, %102 : vector<112x128xf32>
    %c40 = arith.constant 40 : index
    %c0_84 = arith.constant 0 : index
    %104 = vector.load %arg11[%c40, %c0_84] : memref<192x128xbf16, #tpu.memory_space<vmem>>, vector<112x128xbf16>
    %c5_85 = arith.constant 5 : index
    %c0_86 = arith.constant 0 : index
    %c0_87 = arith.constant 0 : index
    %105 = vector.load %arg6[%c5_85, %c0_86, %c0_87] : memref<9x128x128xbf16, #tpu.memory_space<vmem>>, vector<1x128x128xbf16>
    %106 = vector.shape_cast %105 : vector<1x128x128xbf16> to vector<128x128xbf16>
    %cst_88 = arith.constant dense<0.000000e+00> : vector<112x128xf32>
    %107 = tpu.matmul %104, %106, %cst_88 {dimension_numbers = #tpu.dot_dimension_numbers<[1], [0], [0], [1], [0, 0, 1, 1], [], []>} : vector<112x128xbf16>, vector<128x128xbf16>, vector<112x128xf32> -> vector<112x128xf32>
    %108 = arith.addf %103, %107 : vector<112x128xf32>
    %c64_89 = arith.constant 64 : index
    %c0_90 = arith.constant 0 : index
    %109 = vector.load %arg11[%c64_89, %c0_90] : memref<192x128xbf16, #tpu.memory_space<vmem>>, vector<112x128xbf16>
    %c6_91 = arith.constant 6 : index
    %c0_92 = arith.constant 0 : index
    %c0_93 = arith.constant 0 : index
    %110 = vector.load %arg6[%c6_91, %c0_92, %c0_93] : memref<9x128x128xbf16, #tpu.memory_space<vmem>>, vector<1x128x128xbf16>
    %111 = vector.shape_cast %110 : vector<1x128x128xbf16> to vector<128x128xbf16>
    %cst_94 = arith.constant dense<0.000000e+00> : vector<112x128xf32>
    %112 = tpu.matmul %109, %111, %cst_94 {dimension_numbers = #tpu.dot_dimension_numbers<[1], [0], [0], [1], [0, 0, 1, 1], [], []>} : vector<112x128xbf16>, vector<128x128xbf16>, vector<112x128xf32> -> vector<112x128xf32>
    %113 = arith.addf %108, %112 : vector<112x128xf32>
    %c68_95 = arith.constant 68 : index
    %c0_96 = arith.constant 0 : index
    %114 = vector.load %arg11[%c68_95, %c0_96] : memref<192x128xbf16, #tpu.memory_space<vmem>>, vector<112x128xbf16>
    %c7_97 = arith.constant 7 : index
    %c0_98 = arith.constant 0 : index
    %c0_99 = arith.constant 0 : index
    %115 = vector.load %arg6[%c7_97, %c0_98, %c0_99] : memref<9x128x128xbf16, #tpu.memory_space<vmem>>, vector<1x128x128xbf16>
    %116 = vector.shape_cast %115 : vector<1x128x128xbf16> to vector<128x128xbf16>
    %cst_100 = arith.constant dense<0.000000e+00> : vector<112x128xf32>
    %117 = tpu.matmul %114, %116, %cst_100 {dimension_numbers = #tpu.dot_dimension_numbers<[1], [0], [0], [1], [0, 0, 1, 1], [], []>} : vector<112x128xbf16>, vector<128x128xbf16>, vector<112x128xf32> -> vector<112x128xf32>
    %118 = arith.addf %113, %117 : vector<112x128xf32>
    %c72 = arith.constant 72 : index
    %c0_101 = arith.constant 0 : index
    %119 = vector.load %arg11[%c72, %c0_101] : memref<192x128xbf16, #tpu.memory_space<vmem>>, vector<112x128xbf16>
    %c8_102 = arith.constant 8 : index
    %c0_103 = arith.constant 0 : index
    %c0_104 = arith.constant 0 : index
    %120 = vector.load %arg6[%c8_102, %c0_103, %c0_104] : memref<9x128x128xbf16, #tpu.memory_space<vmem>>, vector<1x128x128xbf16>
    %121 = vector.shape_cast %120 : vector<1x128x128xbf16> to vector<128x128xbf16>
    %cst_105 = arith.constant dense<0.000000e+00> : vector<112x128xf32>
    %122 = tpu.matmul %119, %121, %cst_105 {dimension_numbers = #tpu.dot_dimension_numbers<[1], [0], [0], [1], [0, 0, 1, 1], [], []>} : vector<112x128xbf16>, vector<128x128xbf16>, vector<112x128xf32> -> vector<112x128xf32>
    %123 = arith.addf %118, %122 : vector<112x128xf32>
    %c0_106 = arith.constant 0 : index
    %c0_107 = arith.constant 0 : index
    %124 = vector.load %arg7[%c0_106, %c0_107] : memref<1x128xf32, #tpu.memory_space<vmem>>, vector<1x128xf32>
    %125 = vector.broadcast %124 : vector<1x128xf32> to vector<112x128xf32>
    %126 = arith.addf %123, %125 : vector<112x128xf32>
    %cst_108 = arith.constant 0.000000e+00 : f32
    %127 = vector.broadcast %cst_108 : f32 to vector<112x128xf32>
    %128 = arith.maximumf %126, %127 : vector<112x128xf32>
    %129 = arith.truncf %128 : vector<112x128xf32> to vector<112x128xbf16>
    %c0_109 = arith.constant 0 : index
    %c0_110 = arith.constant 0 : index
    %130 = vector.load %arg8[%c0_109, %c0_110] : memref<16x112xbf16, #tpu.memory_space<vmem>>, vector<16x112xbf16>
    %cst_111 = arith.constant dense<0.000000e+00> : vector<16x128xf32>
    %131 = tpu.matmul %130, %129, %cst_111 {dimension_numbers = #tpu.dot_dimension_numbers<[1], [0], [0], [1], [0, 0, 1, 1], [], []>} : vector<16x112xbf16>, vector<112x128xbf16>, vector<16x128xf32> -> vector<16x128xf32>
    %132 = arith.truncf %131 : vector<16x128xf32> to vector<16x128xbf16>
    %c0_112 = arith.constant 0 : index
    %c0_113 = arith.constant 0 : index
    %c0_114 = arith.constant 0 : index
    %133 = vector.load %arg9[%c0_112, %c0_113, %c0_114] : memref<1x16x128xbf16, #tpu.memory_space<vmem>>, vector<1x16x128xbf16>
    %134 = vector.shape_cast %133 : vector<1x16x128xbf16> to vector<16x128xbf16>
    %135 = vector.shape_cast %132 : vector<16x128xbf16> to vector<1x16x128xbf16>
    tpu.vector_store %arg9[%c0_112, %c0_113, %c0_114], %135 {strides = array<i32>} : memref<1x16x128xbf16, #tpu.memory_space<vmem>>, vector<1x16x128xbf16>,
    return
  }
  func.func @transform_0(%arg0: i32) -> (i32, i32, i32) {
    %c0_i32 = arith.constant 0 : i32
    %c0_i32_0 = arith.constant 0 : i32
    %c0_i32_1 = arith.constant 0 : i32
    return %arg0, %c0_i32, %c0_i32_0 : i32, i32, i32
  }
  func.func @transform_1(%arg0: i32) -> (i32, i32) {
    %c0_i32 = arith.constant 0 : i32
    %c0_i32_0 = arith.constant 0 : i32
    %c0_i32_1 = arith.constant 0 : i32
    return %c0_i32, %c0_i32_0 : i32, i32
  }
  func.func @transform_2(%arg0: i32) -> (i32, i32) {
    %c0_i32 = arith.constant 0 : i32
    %c0_i32_0 = arith.constant 0 : i32
    %c0_i32_1 = arith.constant 0 : i32
    return %c0_i32, %c0_i32_0 : i32, i32
  }
  func.func @transform_3(%arg0: i32) -> (i32, i32, i32) {
    %c0_i32 = arith.constant 0 : i32
    %c0_i32_0 = arith.constant 0 : i32
    %c0_i32_1 = arith.constant 0 : i32
    %c0_i32_2 = arith.constant 0 : i32
    return %c0_i32, %c0_i32_0, %c0_i32_1 : i32, i32, i32
  }
  func.func @transform_4(%arg0: i32) -> (i32, i32) {
    %c0_i32 = arith.constant 0 : i32
    %c0_i32_0 = arith.constant 0 : i32
    %c0_i32_1 = arith.constant 0 : i32
    return %c0_i32, %c0_i32_0 : i32, i32
  }
  func.func @transform_5(%arg0: i32) -> (i32, i32, i32) {
    %c0_i32 = arith.constant 0 : i32
    %c0_i32_0 = arith.constant 0 : i32
    %c0_i32_1 = arith.constant 0 : i32
    %c0_i32_2 = arith.constant 0 : i32
    return %c0_i32, %c0_i32_0, %c0_i32_1 : i32, i32, i32
  }
  func.func @transform_6(%arg0: i32) -> (i32, i32) {
    %c0_i32 = arith.constant 0 : i32
    %c0_i32_0 = arith.constant 0 : i32
    %c0_i32_1 = arith.constant 0 : i32
    return %c0_i32, %c0_i32_0 : i32, i32
  }
  func.func @transform_7(%arg0: i32) -> (i32, i32) {
    %c0_i32 = arith.constant 0 : i32
    %c0_i32_0 = arith.constant 0 : i32
    %c0_i32_1 = arith.constant 0 : i32
    return %c0_i32, %c0_i32_0 : i32, i32
  }
  func.func @transform_8(%arg0: i32) -> (i32, i32, i32) {
    %c0_i32 = arith.constant 0 : i32
    %c0_i32_0 = arith.constant 0 : i32
    %c0_i32_1 = arith.constant 0 : i32
    return %arg0, %c0_i32, %c0_i32_0 : i32, i32, i32
  }
}

module attributes {stable_mosaic.version = 11 : i64} {
  func.func @_fc_kernel(%arg0: i32, %arg1: memref<2x2048xbf16, #tpu.memory_space<vmem>>, %arg2: memref<2048x128xbf16, #tpu.memory_space<vmem>>, %arg3: memref<1x128xf32, #tpu.memory_space<vmem>>, %arg4: memref<2x128xf32, #tpu.memory_space<vmem>>) attributes {dimension_semantics = [#tpu.dimension_semantics<arbitrary>], iteration_bounds = array<i64: 1>, scalar_prefetch = 0 : i64, scratch_operands = 0 : i64, tpu.core_type = #tpu.core_type<tc>, window_params = [{pipeline_mode = #tpu.pipeline_mode<synchronous>, transform_indices = @transform_0, window_bounds = array<i64: 2, 2048>}, {pipeline_mode = #tpu.pipeline_mode<synchronous>, transform_indices = @transform_1, window_bounds = array<i64: 2048, 128>}, {pipeline_mode = #tpu.pipeline_mode<synchronous>, transform_indices = @transform_2, window_bounds = array<i64: 1, 128>}, {pipeline_mode = #tpu.pipeline_mode<synchronous>, transform_indices = @transform_3, window_bounds = array<i64: 2, 128>}]} {
    %c0 = arith.constant 0 : index
    %c0_0 = arith.constant 0 : index
    %0 = vector.load %arg1[%c0, %c0_0] : memref<2x2048xbf16, #tpu.memory_space<vmem>>, vector<2x2048xbf16>
    %c0_1 = arith.constant 0 : index
    %c0_2 = arith.constant 0 : index
    %1 = vector.load %arg2[%c0_1, %c0_2] : memref<2048x128xbf16, #tpu.memory_space<vmem>>, vector<2048x128xbf16>
    %cst = arith.constant dense<0.000000e+00> : vector<2x128xf32>
    %2 = tpu.matmul %0, %1, %cst {dimension_numbers = #tpu.dot_dimension_numbers<[1], [0], [0], [1], [0, 0, 1, 1], [], []>} : vector<2x2048xbf16>, vector<2048x128xbf16>, vector<2x128xf32> -> vector<2x128xf32>
    %c0_3 = arith.constant 0 : index
    %c0_4 = arith.constant 0 : index
    %3 = vector.load %arg3[%c0_3, %c0_4] : memref<1x128xf32, #tpu.memory_space<vmem>>, vector<1x128xf32>
    %4 = vector.broadcast %3 : vector<1x128xf32> to vector<2x128xf32>
    %5 = arith.addf %2, %4 : vector<2x128xf32>
    %c0_5 = arith.constant 0 : index
    %c0_6 = arith.constant 0 : index
    %6 = vector.load %arg4[%c0_5, %c0_6] : memref<2x128xf32, #tpu.memory_space<vmem>>, vector<2x128xf32>
    tpu.vector_store %arg4[%c0_5, %c0_6], %5 {strides = array<i32>} : memref<2x128xf32, #tpu.memory_space<vmem>>, vector<2x128xf32>,
    return
  }
  func.func @transform_0(%arg0: i32) -> (i32, i32) {
    %c0_i32 = arith.constant 0 : i32
    %c0_i32_0 = arith.constant 0 : i32
    %c0_i32_1 = arith.constant 0 : i32
    return %c0_i32, %c0_i32_0 : i32, i32
  }
  func.func @transform_1(%arg0: i32) -> (i32, i32) {
    %c0_i32 = arith.constant 0 : i32
    %c0_i32_0 = arith.constant 0 : i32
    %c0_i32_1 = arith.constant 0 : i32
    return %c0_i32, %c0_i32_0 : i32, i32
  }
  func.func @transform_2(%arg0: i32) -> (i32, i32) {
    %c0_i32 = arith.constant 0 : i32
    %c0_i32_0 = arith.constant 0 : i32
    %c0_i32_1 = arith.constant 0 : i32
    return %c0_i32, %c0_i32_0 : i32, i32
  }
  func.func @transform_3(%arg0: i32) -> (i32, i32) {
    %c0_i32 = arith.constant 0 : i32
    %c0_i32_0 = arith.constant 0 : i32
    %c0_i32_1 = arith.constant 0 : i32
    return %c0_i32, %c0_i32_0 : i32, i32
  }
}

</mosaic_0001>

<bundles_post_ra>
// kernel: cnn_cifar_forward.3
= control target key start
LH: loop header
LB: loop body
LE: loop exit
PB: predicated region body
PF: predicated region fallthrough
CT: control target
= control target key end

     0   :  { %v287_v28 = vlaneseq  ;;  %v1961_v36 = vmov 1966171168   ;;  %s2412_s0 = inlined_call_operand.vmem [shape: bf16[2,2048], index: 0, kind: input, shape index: {}]   ;;  %s2413_s1 = inlined_call_operand.vmem [shape: bf16[2048,128], index: 1, kind: input, shape index: {}]   ;;  %s2414_s2 = inlined_call_operand.vmem [shape: f32[1,128], index: 2, kind: input, shape index: {}]   ;;  %s2415_s3 = inlined_call_operand.hbm [shape: f32[2,128], index: 3, kind: output, shape index: {}]  }
   0x1   :  { %v1807_v0 = vld [vmem:[%s2413_s1 + $0x40] sm:$0xff]   ;;  %v1811_v4 = vld [vmem:[%s2413_s1 + $0x48] sm:$0xff]   ;;  %v1815_v8 = vld [vmem:[%s2413_s1 + $0x50] sm:$0xff]   ;;  %v285_v37 = vunpack.c.l.s4 %v1961_v36 }
   0x2   :  { %v1808_v1 = vld [vmem:[%s2413_s1 + $0xc0] sm:$0xff]   ;;  %1629 = vmatprep.subr.bf16.mxu0 %v1807_v0  ;;  %v1812_v5 = vld [vmem:[%s2413_s1 + $0xc8] sm:$0xff]   ;;  %v1816_v9 = vld [vmem:[%s2413_s1 + $0xd0] sm:$0xff]   ;;  %v288_v33 = vshrl.u32 %v287_v28, 7 }
   0x3   :  { %v1809_v2 = vld [vmem:[%s2413_s1] sm:$0xff]   ;;  %1651 = vmatprep.subr.bf16.mxu1 %v1808_v1  ;;  %v1813_v6 = vld [vmem:[%s2413_s1 + $0x8] sm:$0xff]   ;;  %v1817_v10 = vld [vmem:[%s2413_s1 + $0x10] sm:$0xff]   ;;  %v286_v40 = vunpack.c.0.s8 %v285_v37 }
   0x4   :  { %v1810_v3 = vld [vmem:[%s2413_s1 + $0x80] sm:$0xff]   ;;  %1630 = vmatpush3.bf16.msra.mxu0 %v1809_v2  ;;  %v1814_v7 = vld [vmem:[%s2413_s1 + $0x88] sm:$0xff]   ;;  %v1818_v11 = vld [vmem:[%s2413_s1 + $0x90] sm:$0xff]  }
   0x5   :  { %1652 = vmatpush3.bf16.msra.mxu1 %v1810_v3  ;;  %1631 = vmatprep.subr.bf16.mxu0 %v1811_v4  ;;  %v1819_v12 = vld [vmem:[%s2413_s1 + $0x58] sm:$0xff]   ;;  %v1823_v16 = vld [vmem:[%s2413_s1 + $0x60] sm:$0xff]   ;;  %v1827_v20 = vld [vmem:[%s2413_s1 + $0x68] sm:$0xff]   ;;  %v2088_v41 = vsub.s32 %v286_v40, %v288_v33 }
   0x6   :  { %1653 = vmatprep.subr.bf16.mxu1 %v1812_v5  ;;  %v1820_v13 = vld [vmem:[%s2413_s1 + $0xd8] sm:$0xff]   ;;  %v1824_v17 = vld [vmem:[%s2413_s1 + $0xe0] sm:$0xff]   ;;  %v1828_v21 = vld [vmem:[%s2413_s1 + $0xe8] sm:$0xff]  }
   0x7   :  { %v1821_v14 = vld [vmem:[%s2413_s1 + $0x18] sm:$0xff]   ;;  %v1825_v18 = vld [vmem:[%s2413_s1 + $0x20] sm:$0xff]   ;;  %v1829_v22 = vld [vmem:[%s2413_s1 + $0x28] sm:$0xff]  }
   0x8   :  { %1632 = vmatpush3.bf16.msra.mxu0 %v1813_v6  ;;  %v1822_v15 = vld [vmem:[%s2413_s1 + $0x98] sm:$0xff]   ;;  %v1826_v19 = vld [vmem:[%s2413_s1 + $0xa0] sm:$0xff]   ;;  %v1830_v23 = vld [vmem:[%s2413_s1 + $0xa8] sm:$0xff]  }
   0x9   :  { %1654 = vmatpush3.bf16.msra.mxu1 %v1814_v7  ;;  %1633 = vmatprep.subr.bf16.mxu0 %v1815_v8  ;;  %v1831_v24 = vld [vmem:[%s2413_s1 + $0x70] sm:$0xff]   ;;  %v1835_v29 = vld [vmem:[%s2413_s1 + $0x78] sm:$0xff]   ;;  %v16_v34 = vld [vmem:[%s2412_s0] sm:$0xff] }
   0xa   :  { %1655 = vmatprep.subr.bf16.mxu1 %v1816_v9  ;;  %v1832_v25 = vld [vmem:[%s2413_s1 + $0xf0] sm:$0xff]   ;;  %v1836_v30 = vld [vmem:[%s2413_s1 + $0xf8] sm:$0xff]   ;;  %v1840_v35 = vld [vmem:[%s2413_s1 + $0x140] sm:$0xff]   ;;  %v283_v39 = vcombine.high %v16_v34, %v16_v34  ;;  %v290_v42 = vrot.slane %v16_v34, %v2088_v41 }
   0xb   :  { %v1833_v26 = vld [vmem:[%s2413_s1 + $0x30] sm:$0xff]   ;;  %v1837_v31 = vld [vmem:[%s2413_s1 + $0x38] sm:$0xff]   ;;  %v1841_v38 = vld [vmem:[%s2413_s1 + $0x1c0] sm:$0xff]  }
   0xc   :  { %1634 = vmatpush3.bf16.msra.mxu0 %v1817_v10  ;;  %v1834_v27 = vld [vmem:[%s2413_s1 + $0xb0] sm:$0xff]   ;;  %v1838_v32 = vld [vmem:[%s2413_s1 + $0xb8] sm:$0xff]   ;;  %v2092_v43 = vrot.slane %v283_v39, %v2088_v41  ;;  %v298_v44 = vcombine.high %v290_v42, %v290_v42  ;;  %v306_v45 = vrot.slane %v290_v42, %v2088_v41  ;;  %v1842_v48 = vld [vmem:[%s2413_s1 + $0x100] sm:$0xff]  }
   0xd   :  { %1656 = vmatpush3.bf16.msra.mxu1 %v1818_v11  ;;  %1635 = vmatprep.subr.bf16.mxu0 %v1819_v12  ;;  %v1844_v51 = vld [vmem:[%s2413_s1 + $0x148] sm:$0xff]   ;;  %v1843_v53 = vld [vmem:[%s2413_s1 + $0x180] sm:$0xff]   ;;  %v1848_v57 = vld [vmem:[%s2413_s1 + $0x150] sm:$0xff]  }
   0xe   :  { %1657 = vmatprep.subr.bf16.mxu1 %v1820_v13  ;;  %v299_v46 = vcombine.high %v2092_v43, %v2092_v43  ;;  %v320_v47 = vrot.slane %v298_v44, %v2088_v41  ;;  %v328_v50 = vcombine.high %v306_v45, %v306_v45  ;;  %v1845_v54 = vld [vmem:[%s2413_s1 + $0x1c8] sm:$0xff]   ;;  %v1849_v59 = vld [vmem:[%s2413_s1 + $0x1d0] sm:$0xff]   ;;  %v1852_v61 = vld [vmem:[%s2413_s1 + $0x158] sm:$0xff]  }
   0xf   :  { %v1846_v56 = vld [vmem:[%s2413_s1 + $0x108] sm:$0xff]   ;;  %v1850_v60 = vld [vmem:[%s2413_s1 + $0x110] sm:$0xff]   ;;  %v1853_v63 = vld [vmem:[%s2413_s1 + $0x1d8] sm:$0xff]  }
  0x10   :  { %1636 = vmatpush3.bf16.msra.mxu0 %v1821_v14  ;;  %v327_v49 = vrot.slane %v299_v46, %v2088_v41  ;;  %1197 = vmatprep.mubr.bf16.mxu0 %v320_v47  ;;  %v330_v52 = vcombine.high %v320_v47, %v320_v47  ;;  %v1847_v58 = vld [vmem:[%s2413_s1 + $0x188] sm:$0xff]   ;;  %v1851_v62 = vld [vmem:[%s2413_s1 + $0x190] sm:$0xff]   ;;  %v1854_v0 = vld [vmem:[%s2413_s1 + $0x118] sm:$0xff]  }
  0x11   :  { %1658 = vmatpush3.bf16.msra.mxu1 %v1822_v15  ;;  %1637 = vmatprep.subr.bf16.mxu0 %v1823_v16  ;;  %v1856_v1 = vld [vmem:[%s2413_s1 + $0x160] sm:$0xff]   ;;  %v1855_v2 = vld [vmem:[%s2413_s1 + $0x198] sm:$0xff]   ;;  %v1860_v5 = vld [vmem:[%s2413_s1 + $0x168] sm:$0xff]  }
  0x12   :  { %1659 = vmatprep.subr.bf16.mxu1 %v1824_v17  ;;  %v331_v55 = vcombine.high %v327_v49, %v327_v49  ;;  %1237 = vmatprep.mubr.bf16.mxu1 %v330_v52  ;;  %v1857_v3 = vld [vmem:[%s2413_s1 + $0x1e0] sm:$0xff]   ;;  %v1861_v7 = vld [vmem:[%s2413_s1 + $0x1e8] sm:$0xff]   ;;  %v1864_v9 = vld [vmem:[%s2413_s1 + $0x170] sm:$0xff]   ;;  %v313_v17 = vrot.slane %v2092_v43, %v2088_v41 }
  0x13   :  { %v1858_v4 = vld [vmem:[%s2413_s1 + $0x120] sm:$0xff]   ;;  %v1862_v8 = vld [vmem:[%s2413_s1 + $0x128] sm:$0xff]   ;;  %v1865_v11 = vld [vmem:[%s2413_s1 + $0x1f0] sm:$0xff]  }
  0x14   :  { %1638 = vmatpush3.bf16.msra.mxu0 %v1825_v18  ;;  %v1859_v6 = vld [vmem:[%s2413_s1 + $0x1a0] sm:$0xff]   ;;  %v1863_v10 = vld [vmem:[%s2413_s1 + $0x1a8] sm:$0xff]   ;;  %v1866_v12 = vld [vmem:[%s2413_s1 + $0x130] sm:$0xff]  }
  0x15   :  { %1660 = vmatpush3.bf16.msra.mxu1 %v1826_v19  ;;  %1639 = vmatprep.subr.bf16.mxu0 %v1827_v20  ;;  %v1868_v13 = vld [vmem:[%s2413_s1 + $0x178] sm:$0xff]   ;;  %v1867_v14 = vld [vmem:[%s2413_s1 + $0x1b0] sm:$0xff]   ;;  %v1872_v18 = vld [vmem:[%s2413_s1 + $0x240] sm:$0xff]  }
  0x16   :  { %1661 = vmatprep.subr.bf16.mxu1 %v1828_v21  ;;  %v1869_v15 = vld [vmem:[%s2413_s1 + $0x1f8] sm:$0xff]   ;;  %v1873_v20 = vld [vmem:[%s2413_s1 + $0x2c0] sm:$0xff]   ;;  %v1879_v28 = vld [vmem:[%s2413_s1 + $0x288] sm:$0xff]  }
  0x17   :  { %v1870_v16 = vld [vmem:[%s2413_s1 + $0x138] sm:$0xff]   ;;  %v1874_v21 = vld [vmem:[%s2413_s1 + $0x200] sm:$0xff]   ;;  %v1892_v39 = vld [vmem:[%s2413_s1 + $0x268] sm:$0xff]  }
  0x18   :  { %1640 = vmatpush3.bf16.msra.mxu0 %v1829_v22  ;;  %v1871_v19 = vld [vmem:[%s2413_s1 + $0x1b8] sm:$0xff]   ;;  %v329_v22 = vcombine.high %v313_v17, %v313_v17  ;;  %v1889_v37 = vld [vmem:[%s2413_s1 + $0x2e0] sm:$0xff]   ;;  %v1893_v42 = vld [vmem:[%s2413_s1 + $0x2e8] sm:$0xff]  }
  0x19   :  { %1662 = vmatpush3.bf16.msra.mxu1 %v1830_v23  ;;  %1641 = vmatprep.subr.bf16.mxu0 %v1831_v24  ;;  %v1876_v23 = vld [vmem:[%s2413_s1 + $0x248] sm:$0xff]   ;;  %v1875_v24 = vld [vmem:[%s2413_s1 + $0x280] sm:$0xff]   ;;  %v1885_v33 = vld [vmem:[%s2413_s1 + $0x2d8] sm:$0xff]  }
  0x1a   :  { %1663 = vmatprep.subr.bf16.mxu1 %v1832_v25  ;;  %v1877_v25 = vld [vmem:[%s2413_s1 + $0x2c8] sm:$0xff]   ;;  %v1886_v34 = vld [vmem:[%s2413_s1 + $0x218] sm:$0xff]   ;;  %v1891_v40 = vld [vmem:[%s2413_s1 + $0x2a0] sm:$0xff]  }
  0x1b   :  { %v1887_v36 = vld [vmem:[%s2413_s1 + $0x298] sm:$0xff]   ;;  %v1894_v43 = vld [vmem:[%s2413_s1 + $0x228] sm:$0xff]   ;;  %v1896_v44 = vld [vmem:[%s2413_s1 + $0x270] sm:$0xff]  }
  0x1c   :  { %1642 = vmatpush3.bf16.msra.mxu0 %v1833_v26  ;;  %v1878_v26 = vld [vmem:[%s2413_s1 + $0x208] sm:$0xff]  }
  0x1d   :  { %1664 = vmatpush3.bf16.msra.mxu1 %v1834_v27  ;;  %1643 = vmatprep.subr.bf16.mxu0 %v1835_v29  ;;  %v1880_v27 = vld [vmem:[%s2413_s1 + $0x250] sm:$0xff]   ;;  %v1895_v46 = vld [vmem:[%s2413_s1 + $0x2a8] sm:$0xff]  }
  0x1e   :  { %1665 = vmatprep.subr.bf16.mxu1 %v1836_v30  ;;  %v1881_v29 = vld [vmem:[%s2413_s1 + $0x2d0] sm:$0xff]  }
  0x1f   :  { %v1882_v30 = vld [vmem:[%s2413_s1 + $0x210] sm:$0xff]  }
  0x20   :  { %1644 = vmatpush3.bf16.msra.mxu0 %v1837_v31  ;;  %v1884_v31 = vld [vmem:[%s2413_s1 + $0x258] sm:$0xff]  }
  0x21   :  { %1666 = vmatpush3.bf16.msra.mxu1 %v1838_v32  ;;  %1673 = vmatprep.subr.bf16.mxu0 %v1840_v35  ;;  %v1883_v32 = vld [vmem:[%s2413_s1 + $0x290] sm:$0xff]   ;;  %v1888_v35 = vld [vmem:[%s2413_s1 + $0x260] sm:$0xff]  }
  0x22   :  { %1695 = vmatprep.subr.bf16.mxu1 %v1841_v38  ;;  %v1890_v38 = vld [vmem:[%s2413_s1 + $0x220] sm:$0xff]  }
  0x23   :  { %1198 = vmatmul.mubr.bf16.vlgmr.msra.gmra.mrb[0].mxu0 %v306_v45  ;;  %v17_v45 = vld [vmem:[%s2412_s0 + $0x8] sm:$0xff] }
  0x24   :  { %1674 = vmatpush3.bf16.msra.mxu0 %v1842_v48  ;;  %1238 = vmatmul.mubr.bf16.vlgmr.msra.gmra.mrb[0].mxu1 %v328_v50  ;;  %v339_v47 = vrot.slane %v17_v45, %v2088_v41  ;;  %v332_v48 = vcombine.high %v17_v45, %v17_v45  ;;  %v1898_v50 = vld [vmem:[%s2413_s1 + $0x230] sm:$0xff]  }
  0x25   :  { %1675 = vmatprep.subr.bf16.mxu0 %v1844_v51  ;;  %1696 = vmatpush3.bf16.msra.mxu1 %v1843_v53  ;;  %v1900_v53 = vld [vmem:[%s2413_s1 + $0x278] sm:$0xff]  }
  0x26   :  { %1277 = vmatprep.mubr.bf16.mxu0 %v327_v49  ;;  %1697 = vmatprep.subr.bf16.mxu1 %v1845_v54  ;;  %v1897_v49 = vld [vmem:[%s2413_s1 + $0x2f0] sm:$0xff]   ;;  %v347_v51 = vcombine.high %v339_v47, %v339_v47  ;;  %v2277_v52 = vrot.slane %v332_v48, %v2088_v41 }
  0x27   :  { %1317 = vmatprep.mubr.bf16.mxu1 %v331_v55  ;;  %v1899_v54 = vld [vmem:[%s2413_s1 + $0x2b0] sm:$0xff]  }
  0x28   :  { %1676 = vmatpush3.bf16.msra.mxu0 %v1846_v56  ;;  %v369_v55 = vrot.slane %v347_v51, %v2088_v41  ;;  %v348_v56 = vcombine.high %v2277_v52, %v2277_v52 }
  0x29   :  { %1677 = vmatprep.subr.bf16.mxu0 %v1848_v57  ;;  %1698 = vmatpush3.bf16.msra.mxu1 %v1847_v58  ;;  %v1901_v57 = vld [vmem:[%s2413_s1 + $0x2f8] sm:$0xff]  }
  0x2a   :  { %1699 = vmatprep.subr.bf16.mxu1 %v1849_v59  ;;  %v1902_v58 = vld [vmem:[%s2413_s1 + $0x238] sm:$0xff]   ;;  %v379_v59 = vcombine.high %v369_v55, %v369_v55 }
  0x2c   :  { %1678 = vmatpush3.bf16.msra.mxu0 %v1850_v60  ;;  %v355_v60 = vrot.slane %v339_v47, %v2088_v41 }
  0x2d   :  { %1679 = vmatprep.subr.bf16.mxu0 %v1852_v61  ;;  %1700 = vmatpush3.bf16.msra.mxu1 %v1851_v62  ;;  %v1904_v61 = vld [vmem:[%s2413_s1 + $0x340] sm:$0xff]   ;;  %v1903_v62 = vld [vmem:[%s2413_s1 + $0x2b8] sm:$0xff]  }
  0x2e   :  { %1701 = vmatprep.subr.bf16.mxu1 %v1853_v63  ;;  %v376_v63 = vrot.slane %v348_v56, %v2088_v41 }
  0x30   :  { %1680 = vmatpush3.bf16.msra.mxu0 %v1854_v0  ;;  %v1905_v0 = vld [vmem:[%s2413_s1 + $0x3c0] sm:$0xff]  }
  0x31   :  { %1681 = vmatprep.subr.bf16.mxu0 %v1856_v1  ;;  %1702 = vmatpush3.bf16.msra.mxu1 %v1855_v2  ;;  %v1906_v1 = vld [vmem:[%s2413_s1 + $0x300] sm:$0xff]   ;;  %v377_v2 = vcombine.high %v355_v60, %v355_v60 }
  0x32   :  { %1703 = vmatprep.subr.bf16.mxu1 %v1857_v3  ;;  %v1908_v3 = vld [vmem:[%s2413_s1 + $0x348] sm:$0xff]  }
  0x34   :  { %1682 = vmatpush3.bf16.msra.mxu0 %v1858_v4  ;;  %v1907_v4 = vld [vmem:[%s2413_s1 + $0x380] sm:$0xff]  }
  0x35   :  { %1683 = vmatprep.subr.bf16.mxu0 %v1860_v5  ;;  %1704 = vmatpush3.bf16.msra.mxu1 %v1859_v6  ;;  %v380_v5 = vcombine.high %v376_v63, %v376_v63  ;;  %v1909_v6 = vld [vmem:[%s2413_s1 + $0x3c8] sm:$0xff]  }
  0x36   :  { %1705 = vmatprep.subr.bf16.mxu1 %v1861_v7  ;;  %v1910_v7 = vld [vmem:[%s2413_s1 + $0x308] sm:$0xff]  }
  0x38   :  { %1684 = vmatpush3.bf16.msra.mxu0 %v1862_v8  ;;  %v1912_v8 = vld [vmem:[%s2413_s1 + $0x350] sm:$0xff]  }
  0x39   :  { %1685 = vmatprep.subr.bf16.mxu0 %v1864_v9  ;;  %1706 = vmatpush3.bf16.msra.mxu1 %v1863_v10  ;;  %v1911_v9 = vld [vmem:[%s2413_s1 + $0x388] sm:$0xff]   ;;  %v1913_v10 = vld [vmem:[%s2413_s1 + $0x3d0] sm:$0xff]  }
  0x3a   :  { %1707 = vmatprep.subr.bf16.mxu1 %v1865_v11  ;;  %v1914_v11 = vld [vmem:[%s2413_s1 + $0x310] sm:$0xff]  }
  0x3c   :  { %1686 = vmatpush3.bf16.msra.mxu0 %v1866_v12  ;;  %v1916_v12 = vld [vmem:[%s2413_s1 + $0x358] sm:$0xff]  }
  0x3d   :  { %1687 = vmatprep.subr.bf16.mxu0 %v1868_v13  ;;  %1708 = vmatpush3.bf16.msra.mxu1 %v1867_v14  ;;  %v1915_v13 = vld [vmem:[%s2413_s1 + $0x390] sm:$0xff]   ;;  %v1917_v14 = vld [vmem:[%s2413_s1 + $0x3d8] sm:$0xff]  }
  0x3e   :  { %1709 = vmatprep.subr.bf16.mxu1 %v1869_v15  ;;  %v1918_v15 = vld [vmem:[%s2413_s1 + $0x318] sm:$0xff]  }
  0x40   :  { %1688 = vmatpush3.bf16.msra.mxu0 %v1870_v16  ;;  %v1920_v16 = vld [vmem:[%s2413_s1 + $0x360] sm:$0xff]  }
  0x41   :  { %1717 = vmatprep.subr.bf16.mxu0 %v1872_v18  ;;  %1710 = vmatpush3.bf16.msra.mxu1 %v1871_v19  ;;  %v1921_v18 = vld [vmem:[%s2413_s1 + $0x3e0] sm:$0xff]  }
  0x42   :  { %1739 = vmatprep.subr.bf16.mxu1 %v1873_v20  ;;  %v1922_v19 = vld [vmem:[%s2413_s1 + $0x320] sm:$0xff]   ;;  %v1924_v20 = vld [vmem:[%s2413_s1 + $0x368] sm:$0xff]  }
  0x43   :  { %1278 = vmatmul.mubr.bf16.vlgmr.msra.gmra.mrb[4].mxu0 %v313_v17  ;;  %v1919_v17 = vld [vmem:[%s2413_s1 + $0x398] sm:$0xff]  }
  0x44   :  { %1718 = vmatpush3.bf16.msra.mxu0 %v1874_v21  ;;  %1318 = vmatmul.mubr.bf16.vlgmr.msra.gmra.mrb[4].mxu1 %v329_v22  ;;  %v1923_v21 = vld [vmem:[%s2413_s1 + $0x3a0] sm:$0xff]   ;;  %v1925_v22 = vld [vmem:[%s2413_s1 + $0x3e8] sm:$0xff]  }
  0x45   :  { %1719 = vmatprep.subr.bf16.mxu0 %v1876_v23  ;;  %1740 = vmatpush3.bf16.msra.mxu1 %v1875_v24  ;;  %v1926_v23 = vld [vmem:[%s2413_s1 + $0x328] sm:$0xff]   ;;  %v1928_v24 = vld [vmem:[%s2413_s1 + $0x370] sm:$0xff]  }
  0x46   :  { %1741 = vmatprep.subr.bf16.mxu1 %v1877_v25  ;;  %1357 = vmatprep.mubr.bf16.mxu0 %v369_v55 }
  0x47   :  { %1397 = vmatprep.mubr.bf16.mxu1 %v379_v59 }
  0x48   :  { %1720 = vmatpush3.bf16.msra.mxu0 %v1878_v26 }
  0x49   :  { %1721 = vmatprep.subr.bf16.mxu0 %v1880_v27  ;;  %1742 = vmatpush3.bf16.msra.mxu1 %v1879_v28 }
  0x4a   :  { %1743 = vmatprep.subr.bf16.mxu1 %v1881_v29 }
  0x4c   :  { %1722 = vmatpush3.bf16.msra.mxu0 %v1882_v30 }
  0x4d   :  { %1723 = vmatprep.subr.bf16.mxu0 %v1884_v31  ;;  %1744 = vmatpush3.bf16.msra.mxu1 %v1883_v32 }
  0x4e   :  { %1745 = vmatprep.subr.bf16.mxu1 %v1885_v33 }
  0x50   :  { %1724 = vmatpush3.bf16.msra.mxu0 %v1886_v34 }
  0x51   :  { %1725 = vmatprep.subr.bf16.mxu0 %v1888_v35  ;;  %1746 = vmatpush3.bf16.msra.mxu1 %v1887_v36 }
  0x52   :  { %1747 = vmatprep.subr.bf16.mxu1 %v1889_v37 }
  0x54   :  { %1726 = vmatpush3.bf16.msra.mxu0 %v1890_v38 }
  0x55   :  { %1727 = vmatprep.subr.bf16.mxu0 %v1892_v39  ;;  %1748 = vmatpush3.bf16.msra.mxu1 %v1891_v40 }
  0x56   :  { %1749 = vmatprep.subr.bf16.mxu1 %v1893_v42 }
  0x58   :  { %1728 = vmatpush3.bf16.msra.mxu0 %v1894_v43 }
  0x59   :  { %1729 = vmatprep.subr.bf16.mxu0 %v1896_v44  ;;  %1750 = vmatpush3.bf16.msra.mxu1 %v1895_v46 }
  0x5a   :  { %1751 = vmatprep.subr.bf16.mxu1 %v1897_v49 }
  0x5c   :  { %1730 = vmatpush3.bf16.msra.mxu0 %v1898_v50 }
  0x5d   :  { %1731 = vmatprep.subr.bf16.mxu0 %v1900_v53  ;;  %1752 = vmatpush3.bf16.msra.mxu1 %v1899_v54 }
  0x5e   :  { %1753 = vmatprep.subr.bf16.mxu1 %v1901_v57 }
  0x60   :  { %1732 = vmatpush3.bf16.msra.mxu0 %v1902_v58 }
  0x61   :  { %1761 = vmatprep.subr.bf16.mxu0 %v1904_v61  ;;  %1754 = vmatpush3.bf16.msra.mxu1 %v1903_v62 }
  0x62   :  { %1783 = vmatprep.subr.bf16.mxu1 %v1905_v0 }
  0x63   :  { %1358 = vmatmul.mubr.bf16.vlgmr.msra.gmra.mrb[8].mxu0 %v355_v60 }
  0x64   :  { %1762 = vmatpush3.bf16.msra.mxu0 %v1906_v1  ;;  %1437 = vmatprep.mubr.bf16.mxu0 %v376_v63 }
  0x65   :  { %1398 = vmatmul.mubr.bf16.vlgmr.msra.gmra.mrb[8].mxu1 %v377_v2  ;;  %1763 = vmatprep.subr.bf16.mxu0 %v1908_v3 }
  0x66   :  { %1784 = vmatpush3.bf16.msra.mxu1 %v1907_v4  ;;  %1477 = vmatprep.mubr.bf16.mxu1 %v380_v5 }
  0x67   :  { %1785 = vmatprep.subr.bf16.mxu1 %v1909_v6 }
  0x68   :  { %1764 = vmatpush3.bf16.msra.mxu0 %v1910_v7 }
  0x69   :  { %1765 = vmatprep.subr.bf16.mxu0 %v1912_v8 }
  0x6a   :  { %1786 = vmatpush3.bf16.msra.mxu1 %v1911_v9 }
  0x6b   :  { %1787 = vmatprep.subr.bf16.mxu1 %v1913_v10 }
  0x6c   :  { %1766 = vmatpush3.bf16.msra.mxu0 %v1914_v11 }
  0x6d   :  { %1767 = vmatprep.subr.bf16.mxu0 %v1916_v12 }
  0x6e   :  { %1788 = vmatpush3.bf16.msra.mxu1 %v1915_v13 }
  0x6f   :  { %1789 = vmatprep.subr.bf16.mxu1 %v1917_v14 }
  0x70   :  { %1768 = vmatpush3.bf16.msra.mxu0 %v1918_v15 }
  0x71   :  { %1769 = vmatprep.subr.bf16.mxu0 %v1920_v16 }
  0x72   :  { %1790 = vmatpush3.bf16.msra.mxu1 %v1919_v17 }
  0x73   :  { %1791 = vmatprep.subr.bf16.mxu1 %v1921_v18 }
  0x74   :  { %1770 = vmatpush3.bf16.msra.mxu0 %v1922_v19 }
  0x75   :  { %1771 = vmatprep.subr.bf16.mxu0 %v1924_v20 }
  0x76   :  { %8 = vsyncpa [#allocation3], 0  ;;  %1792 = vmatpush3.bf16.msra.mxu1 %v1923_v21  ;;  %v1927_v25 = vld [vmem:[%s2413_s1 + $0x3a8] sm:$0xff]   ;;  %v1929_v26 = vld [vmem:[%s2413_s1 + $0x3f0] sm:$0xff]   ;;  %v362_v32 = vrot.slane %v2277_v52, %v2088_v41 }
  0x77   :  { %1793 = vmatprep.subr.bf16.mxu1 %v1925_v22  ;;  %v1930_v27 = vld [vmem:[%s2413_s1 + $0x330] sm:$0xff]   ;;  %v1932_v28 = vld [vmem:[%s2413_s1 + $0x378] sm:$0xff]   ;;  %v1500_v36 = vld [vmem:[%s2414_s2] ss:$0 sm:$0xff] }
  0x78   :  { %1772 = vmatpush3.bf16.msra.mxu0 %v1926_v23  ;;  %v1931_v29 = vld [vmem:[%s2413_s1 + $0x3b0] sm:$0xff]   ;;  %v1933_v30 = vld [vmem:[%s2413_s1 + $0x3f8] sm:$0xff]   ;;  %v378_v34 = vcombine.high %v362_v32, %v362_v32 }
  0x79   :  { %1773 = vmatprep.subr.bf16.mxu0 %v1928_v24  ;;  %v1934_v31 = vld [vmem:[%s2413_s1 + $0x338] sm:$0xff]  }
  0x7a   :  { %1794 = vmatpush3.bf16.msra.mxu1 %v1927_v25  ;;  %v1935_v33 = vld [vmem:[%s2413_s1 + $0x3b8] sm:$0xff]   ;;  %s1962_s1 = smov [#allocation2]  }
  0x7b   :  { %1795 = vmatprep.subr.bf16.mxu1 %v1929_v26  ;;  %s1492_s2 = sshll.u32 %s1962_s1, 4  ;;  %s1493_s2 = int_to_ptr.vmem [resolvable:$true] %s1492_s2 }
  0x7c   :  { %1774 = vmatpush3.bf16.msra.mxu0 %v1930_v27  ;;  %s1937_s28 = scalar_lea.vmem %s1493_s2, 32  ;;  %p1942_p1 = scmp.lt.s32.totalorder %s1493_s2, %s1493_s2 }
  0x7d   :  { %1775 = vmatprep.subr.bf16.mxu0 %v1932_v28  ;;  %p1938_p0 = scmp.ne.s32.totalorder %s1493_s2, %s1937_s28  ;;  %p1943_p2 = scmp.lt.s32.totalorder %s1937_s28, %s1937_s28 }
  0x7e   :  { %1796 = vmatpush3.bf16.msra.mxu1 %v1931_v29 }
  0x7f   :  { %1797 = vmatprep.subr.bf16.mxu1 %v1933_v30  ;;  %p1944_p3 = por %p1943_p2, %p1942_p1 }
  0x80   :  { %1776 = vmatpush3.bf16.msra.mxu0 %v1934_v31 }
  0x81   :  { %p1945_p4 = pnand %p1944_p3, %p1938_p0 }
  0x82   :  { %1798 = vmatpush3.bf16.msra.mxu1 %v1935_v33 }
  0x83   :  { %1438 = vmatmul.mubr.bf16.vlgmr.msra.gmra.mrb[12].mxu0 %v362_v32 }
  0x85   :  { %1478 = vmatmul.mubr.bf16.vlgmr.msra.gmra.mrb[12].mxu1 %v378_v34 }
  0xf6   :  { %v1645_v35 = vpop.f32.mrb[0].mxu0 }
  0xf7   :  { %v1646_v37 = vpop.f32.mrb[1].mxu0  ;;  %v1667_v38 = vpop.f32.mrb[0].mxu1 }
  0xf8   :  { %v1647_v39 = vadd.f32 %v1646_v37, %v1645_v35  ;;  %v1648_v41 = vpop.f32.mrb[2].mxu0  ;;  %v1668_v40 = vpop.f32.mrb[1].mxu1 }
  0xf9   :  { %v1649_v42 = vpop.f32.mrb[3].mxu0  ;;  %v1669_v44 = vadd.f32 %v1668_v40, %v1667_v38  ;;  %v1670_v45 = vpop.f32.mrb[2].mxu1 }
  0xfa   :  { %v1200_v43 = vadd.f32 %v1647_v39, %v1500_v36  ;;  %v1671_v46 = vpop.f32.mrb[3].mxu1 }
  0xfc   :  { %v1240_v47 = vadd.f32 %v1669_v44, %v1200_v43 }
 0x116   :  { %v1689_v48 = vpop.f32.mrb[4].mxu0 }
 0x117   :  { %v1690_v49 = vpop.f32.mrb[5].mxu0  ;;  %v1711_v50 = vpop.f32.mrb[4].mxu1 }
 0x118   :  { %v1691_v51 = vadd.f32 %v1690_v49, %v1689_v48  ;;  %v1692_v52 = vpop.f32.mrb[6].mxu0  ;;  %v1712_v53 = vpop.f32.mrb[5].mxu1 }
 0x119   :  { %v1693_v54 = vpop.f32.mrb[7].mxu0  ;;  %v1713_v56 = vadd.f32 %v1712_v53, %v1711_v50  ;;  %v1714_v57 = vpop.f32.mrb[6].mxu1 }
 0x11a   :  { %v1280_v55 = vadd.f32 %v1691_v51, %v1240_v47  ;;  %v1715_v58 = vpop.f32.mrb[7].mxu1 }
 0x11c   :  { %v1320_v59 = vadd.f32 %v1713_v56, %v1280_v55 }
 0x136   :  { %v1733_v60 = vpop.f32.mrb[8].mxu0 }
 0x137   :  { %v1734_v61 = vpop.f32.mrb[9].mxu0 }
 0x138   :  { %v1755_v62 = vpop.f32.mrb[8].mxu1  ;;  %v1735_v63 = vadd.f32 %v1734_v61, %v1733_v60  ;;  %v1736_v0 = vpop.f32.mrb[10].mxu0 }
 0x139   :  { %v1756_v1 = vpop.f32.mrb[9].mxu1  ;;  %v1737_v2 = vpop.f32.mrb[11].mxu0 }
 0x13a   :  { %v1360_v3 = vadd.f32 %v1735_v63, %v1320_v59  ;;  %v1757_v4 = vadd.f32 %v1756_v1, %v1755_v62  ;;  %v1758_v5 = vpop.f32.mrb[10].mxu1 }
 0x13b   :  { %v1759_v6 = vpop.f32.mrb[11].mxu1 }
 0x13c   :  { %v1400_v7 = vadd.f32 %v1757_v4, %v1360_v3 }
 0x156   :  { %v1777_v8 = vpop.f32.mrb[12].mxu0 }
 0x157   :  { %v1778_v9 = vpop.f32.mrb[13].mxu0 }
 0x158   :  { %v1799_v10 = vpop.f32.mrb[12].mxu1  ;;  %v1779_v11 = vadd.f32 %v1778_v9, %v1777_v8  ;;  %v1780_v12 = vpop.f32.mrb[14].mxu0 }
 0x159   :  { %v1800_v13 = vpop.f32.mrb[13].mxu1  ;;  %v1781_v14 = vpop.f32.mrb[15].mxu0 }
 0x15a   :  { %v1440_v15 = vadd.f32 %v1779_v11, %v1400_v7  ;;  %v1801_v16 = vadd.f32 %v1800_v13, %v1799_v10  ;;  %v1802_v17 = vpop.f32.mrb[14].mxu1 }
 0x15b   :  { %v1803_v18 = vpop.f32.mrb[15].mxu1 }
 0x15c   :  { %v1480_v19 = vadd.f32 %v1801_v16, %v1440_v15 }
 0x15e   :  { %1485 = vst [vmem:[#allocation2] sm:$0x3] %v1480_v19 }
 0x15f   :  { %1948 = shalt.err (!%p1945_p4)
}
 0x160   :  { %s1949_s4 = scalar_lea.hbm %s2415_s3, 32 }
 0x161   :  { %p1950_p5 = scmp.ne.s32.totalorder %s2415_s3, %s1949_s4  ;;  %p1953_p6 = scmp.lt.u32.totalorder %s1949_s4, %s2415_s3 }
 0x163   :  { %p1955_p7 = pnand %p1953_p6, %p1950_p5 }
 0x165   :  { %1958 = shalt.err (!%p1955_p7)
}
 0x166   :  { %1495 = dma.vmem_to_hbm [thread:$0]  %s1493_s2, 32, %s2415_s3, [#allocation3]  }
 0x167   :  { %1959 = dma.done.wait [#allocation3], 32  }
 0x168   :  { %1960 = vsyncadd [#allocation3], 4294967264 }
 0x169   :  { %1499 = vsyncpa [#allocation3], 1 }

// kernel: cnn_cifar_forward.2
= control target key start
LH: loop header
LB: loop body
LE: loop exit
PB: predicated region body
PF: predicated region fallthrough
CT: control target
= control target key end

     0   :  { %s10565_s27 = smov 0   ;;  %s12739_s0 = inlined_call_operand.vmem [shape: bf16[2,960,32], index: 0, kind: input, shape index: {}]   ;;  %s12740_s1 = inlined_call_operand.vmem [shape: bf16[32,128], index: 1, kind: input, shape index: {}]   ;;  %s12741_s2 = inlined_call_operand.vmem [shape: f32[1,128], index: 2, kind: input, shape index: {}]   ;;  %s12742_s3 = inlined_call_operand.vmem [shape: bf16[9,128,128], index: 3, kind: input, shape index: {}]   ;;  %s12743_s4 = inlined_call_operand.vmem [shape: f32[1,128], index: 4, kind: input, shape index: {}]   ;;  %s12744_s5 = inlined_call_operand.vmem [shape: bf16[9,128,128], index: 5, kind: input, shape index: {}]   ;;  %s12745_s6 = inlined_call_operand.vmem [shape: f32[1,128], index: 6, kind: input, shape index: {}]   ;;  %s12746_s7 = inlined_call_operand.vmem [shape: bf16[16,112], index: 7, kind: input, shape index: {}]   ;;  %s12747_s8 = inlined_call_operand.vmem [shape: bf16[2,16,128], index: 8, kind: output, shape index: {}]  }
   0x1 LB: > { %s7724_s28 = sadd.s32 4294967295, %s10516_s27   ;;  %p7728_p0 = scmp.ge.s32.totalorder %s10516_s27, 1  ;;  %s10516_s27 = sphi %s10565_s27, %s18_s27  }
   0x2   : > { %p262_p1 = scmp.lt.s32.totalorder %s10516_s27, 3 }
   0x4   : > { %p263_p2 = pnand %p7728_p0, %p262_p1 }
   0x6   : > { %266 = sbr.rel (%p263_p2) target bundleno = 2328 (0x918), region = 52 }
   0xd   : > { %v10289_v0 = vld [vmem:[%s12740_s1] sm:$0xff]   ;;  %p296_p3 = scmp.lt.s32.totalorder %s7724_s28, 1  ;;  %v10290_v1 = vld [vmem:[%s12740_s1 + $0x8] sm:$0xff]   ;;  %vm750_vm0 = vcmask 261120   ;;  %v10351_v33 = vld [vmem:[%s12742_s3 + $0x50] sm:$0xff]   ;;  %vm1684_vm1 = vcmask 1046528  }
   0xe   : > { %8764 = vmatprep.subr.bf16.mxu0 %v10289_v0  ;;  %v10347_v29 = vld [vmem:[%s12742_s3 + $0x40] sm:$0xff]   ;;  %v10348_v32 = vld [vmem:[%s12742_s3 + $0x48] sm:$0xff]   ;;  %v10352_v35 = vld [vmem:[%s12742_s3 + $0x58] sm:$0xff]   ;;  %vm2725_vm2 = vcmask 1045504   ;;  %vm10519_vm3 = vmmov 0   ;;  %vm6241_vm4 = vcmask 1043456  }
   0xf   : > { %s12837_s28 = smov (!%p296_p3, %s7724_s28), 1  ;;  %8765 = vmatpush3.bf16.msra.mxu0 %v10289_v0  ;;  %9878 = vmatprep.subr.bf16.mxu1 %v10347_v29  ;;  %v10355_v37 = vld [vmem:[%s12742_s3 + $0x60] sm:$0xff]   ;;  %v10356_v39 = vld [vmem:[%s12742_s3 + $0x68] sm:$0xff]   ;;  %v10357_v41 = vld [vmem:[%s12742_s3 + $0x70] sm:$0xff]   ;;  %vm7614_vm5 = vcmask 916480  }
  0x10   : > { %8766 = vmatprep.subr.bf16.mxu0 %v10290_v1  ;;  %s10278_s11 = smul.u32 480, %s12837_s28  ;;  %9886 = vmatpush3.bf16.msra.mxu1 %v10347_v29  ;;  %v10358_v44 = vld [vmem:[%s12742_s3 + $0x78] sm:$0xff]   ;;  %s8263_s13 = sshll.u32 %s12837_s28, 3 }
  0x11   : > { %9879 = vmatprep.subr.bf16.mxu1 %v10348_v32  ;;  %s305_s16 = scalar_lea.vmem %s12747_s8, %s8263_s13 }
  0x12   : > { %s10585_s14 = scalar_lea.vmem %s12739_s0, %s10278_s11 }
  0x13   : > { %8767 = vmatpush3.bf16.msra.mxu0 %v10290_v1  ;;  %v10291_v2 = vld [vmem:[%s10585_s14] sm:$0xff]   ;;  %v10292_v3 = vld [vmem:[%s10585_s14 + $0x8] sm:$0xff]   ;;  %v10293_v4 = vld [vmem:[%s10585_s14 + $0x10] sm:$0xff]  }
  0x14   : > { %8768 = vmatprep.mubr.msk.bf16.mxu0 %vm750_vm0, %v10291_v2  ;;  %v10294_v5 = vld [vmem:[%s10585_s14 + $0x18] sm:$0xff]   ;;  %v10295_v6 = vld [vmem:[%s10585_s14 + $0x20] sm:$0xff]   ;;  %v10296_v7 = vld [vmem:[%s10585_s14 + $0x28] sm:$0xff]   ;;  %8888 = vmatprep.subr.bf16.mxu0 %v10347_v29 }
  0x15   : > { %v10297_v8 = vld [vmem:[%s10585_s14 + $0x30] sm:$0xff]   ;;  %v10298_v9 = vld [vmem:[%s10585_s14 + $0x38] sm:$0xff]   ;;  %v10299_v10 = vld [vmem:[%s10585_s14 + $0x40] sm:$0xff]   ;;  %9887 = vmatpush3.bf16.msra.mxu1 %v10348_v32 }
  0x16   : > { %8769 = vmatmul.mubr.msk.bf16.vlgmr.msra.gmra.mrb[0].mxu0 %vm750_vm0, %v10292_v3  ;;  %v10300_v11 = vld [vmem:[%s10585_s14 + $0x48] sm:$0xff]   ;;  %v10301_v12 = vld [vmem:[%s10585_s14 + $0x50] sm:$0xff]   ;;  %v10302_v13 = vld [vmem:[%s10585_s14 + $0x58] sm:$0xff]   ;;  %9880 = vmatprep.subr.bf16.mxu1 %v10351_v33 }
  0x17   : > { %8772 = vmatprep.mubr.msk.bf16.mxu0 %vm750_vm0, %v10293_v4  ;;  %v10303_v14 = vld [vmem:[%s10585_s14 + $0x60] sm:$0xff]   ;;  %v10304_v15 = vld [vmem:[%s10585_s14 + $0x68] sm:$0xff]   ;;  %v10305_v16 = vld [vmem:[%s10585_s14 + $0x70] sm:$0xff]   ;;  %8889 = vmatpush3.bf16.msra.mxu0 %v10347_v29 }
  0x18   : > { %v10306_v17 = vld [vmem:[%s10585_s14 + $0x78] sm:$0xff]   ;;  %v10307_v18 = vld [vmem:[%s10585_s14 + $0x80] sm:$0xff]   ;;  %v10308_v19 = vld [vmem:[%s10585_s14 + $0x88] sm:$0xff]   ;;  %8890 = vmatprep.subr.bf16.mxu0 %v10348_v32 }
  0x19   : > { %v10309_v20 = vld [vmem:[%s10585_s14 + $0x90] sm:$0xff]   ;;  %v10310_v21 = vld [vmem:[%s10585_s14 + $0x98] sm:$0xff]   ;;  %v10311_v22 = vld [vmem:[%s10585_s14 + $0xa0] sm:$0xff]   ;;  %9888 = vmatpush3.bf16.msra.mxu1 %v10351_v33 }
  0x1a   : > { %v10312_v23 = vld [vmem:[%s10585_s14 + $0xa8] sm:$0xff]   ;;  %v10313_v24 = vld [vmem:[%s10585_s14 + $0xb0] sm:$0xff]   ;;  %v10314_v25 = vld [vmem:[%s10585_s14 + $0xb8] sm:$0xff]   ;;  %9881 = vmatprep.subr.bf16.mxu1 %v10352_v35 }
  0x1b   : > { %v10315_v26 = vld [vmem:[%s10585_s14 + $0xc0] sm:$0xff]   ;;  %v10316_v27 = vld [vmem:[%s10585_s14 + $0xc8] sm:$0xff]   ;;  %v10317_v28 = vld [vmem:[%s10585_s14 + $0xd0] sm:$0xff]   ;;  %8891 = vmatpush3.bf16.msra.mxu0 %v10348_v32 }
  0x1c   : > { %v10318_v30 = vld [vmem:[%s10585_s14 + $0xd8] sm:$0xff]   ;;  %v10319_v31 = vld [vmem:[%s10585_s14 + $0xe0] sm:$0xff]   ;;  %8892 = vmatprep.subr.bf16.mxu0 %v10351_v33  ;;  %v10320_v34 = vld [vmem:[%s10585_s14 + $0xe8] sm:$0xff]  }
  0x1d   : > { %v10321_v36 = vld [vmem:[%s10585_s14 + $0xf0] sm:$0xff]   ;;  %9889 = vmatpush3.bf16.msra.mxu1 %v10352_v35  ;;  %v10322_v38 = vld [vmem:[%s10585_s14 + $0xf8] sm:$0xff]   ;;  %v10323_v40 = vld [vmem:[%s10585_s14 + $0x100] sm:$0xff]  }
  0x1e   : > { %8773 = vmatmul.mubr.msk.bf16.gmra.mrb[4].mxu0 %vm750_vm0, %v10294_v5  ;;  %9882 = vmatprep.subr.bf16.mxu1 %v10355_v37  ;;  %v10324_v42 = vld [vmem:[%s10585_s14 + $0x108] sm:$0xff]   ;;  %v10325_v43 = vld [vmem:[%s10585_s14 + $0x110] sm:$0xff]   ;;  %v10326_v45 = vld [vmem:[%s10585_s14 + $0x118] sm:$0xff]  }
  0x1f   : > { %8776 = vmatprep.mubr.msk.bf16.mxu0 %vm750_vm0, %v10295_v6  ;;  %8893 = vmatpush3.bf16.msra.mxu0 %v10351_v33  ;;  %v10327_v46 = vld [vmem:[%s10585_s14 + $0x120] sm:$0xff]   ;;  %v10328_v47 = vld [vmem:[%s10585_s14 + $0x128] sm:$0xff]   ;;  %v10329_v48 = vld [vmem:[%s10585_s14 + $0x130] sm:$0xff]  }
  0x20   : > { %8894 = vmatprep.subr.bf16.mxu0 %v10352_v35  ;;  %v10330_v49 = vld [vmem:[%s10585_s14 + $0x138] sm:$0xff]   ;;  %v10331_v50 = vld [vmem:[%s10585_s14 + $0x140] sm:$0xff]   ;;  %v10332_v51 = vld [vmem:[%s10585_s14 + $0x148] sm:$0xff]  }
  0x21   : > { %9890 = vmatpush3.bf16.msra.mxu1 %v10355_v37  ;;  %v10333_v52 = vld [vmem:[%s10585_s14 + $0x150] sm:$0xff]   ;;  %v10334_v53 = vld [vmem:[%s10585_s14 + $0x158] sm:$0xff]   ;;  %v10335_v54 = vld [vmem:[%s10585_s14 + $0x160] sm:$0xff]  }
  0x22   : > { %9883 = vmatprep.subr.bf16.mxu1 %v10356_v39  ;;  %v10336_v55 = vld [vmem:[%s10585_s14 + $0x168] sm:$0xff]   ;;  %v10337_v56 = vld [vmem:[%s10585_s14 + $0x170] sm:$0xff]   ;;  %v10338_v57 = vld [vmem:[%s10585_s14 + $0x178] sm:$0xff]  }
  0x23   : > { %8895 = vmatpush3.bf16.msra.mxu0 %v10352_v35  ;;  %v10339_v58 = vld [vmem:[%s10585_s14 + $0x180] sm:$0xff]   ;;  %v10340_v59 = vld [vmem:[%s10585_s14 + $0x188] sm:$0xff]   ;;  %v10341_v60 = vld [vmem:[%s10585_s14 + $0x190] sm:$0xff]  }
  0x24   : > { %8896 = vmatprep.subr.bf16.mxu0 %v10355_v37  ;;  %v10342_v61 = vld [vmem:[%s10585_s14 + $0x198] sm:$0xff]   ;;  %v10343_v62 = vld [vmem:[%s10585_s14 + $0x1a0] sm:$0xff]   ;;  %v10344_v63 = vld [vmem:[%s10585_s14 + $0x1a8] sm:$0xff]  }
  0x25   : > { %9891 = vmatpush3.bf16.msra.mxu1 %v10356_v39  ;;  %v10345_v0 = vld [vmem:[%s10585_s14 + $0x1b0] sm:$0xff]   ;;  %v10346_v3 = vld [vmem:[%s10585_s14 + $0x1b8] sm:$0xff]   ;;  %v10349_v5 = vld [vmem:[%s10585_s14 + $0x1c0] sm:$0xff]  }
  0x26   : > { %8777 = vmatmul.mubr.msk.bf16.gmra.mrb[8].mxu0 %vm750_vm0, %v10296_v7  ;;  %9884 = vmatprep.subr.bf16.mxu1 %v10357_v41  ;;  %v10726_v7 = vld [vmem:[%s12741_s2] ss:$0 sm:$0xff] }
  0x27   : > { %8780 = vmatprep.mubr.msk.bf16.mxu0 %vm750_vm0, %v10297_v8  ;;  %8897 = vmatpush3.bf16.msra.mxu0 %v10355_v37 }
  0x28   : > { %8898 = vmatprep.subr.bf16.mxu0 %v10356_v39 }
  0x29   : > { %9892 = vmatpush3.bf16.msra.mxu1 %v10357_v41 }
  0x2a   : > { %9885 = vmatprep.subr.bf16.mxu1 %v10358_v44 }
  0x2b   : > { %8899 = vmatpush3.bf16.msra.mxu0 %v10356_v39  ;;  %v10354_v39 = vld [vmem:[%s10585_s14 + $0x1d8] sm:$0xff]  }
  0x2c   : > { %8900 = vmatprep.subr.bf16.mxu0 %v10357_v41 }
  0x2d   : > { %9893 = vmatpush3.bf16.msra.mxu1 %v10358_v44 }
  0x2e   : > { %8781 = vmatmul.mubr.msk.bf16.gmra.mrb[12].mxu0 %vm750_vm0, %v10298_v9 }
  0x2f   : > { %8784 = vmatprep.mubr.msk.bf16.mxu0 %vm750_vm0, %v10299_v10  ;;  %8901 = vmatpush3.bf16.msra.mxu0 %v10357_v41 }
  0x30   : > { %8902 = vmatprep.subr.bf16.mxu0 %v10358_v44 }
  0x33   : > { %8903 = vmatpush3.bf16.msra.mxu0 %v10358_v44 }
  0x36   : > { %8785 = vmatmul.mubr.msk.bf16.gmra.mrb[16].mxu0 %vm750_vm0, %v10300_v11 }
  0x37   : > { %8788 = vmatprep.mubr.msk.bf16.mxu0 %vm750_vm0, %v10301_v12 }
  0x3e   : > { %8789 = vmatmul.mubr.msk.bf16.gmra.mrb[20].mxu0 %vm750_vm0, %v10302_v13 }
  0x3f   : > { %8792 = vmatprep.mubr.msk.bf16.mxu0 %vm750_vm0, %v10303_v14  ;;  %v10350_v14 = vld [vmem:[%s10585_s14 + $0x1c8] sm:$0xff]  }
  0x46   : > { %8793 = vmatmul.mubr.msk.bf16.gmra.mrb[24].mxu0 %vm750_vm0, %v10304_v15 }
  0x47   : > { %8796 = vmatprep.mubr.msk.bf16.mxu0 %vm750_vm0, %v10305_v16 }
  0x4e   : > { %8797 = vmatmul.mubr.msk.bf16.gmra.mrb[28].mxu0 %vm750_vm0, %v10306_v17 }
  0x4f   : > { %8800 = vmatprep.mubr.msk.bf16.mxu0 %vm750_vm0, %v10307_v18  ;;  %v10353_v18 = vld [vmem:[%s10585_s14 + $0x1d0] sm:$0xff]  }
  0x56   : > { %8801 = vmatmul.mubr.msk.bf16.gmra.mrb[32].mxu0 %vm750_vm0, %v10308_v19 }
  0x57   : > { %8804 = vmatprep.mubr.msk.bf16.mxu0 %vm750_vm0, %v10309_v20 }
  0x5e   : > { %8805 = vmatmul.mubr.msk.bf16.gmra.mrb[36].mxu0 %vm750_vm0, %v10310_v21 }
  0x5f   : > { %8808 = vmatprep.mubr.msk.bf16.mxu0 %vm750_vm0, %v10311_v22 }
  0x66   : > { %8809 = vmatmul.mubr.msk.bf16.gmra.mrb[40].mxu0 %vm750_vm0, %v10312_v23 }
  0x67   : > { %8812 = vmatprep.mubr.msk.bf16.mxu0 %vm750_vm0, %v10313_v24 }
  0x6e   : > { %8813 = vmatmul.mubr.msk.bf16.gmra.mrb[44].mxu0 %vm750_vm0, %v10314_v25 }
  0x6f   : > { %8816 = vmatprep.mubr.msk.bf16.mxu0 %vm750_vm0, %v10315_v26 }
  0x76   : > { %8817 = vmatmul.mubr.msk.bf16.gmra.mrb[48].mxu0 %vm750_vm0, %v10316_v27 }
  0x77   : > { %8820 = vmatprep.mubr.msk.bf16.mxu0 %vm750_vm0, %v10317_v28 }
  0x7e   : > { %8821 = vmatmul.mubr.msk.bf16.gmra.mrb[52].mxu0 %vm750_vm0, %v10318_v30 }
  0x7f   : > { %8824 = vmatprep.mubr.msk.bf16.mxu0 %vm750_vm0, %v10319_v31 }
  0x86   : > { %8825 = vmatmul.mubr.msk.bf16.gmra.mrb[56].mxu0 %vm750_vm0, %v10320_v34 }
  0x87   : > { %8828 = vmatprep.mubr.msk.bf16.mxu0 %vm750_vm0, %v10321_v36 }
  0x8e   : > { %8829 = vmatmul.mubr.msk.bf16.gmra.mrb[60].mxu0 %vm750_vm0, %v10322_v38 }
  0x8f   : > { %8832 = vmatprep.mubr.msk.bf16.mxu0 %vm750_vm0, %v10323_v40 }
  0x96   : > { %8833 = vmatmul.mubr.msk.bf16.gmra.mrb[64].mxu0 %vm750_vm0, %v10324_v42 }
  0x97   : > { %8836 = vmatprep.mubr.msk.bf16.mxu0 %vm750_vm0, %v10325_v43 }
  0x9e   : > { %8837 = vmatmul.mubr.msk.bf16.gmra.mrb[68].mxu0 %vm750_vm0, %v10326_v45 }
  0x9f   : > { %8840 = vmatprep.mubr.msk.bf16.mxu0 %vm750_vm0, %v10327_v46 }
  0xa6   : > { %8841 = vmatmul.mubr.msk.bf16.gmra.mrb[72].mxu0 %vm750_vm0, %v10328_v47 }
  0xa7   : > { %8844 = vmatprep.mubr.msk.bf16.mxu0 %vm750_vm0, %v10329_v48 }
  0xae   : > { %8845 = vmatmul.mubr.msk.bf16.gmra.mrb[76].mxu0 %vm750_vm0, %v10330_v49 }
  0xaf   : > { %8848 = vmatprep.mubr.msk.bf16.mxu0 %vm750_vm0, %v10331_v50 }
  0xb6   : > { %8849 = vmatmul.mubr.msk.bf16.gmra.mrb[80].mxu0 %vm750_vm0, %v10332_v51 }
  0xb7   : > { %8852 = vmatprep.mubr.msk.bf16.mxu0 %vm750_vm0, %v10333_v52 }
  0xbe   : > { %8853 = vmatmul.mubr.msk.bf16.gmra.mrb[84].mxu0 %vm750_vm0, %v10334_v53 }
  0xbf   : > { %8856 = vmatprep.mubr.msk.bf16.mxu0 %vm750_vm0, %v10335_v54 }
  0xc6   : > { %8857 = vmatmul.mubr.msk.bf16.gmra.mrb[88].mxu0 %vm750_vm0, %v10336_v55 }
  0xc7   : > { %8860 = vmatprep.mubr.msk.bf16.mxu0 %vm750_vm0, %v10337_v56 }
  0xce   : > { %8861 = vmatmul.mubr.msk.bf16.gmra.mrb[92].mxu0 %vm750_vm0, %v10338_v57 }
  0xcf   : > { %8864 = vmatprep.mubr.msk.bf16.mxu0 %vm750_vm0, %v10339_v58 }
  0xd6   : > { %8865 = vmatmul.mubr.msk.bf16.gmra.mrb[96].mxu0 %vm750_vm0, %v10340_v59 }
  0xd7   : > { %8868 = vmatprep.mubr.msk.bf16.mxu0 %vm750_vm0, %v10341_v60 }
  0xde   : > { %8869 = vmatmul.mubr.msk.bf16.gmra.mrb[100].mxu0 %vm750_vm0, %v10342_v61 }
  0xdf   : > { %8872 = vmatprep.mubr.msk.bf16.mxu0 %vm750_vm0, %v10343_v62 }
  0xe6   : > { %8873 = vmatmul.mubr.msk.bf16.gmra.mrb[104].mxu0 %vm750_vm0, %v10344_v63 }
  0xe7   : > { %8876 = vmatprep.mubr.msk.bf16.mxu0 %vm750_vm0, %v10345_v0 }
  0xe9   : > { %v8770_v1 = vpop.f32.mrb[0].mxu0 }
  0xea   : > { %v965_v2 = vpop.f32.mrb[1].mxu0  ;;  %v974_v8 = vadd.f32 %v8770_v1, %v10726_v7 }
  0xeb   : > { %v8771_v4 = vpop.f32.mrb[2].mxu0  ;;  %v966_v9 = vadd.f32 %v10726_v7, %v965_v2 }
  0xec   : > { %v968_v6 = vpop.f32.mrb[3].mxu0  ;;  %v977_v11 = vadd.f32 %v8771_v4, %v10726_v7  ;;  %v1446_v19 = vmax.f32 %v974_v8, 0.0 }
  0xed   : > { %v969_v15 = vadd.f32 %v10726_v7, %v968_v6  ;;  %v1444_v23 = vmax.f32 %v966_v9, 0.0 }
  0xee   : > { %8877 = vmatmul.mubr.msk.bf16.gmra.mrb[108].mxu0 %vm750_vm0, %v10346_v3  ;;  %v1447_v26 = vmax.f32 %v977_v11, 0.0 }
  0xef   : > { %8880 = vmatprep.mubr.msk.bf16.mxu0 %vm750_vm0, %v10349_v5  ;;  %v1445_v29 = vmax.f32 %v969_v15, 0.0 }
  0xf1   : > { %v8774_v10 = vpop.f32.mrb[4].mxu0 }
  0xf2   : > { %v990_v12 = vadd.f32 %v8774_v10, %v10726_v7  ;;  %v981_v13 = vpop.f32.mrb[5].mxu0 }
  0xf3   : > { %v982_v16 = vadd.f32 %v10726_v7, %v981_v13  ;;  %v8775_v17 = vpop.f32.mrb[6].mxu0 }
  0xf4   : > { %v1450_v20 = vmax.f32 %v990_v12, 0.0  ;;  %v993_v21 = vadd.f32 %v8775_v17, %v10726_v7  ;;  %v984_v22 = vpop.f32.mrb[7].mxu0 }
  0xf5   : > { %v1448_v24 = vmax.f32 %v982_v16, 0.0  ;;  %v985_v25 = vadd.f32 %v10726_v7, %v984_v22 }
  0xf6   : > { %v1566_v27 = vmax.f32 %v1446_v19, %v1450_v20  ;;  %v1451_v28 = vmax.f32 %v993_v21, 0.0  ;;  %8881 = vmatmul.mubr.msk.bf16.gmra.mrb[112].mxu0 %vm750_vm0, %v10350_v14 }
  0xf7   : > { %v1564_v30 = vmax.f32 %v1444_v23, %v1448_v24  ;;  %v1449_v31 = vmax.f32 %v985_v25, 0.0  ;;  %8884 = vmatprep.mubr.msk.bf16.mxu0 %vm750_vm0, %v10353_v18 }
  0xf8   : > { %v1567_v32 = vmax.f32 %v1447_v26, %v1451_v28  ;;  %v1688_v36 = vrot.slane %v1566_v27, 1 }
  0xf9   : > { %v1685_v33 = vrot.slane %v1564_v30, 1  ;;  %v1565_v34 = vmax.f32 %v1445_v29, %v1449_v31  ;;  %v8778_v35 = vpop.f32.mrb[8].mxu0 }
  0xfa   : > { %v1690_v37 = vrot.slane %v1567_v32, 1  ;;  %v997_v38 = vpop.f32.mrb[9].mxu0  ;;  %v1006_v53 = vadd.f32 %v8778_v35, %v10726_v7 }
  0xfb   : > { %v1686_v40 = vrot.slane %v1565_v34, 1  ;;  %v8779_v41 = vpop.f32.mrb[10].mxu0  ;;  %v998_v54 = vadd.f32 %v10726_v7, %v997_v38 }
  0xfc   : > { %v1691_v42 = vsel %vm1684_vm1, %v1688_v36, %v1690_v37  ;;  %v1865_v43 = vsel %vm1684_vm1, %v1690_v37, %v1685_v33  ;;  %v1000_v44 = vpop.f32.mrb[11].mxu0  ;;  %v1009_v56 = vadd.f32 %v8779_v41, %v10726_v7  ;;  %v1454_v62 = vmax.f32 %v1006_v53, 0.0 }
  0xfd   : > { %v1882_v45 = vmax.f32 %v1566_v27, %v1691_v42  ;;  %v1883_v46 = vmax.f32 %v1567_v32, %v1865_v43  ;;  %v1687_v47 = vsel %vm1684_vm1, %v1685_v33, %v1686_v40  ;;  %v1689_v48 = vsel %vm1684_vm1, %v1686_v40, %v1688_v36 }
  0xfe   : > { %v1880_v49 = vmax.f32 %v1564_v30, %v1687_v47  ;;  %v1881_v50 = vmax.f32 %v1565_v34, %v1689_v48  ;;  %8885 = vmatmul.mubr.msk.bf16.gmra.mrb[116].mxu0 %vm750_vm0, %v10354_v39  ;;  %v1001_v59 = vadd.f32 %v10726_v7, %v1000_v44  ;;  %v1452_v2 = vmax.f32 %v998_v54, 0.0 }
  0xff   : > { %v10748_v51 = vpack.c.bf16 %v1883_v46, %v1882_v45  ;;  %v1455_v5 = vmax.f32 %v1009_v56, 0.0 }
 0x100   : > { %v1940_v52 = vpack.c.bf16 %v1881_v50, %v1880_v49  ;;  %v1453_v9 = vmax.f32 %v1001_v59, 0.0 }
 0x101   : > { %1971 = vst [vmem:[#allocation2 + $0x8] sm:$0xff] %v10748_v51  ;;  %v8782_v55 = vpop.f32.mrb[12].mxu0  ;;  %v2086_v26 = vrot.slane %v10748_v51, 1 }
 0x102   : > { %1970 = vst [vmem:[#allocation2] sm:$0xff] %v1940_v52  ;;  %v1022_v57 = vadd.f32 %v8782_v55, %v10726_v7  ;;  %v1013_v58 = vpop.f32.mrb[13].mxu0 }
 0x103   : > { %v1014_v60 = vadd.f32 %v10726_v7, %v1013_v58  ;;  %v8783_v61 = vpop.f32.mrb[14].mxu0 }
 0x104   : > { %v1458_v63 = vmax.f32 %v1022_v57, 0.0  ;;  %v1025_v0 = vadd.f32 %v8783_v61, %v10726_v7  ;;  %v1016_v1 = vpop.f32.mrb[15].mxu0 }
 0x105   : > { %v1456_v3 = vmax.f32 %v1014_v60, 0.0  ;;  %v1017_v4 = vadd.f32 %v10726_v7, %v1016_v1 }
 0x106   : > { %v1570_v6 = vmax.f32 %v1454_v62, %v1458_v63  ;;  %v1459_v8 = vmax.f32 %v1025_v0, 0.0 }
 0x107   : > { %v1568_v10 = vmax.f32 %v1452_v2, %v1456_v3  ;;  %v1457_v11 = vmax.f32 %v1017_v4, 0.0 }
 0x108   : > { %v1571_v12 = vmax.f32 %v1455_v5, %v1459_v8  ;;  %v1695_v17 = vrot.slane %v1570_v6, 1 }
 0x109   : > { %v1692_v13 = vrot.slane %v1568_v10, 1  ;;  %v1569_v14 = vmax.f32 %v1453_v9, %v1457_v11  ;;  %v8786_v15 = vpop.f32.mrb[16].mxu0  ;;  %v2040_v16 = vld [vmem:[#allocation2] sm:$0xfe] }
 0x10a   : > { %v1697_v18 = vrot.slane %v1571_v12, 1  ;;  %v1029_v19 = vpop.f32.mrb[17].mxu0  ;;  %v2085_v22 = vrot.slane %v2040_v16, 1  ;;  %v1038_v34 = vadd.f32 %v8786_v15, %v10726_v7 }
 0x10b   : > { %v1693_v20 = vrot.slane %v1569_v14, 1  ;;  %v8787_v21 = vpop.f32.mrb[18].mxu0  ;;  %v1030_v37 = vadd.f32 %v10726_v7, %v1029_v19 }
 0x10c   : > { %v1698_v23 = vsel %vm1684_vm1, %v1695_v17, %v1697_v18  ;;  %v1866_v24 = vsel %vm1684_vm1, %v1697_v18, %v1692_v13  ;;  %v1032_v25 = vpop.f32.mrb[19].mxu0  ;;  %v2087_v35 = vsel %vm1684_vm1, %v2085_v22, %v2086_v26  ;;  %v1041_v40 = vadd.f32 %v8787_v21, %v10726_v7 }
 0x10d   : > { %v1886_v27 = vmax.f32 %v1570_v6, %v1698_v23  ;;  %v1887_v28 = vmax.f32 %v1571_v12, %v1866_v24  ;;  %v1694_v29 = vsel %vm1684_vm1, %v1692_v13, %v1693_v20  ;;  %v1696_v30 = vsel %vm1684_vm1, %v1693_v20, %v1695_v17  ;;  %8904 = vmatprep.mubr.bf16.mxu0 %v2087_v35 }
 0x10e   : > { %v1884_v31 = vmax.f32 %v1568_v10, %v1694_v29  ;;  %v1885_v32 = vmax.f32 %v1569_v14, %v1696_v30  ;;  %v1462_v44 = vmax.f32 %v1038_v34, 0.0  ;;  %v1033_v45 = vadd.f32 %v10726_v7, %v1032_v25 }
 0x10f   : > { %v10764_v33 = vpack.c.bf16 %v1887_v28, %v1886_v27  ;;  %v1460_v53 = vmax.f32 %v1030_v37, 0.0  ;;  %v1463_v56 = vmax.f32 %v1041_v40, 0.0 }
 0x110   : > { %v1942_v36 = vpack.c.bf16 %v1885_v32, %v1884_v31  ;;  %v1461_v59 = vmax.f32 %v1033_v45, 0.0 }
 0x111   : > { %1973 = vst [vmem:[#allocation2 + $0x18] sm:$0xff] %v10764_v33  ;;  %v8790_v38 = vpop.f32.mrb[20].mxu0  ;;  %v2090_v39 = vrot.slane %v10764_v33, 1 }
 0x112   : > { %1972 = vst [vmem:[#allocation2 + $0x10] sm:$0xff] %v1942_v36  ;;  %v1054_v41 = vadd.f32 %v8790_v38, %v10726_v7  ;;  %v1045_v42 = vpop.f32.mrb[21].mxu0  ;;  %v2088_v43 = vrot.slane %v1942_v36, 1 }
 0x113   : > { %v1046_v46 = vadd.f32 %v10726_v7, %v1045_v42  ;;  %v8791_v47 = vpop.f32.mrb[22].mxu0 }
 0x114   : > { %v1466_v48 = vmax.f32 %v1054_v41, 0.0  ;;  %v1057_v49 = vadd.f32 %v8791_v47, %v10726_v7  ;;  %v1048_v50 = vpop.f32.mrb[23].mxu0  ;;  %v2089_v51 = vsel %vm1684_vm1, %v2086_v26, %v2088_v43  ;;  %v2091_v52 = vsel %vm1684_vm1, %v2088_v43, %v2090_v39 }
 0x115   : > { %v1464_v54 = vmax.f32 %v1046_v46, 0.0  ;;  %v1049_v55 = vadd.f32 %v10726_v7, %v1048_v50  ;;  %8905 = vmatmul.mubr.bf16.vlgmr.msra.gmra.mrb[120].mxu0 %v2089_v51 }
 0x116   : > { %v1574_v57 = vmax.f32 %v1462_v44, %v1466_v48  ;;  %v1467_v58 = vmax.f32 %v1057_v49, 0.0  ;;  %8908 = vmatprep.mubr.bf16.mxu0 %v2091_v52 }
 0x117   : > { %v1572_v60 = vmax.f32 %v1460_v53, %v1464_v54  ;;  %v1465_v61 = vmax.f32 %v1049_v55, 0.0 }
 0x118   : > { %v1575_v62 = vmax.f32 %v1463_v56, %v1467_v58  ;;  %v1702_v2 = vrot.slane %v1574_v57, 1 }
 0x119   : > { %v1699_v63 = vrot.slane %v1572_v60, 1  ;;  %v1573_v0 = vmax.f32 %v1461_v59, %v1465_v61  ;;  %v8794_v1 = vpop.f32.mrb[24].mxu0 }
 0x11a   : > { %v1704_v3 = vrot.slane %v1575_v62, 1  ;;  %v1061_v4 = vpop.f32.mrb[25].mxu0  ;;  %v1070_v18 = vadd.f32 %v8794_v1, %v10726_v7 }
 0x11b   : > { %v1700_v5 = vrot.slane %v1573_v0, 1  ;;  %v8795_v6 = vpop.f32.mrb[26].mxu0  ;;  %v1062_v20 = vadd.f32 %v10726_v7, %v1061_v4 }
 0x11c   : > { %v1705_v8 = vsel %vm1684_vm1, %v1702_v2, %v1704_v3  ;;  %v1867_v9 = vsel %vm1684_vm1, %v1704_v3, %v1699_v63  ;;  %v1064_v10 = vpop.f32.mrb[27].mxu0  ;;  %v1073_v23 = vadd.f32 %v8795_v6, %v10726_v7  ;;  %v1470_v27 = vmax.f32 %v1070_v18, 0.0 }
 0x11d   : > { %v1890_v11 = vmax.f32 %v1574_v57, %v1705_v8  ;;  %v1891_v12 = vmax.f32 %v1575_v62, %v1867_v9  ;;  %v1701_v13 = vsel %vm1684_vm1, %v1699_v63, %v1700_v5  ;;  %v1703_v14 = vsel %vm1684_vm1, %v1700_v5, %v1702_v2 }
 0x11e   : > { %v1888_v15 = vmax.f32 %v1572_v60, %v1701_v13  ;;  %v1889_v16 = vmax.f32 %v1573_v0, %v1703_v14  ;;  %v1065_v28 = vadd.f32 %v10726_v7, %v1064_v10  ;;  %v1468_v37 = vmax.f32 %v1062_v20, 0.0 }
 0x11f   : > { %v10785_v17 = vpack.c.bf16 %v1891_v12, %v1890_v11  ;;  %v1471_v41 = vmax.f32 %v1073_v23, 0.0 }
 0x120   : > { %v1944_v19 = vpack.c.bf16 %v1889_v16, %v1888_v15  ;;  %v1469_v44 = vmax.f32 %v1065_v28, 0.0 }
 0x121   : > { %1975 = vst [vmem:[#allocation2 + $0x28] sm:$0xff] %v10785_v17  ;;  %v8798_v21 = vpop.f32.mrb[28].mxu0  ;;  %v2094_v22 = vrot.slane %v10785_v17, 1 }
 0x122   : > { %1974 = vst [vmem:[#allocation2 + $0x20] sm:$0xff] %v1944_v19  ;;  %v1086_v24 = vadd.f32 %v8798_v21, %v10726_v7  ;;  %v1077_v25 = vpop.f32.mrb[29].mxu0  ;;  %v2092_v26 = vrot.slane %v1944_v19, 1 }
 0x123   : > { %v1078_v29 = vadd.f32 %v10726_v7, %v1077_v25  ;;  %v8799_v30 = vpop.f32.mrb[30].mxu0 }
 0x124   : > { %v1474_v31 = vmax.f32 %v1086_v24, 0.0  ;;  %v1089_v32 = vadd.f32 %v8799_v30, %v10726_v7  ;;  %v1080_v34 = vpop.f32.mrb[31].mxu0  ;;  %v2093_v35 = vsel %vm1684_vm1, %v2090_v39, %v2092_v26  ;;  %v2095_v36 = vsel %vm1684_vm1, %v2092_v26, %v2094_v22 }
 0x125   : > { %v1472_v38 = vmax.f32 %v1078_v29, 0.0  ;;  %v1081_v40 = vadd.f32 %v10726_v7, %v1080_v34  ;;  %8909 = vmatmul.mubr.bf16.gmra.mrb[124].mxu0 %v2093_v35 }
 0x126   : > { %v1578_v42 = vmax.f32 %v1470_v27, %v1474_v31  ;;  %v1475_v43 = vmax.f32 %v1089_v32, 0.0  ;;  %8912 = vmatprep.mubr.bf16.mxu0 %v2095_v36  ;;  %v10828_v27 = vld [vmem:[%s12742_s3] sm:$0xff]  }
 0x127   : > { %v1576_v45 = vmax.f32 %v1468_v37, %v1472_v38  ;;  %v1473_v46 = vmax.f32 %v1081_v40, 0.0  ;;  %8952 = vmatprep.subr.bf16.mxu1 %v10828_v27 }
 0x128   : > { %v1579_v47 = vmax.f32 %v1471_v41, %v1475_v43  ;;  %v1709_v49 = vrot.slane %v1578_v42, 1 }
 0x129   : > { %v1706_v33 = vrot.slane %v1576_v45, 1  ;;  %v1577_v48 = vmax.f32 %v1469_v44, %v1473_v46  ;;  %v8802_v39 = vpop.f32.mrb[32].mxu0 }
 0x12a   : > { %v1711_v50 = vrot.slane %v1579_v47, 1  ;;  %v1093_v51 = vpop.f32.mrb[33].mxu0  ;;  %v1102_v0 = vadd.f32 %v8802_v39, %v10726_v7 }
 0x12b   : > { %v1707_v52 = vrot.slane %v1577_v48, 1  ;;  %v8803_v53 = vpop.f32.mrb[34].mxu0  ;;  %v1094_v2 = vadd.f32 %v10726_v7, %v1093_v51 }
 0x12c   : > { %v1712_v54 = vsel %vm1684_vm1, %v1709_v49, %v1711_v50  ;;  %v1868_v55 = vsel %vm1684_vm1, %v1711_v50, %v1706_v33  ;;  %v1096_v56 = vpop.f32.mrb[35].mxu0  ;;  %v1105_v5 = vadd.f32 %v8803_v53, %v10726_v7  ;;  %v1478_v10 = vmax.f32 %v1102_v0, 0.0 }
 0x12d   : > { %v1894_v57 = vmax.f32 %v1578_v42, %v1712_v54  ;;  %v1895_v58 = vmax.f32 %v1579_v47, %v1868_v55  ;;  %v1708_v59 = vsel %vm1684_vm1, %v1706_v33, %v1707_v52  ;;  %v1710_v60 = vsel %vm1684_vm1, %v1707_v52, %v1709_v49 }
 0x12e   : > { %v1892_v61 = vmax.f32 %v1576_v45, %v1708_v59  ;;  %v1893_v62 = vmax.f32 %v1577_v48, %v1710_v60  ;;  %v1097_v11 = vadd.f32 %v10726_v7, %v1096_v56  ;;  %v1476_v20 = vmax.f32 %v1094_v2, 0.0 }
 0x12f   : > { %v10807_v63 = vpack.c.bf16 %v1895_v58, %v1894_v57  ;;  %v1479_v24 = vmax.f32 %v1105_v5, 0.0 }
 0x130   : > { %v1946_v1 = vpack.c.bf16 %v1893_v62, %v1892_v61  ;;  %v1477_v17 = vmax.f32 %v1097_v11, 0.0 }
 0x131   : > { %1977 = vst [vmem:[#allocation2 + $0x38] sm:$0xff] %v10807_v63  ;;  %v8806_v3 = vpop.f32.mrb[36].mxu0  ;;  %v2098_v4 = vrot.slane %v10807_v63, 1 }
 0x132   : > { %1976 = vst [vmem:[#allocation2 + $0x30] sm:$0xff] %v1946_v1  ;;  %v1118_v6 = vadd.f32 %v8806_v3, %v10726_v7  ;;  %v1109_v8 = vpop.f32.mrb[37].mxu0  ;;  %v2096_v9 = vrot.slane %v1946_v1, 1 }
 0x133   : > { %v1110_v12 = vadd.f32 %v10726_v7, %v1109_v8  ;;  %v8807_v13 = vpop.f32.mrb[38].mxu0 }
 0x134   : > { %v1482_v14 = vmax.f32 %v1118_v6, 0.0  ;;  %v1121_v15 = vadd.f32 %v8807_v13, %v10726_v7  ;;  %v1112_v16 = vpop.f32.mrb[39].mxu0  ;;  %v2097_v18 = vsel %vm1684_vm1, %v2094_v22, %v2096_v9  ;;  %v2099_v19 = vsel %vm1684_vm1, %v2096_v9, %v2098_v4 }
 0x135   : > { %v1480_v21 = vmax.f32 %v1110_v12, 0.0  ;;  %v1113_v23 = vadd.f32 %v10726_v7, %v1112_v16  ;;  %8913 = vmatmul.mubr.bf16.gmra.mrb[128].mxu0 %v2097_v18 }
 0x136   : > { %v1582_v25 = vmax.f32 %v1478_v10, %v1482_v14  ;;  %v1483_v26 = vmax.f32 %v1121_v15, 0.0  ;;  %8916 = vmatprep.mubr.bf16.mxu0 %v2099_v19 }
 0x137   : > { %v1580_v22 = vmax.f32 %v1476_v20, %v1480_v21  ;;  %v1481_v28 = vmax.f32 %v1113_v23, 0.0 }
 0x138   : > { %v1583_v29 = vmax.f32 %v1479_v24, %v1483_v26  ;;  %v1716_v34 = vrot.slane %v1582_v25, 1 }
 0x139   : > { %v1713_v30 = vrot.slane %v1580_v22, 1  ;;  %v1581_v31 = vmax.f32 %v1477_v17, %v1481_v28  ;;  %v8810_v32 = vpop.f32.mrb[40].mxu0 }
 0x13a   : > { %v1718_v35 = vrot.slane %v1583_v29, 1  ;;  %v1125_v36 = vpop.f32.mrb[41].mxu0  ;;  %v1134_v39 = vadd.f32 %v8810_v32, %v10726_v7 }
 0x13b   : > { %v1714_v37 = vrot.slane %v1581_v31, 1  ;;  %v8811_v38 = vpop.f32.mrb[42].mxu0  ;;  %v1126_v50 = vadd.f32 %v10726_v7, %v1125_v36 }
 0x13c   : > { %v1719_v40 = vsel %vm1684_vm1, %v1716_v34, %v1718_v35  ;;  %v1869_v41 = vsel %vm1684_vm1, %v1718_v35, %v1713_v30  ;;  %v1128_v42 = vpop.f32.mrb[43].mxu0  ;;  %v1137_v53 = vadd.f32 %v8811_v38, %v10726_v7  ;;  %v1486_v57 = vmax.f32 %v1134_v39, 0.0 }
 0x13d   : > { %v1898_v43 = vmax.f32 %v1582_v25, %v1719_v40  ;;  %v1899_v44 = vmax.f32 %v1583_v29, %v1869_v41  ;;  %v1715_v45 = vsel %vm1684_vm1, %v1713_v30, %v1714_v37  ;;  %v1717_v46 = vsel %vm1684_vm1, %v1714_v37, %v1716_v34 }
 0x13e   : > { %v1896_v47 = vmax.f32 %v1580_v22, %v1715_v45  ;;  %v1897_v33 = vmax.f32 %v1581_v31, %v1717_v46  ;;  %v1129_v58 = vadd.f32 %v10726_v7, %v1128_v42  ;;  %v1484_v3 = vmax.f32 %v1126_v50, 0.0 }
 0x13f   : > { %v10835_v48 = vpack.c.bf16 %v1899_v44, %v1898_v43  ;;  %v1487_v8 = vmax.f32 %v1137_v53, 0.0 }
 0x140   : > { %v1948_v49 = vpack.c.bf16 %v1897_v33, %v1896_v47  ;;  %v1485_v11 = vmax.f32 %v1129_v58, 0.0 }
 0x141   : > { %1979 = vst [vmem:[#allocation2 + $0x48] sm:$0xff] %v10835_v48  ;;  %v8814_v51 = vpop.f32.mrb[44].mxu0  ;;  %v2102_v52 = vrot.slane %v10835_v48, 1 }
 0x142   : > { %1978 = vst [vmem:[#allocation2 + $0x40] sm:$0xff] %v1948_v49  ;;  %v1150_v54 = vadd.f32 %v8814_v51, %v10726_v7  ;;  %v1141_v55 = vpop.f32.mrb[45].mxu0  ;;  %v2100_v56 = vrot.slane %v1948_v49, 1 }
 0x143   : > { %v1142_v59 = vadd.f32 %v10726_v7, %v1141_v55  ;;  %v8815_v60 = vpop.f32.mrb[46].mxu0 }
 0x144   : > { %v1490_v61 = vmax.f32 %v1150_v54, 0.0  ;;  %v1153_v62 = vadd.f32 %v8815_v60, %v10726_v7  ;;  %v1144_v0 = vpop.f32.mrb[47].mxu0  ;;  %v2101_v1 = vsel %vm1684_vm1, %v2098_v4, %v2100_v56  ;;  %v2103_v2 = vsel %vm1684_vm1, %v2100_v56, %v2102_v52 }
 0x145   : > { %v1488_v5 = vmax.f32 %v1142_v59, 0.0  ;;  %v1145_v6 = vadd.f32 %v10726_v7, %v1144_v0  ;;  %8917 = vmatmul.mubr.bf16.gmra.mrb[132].mxu0 %v2101_v1 }
 0x146   : > { %v1586_v9 = vmax.f32 %v1486_v57, %v1490_v61  ;;  %v1491_v10 = vmax.f32 %v1153_v62, 0.0  ;;  %8920 = vmatprep.mubr.bf16.mxu0 %v2103_v2 }
 0x147   : > { %v1584_v12 = vmax.f32 %v1484_v3, %v1488_v5  ;;  %v1489_v13 = vmax.f32 %v1145_v6, 0.0 }
 0x148   : > { %v1587_v14 = vmax.f32 %v1487_v8, %v1491_v10  ;;  %v1723_v16 = vrot.slane %v1586_v9, 1 }
 0x149   : > { %v1720_v63 = vrot.slane %v1584_v12, 1  ;;  %v1585_v15 = vmax.f32 %v1485_v11, %v1489_v13  ;;  %v8818_v4 = vpop.f32.mrb[48].mxu0 }
 0x14a   : > { %v1725_v18 = vrot.slane %v1587_v14, 1  ;;  %v1157_v19 = vpop.f32.mrb[49].mxu0  ;;  %v1166_v32 = vadd.f32 %v8818_v4, %v10726_v7 }
 0x14b   : > { %v1721_v20 = vrot.slane %v1585_v15, 1  ;;  %v8819_v21 = vpop.f32.mrb[50].mxu0  ;;  %v1158_v35 = vadd.f32 %v10726_v7, %v1157_v19 }
 0x14c   : > { %v1726_v23 = vsel %vm1684_vm1, %v1723_v16, %v1725_v18  ;;  %v1870_v24 = vsel %vm1684_vm1, %v1725_v18, %v1720_v63  ;;  %v1160_v25 = vpop.f32.mrb[51].mxu0  ;;  %v1169_v38 = vadd.f32 %v8819_v21, %v10726_v7  ;;  %v1494_v43 = vmax.f32 %v1166_v32, 0.0 }
 0x14d   : > { %v1902_v26 = vmax.f32 %v1586_v9, %v1726_v23  ;;  %v1903_v17 = vmax.f32 %v1587_v14, %v1870_v24  ;;  %v1722_v22 = vsel %vm1684_vm1, %v1720_v63, %v1721_v20  ;;  %v1724_v28 = vsel %vm1684_vm1, %v1721_v20, %v1723_v16 }
 0x14e   : > { %v1900_v29 = vmax.f32 %v1584_v12, %v1722_v22  ;;  %v1901_v30 = vmax.f32 %v1585_v15, %v1724_v28  ;;  %v1161_v44 = vadd.f32 %v10726_v7, %v1160_v25  ;;  %v1492_v51 = vmax.f32 %v1158_v35, 0.0 }
 0x14f   : > { %v10857_v31 = vpack.c.bf16 %v1903_v17, %v1902_v26  ;;  %v1495_v55 = vmax.f32 %v1169_v38, 0.0 }
 0x150   : > { %v10860_v34 = vpack.c.bf16 %v1901_v30, %v1900_v29  ;;  %v1493_v58 = vmax.f32 %v1161_v44, 0.0 }
 0x151   : > { %1981 = vst [vmem:[#allocation2 + $0x58] sm:$0xff] %v10857_v31  ;;  %v8822_v36 = vpop.f32.mrb[52].mxu0  ;;  %v2106_v37 = vrot.slane %v10857_v31, 1 }
 0x152   : > { %1980 = vst [vmem:[#allocation2 + $0x50] sm:$0xff] %v10860_v34  ;;  %v1182_v40 = vadd.f32 %v8822_v36, %v10726_v7  ;;  %v1173_v41 = vpop.f32.mrb[53].mxu0  ;;  %v2104_v42 = vrot.slane %v10860_v34, 1 }
 0x153   : > { %v1174_v45 = vadd.f32 %v10726_v7, %v1173_v41  ;;  %v8823_v46 = vpop.f32.mrb[54].mxu0 }
 0x154   : > { %v1498_v47 = vmax.f32 %v1182_v40, 0.0  ;;  %v1185_v33 = vadd.f32 %v8823_v46, %v10726_v7  ;;  %v1176_v39 = vpop.f32.mrb[55].mxu0  ;;  %v2105_v49 = vsel %vm1684_vm1, %v2102_v52, %v2104_v42  ;;  %v2107_v50 = vsel %vm1684_vm1, %v2104_v42, %v2106_v37 }
 0x155   : > { %v1496_v53 = vmax.f32 %v1174_v45, 0.0  ;;  %v1177_v54 = vadd.f32 %v10726_v7, %v1176_v39  ;;  %8921 = vmatmul.mubr.bf16.gmra.mrb[136].mxu0 %v2105_v49 }
 0x156   : > { %v1590_v56 = vmax.f32 %v1494_v43, %v1498_v47  ;;  %v1499_v57 = vmax.f32 %v1185_v33, 0.0  ;;  %8924 = vmatprep.mubr.bf16.mxu0 %v2107_v50 }
 0x157   : > { %v1588_v59 = vmax.f32 %v1492_v51, %v1496_v53  ;;  %v1497_v60 = vmax.f32 %v1177_v54, 0.0 }
 0x158   : > { %v1591_v61 = vmax.f32 %v1495_v55, %v1499_v57  ;;  %v1730_v0 = vrot.slane %v1590_v56, 1 }
 0x159   : > { %v1727_v48 = vrot.slane %v1588_v59, 1  ;;  %v1589_v62 = vmax.f32 %v1493_v58, %v1497_v60  ;;  %v8826_v52 = vpop.f32.mrb[56].mxu0 }
 0x15a   : > { %v1732_v1 = vrot.slane %v1591_v61, 1  ;;  %v1189_v2 = vpop.f32.mrb[57].mxu0  ;;  %v1198_v4 = vadd.f32 %v8826_v52, %v10726_v7 }
 0x15b   : > { %v1728_v3 = vrot.slane %v1589_v62, 1  ;;  %v8827_v5 = vpop.f32.mrb[58].mxu0  ;;  %v1190_v18 = vadd.f32 %v10726_v7, %v1189_v2 }
 0x15c   : > { %v1733_v6 = vsel %vm1684_vm1, %v1730_v0, %v1732_v1  ;;  %v1871_v8 = vsel %vm1684_vm1, %v1732_v1, %v1727_v48  ;;  %v1192_v9 = vpop.f32.mrb[59].mxu0  ;;  %v1201_v21 = vadd.f32 %v8827_v5, %v10726_v7  ;;  %v1502_v26 = vmax.f32 %v1198_v4, 0.0 }
 0x15d   : > { %v1906_v10 = vmax.f32 %v1590_v56, %v1733_v6  ;;  %v1907_v11 = vmax.f32 %v1591_v61, %v1871_v8  ;;  %v1729_v12 = vsel %vm1684_vm1, %v1727_v48, %v1728_v3  ;;  %v1731_v13 = vsel %vm1684_vm1, %v1728_v3, %v1730_v0 }
 0x15e   : > { %v1904_v14 = vmax.f32 %v1588_v59, %v1729_v12  ;;  %v1905_v63 = vmax.f32 %v1589_v62, %v1731_v13  ;;  %v1193_v17 = vadd.f32 %v10726_v7, %v1192_v9  ;;  %v1500_v38 = vmax.f32 %v1190_v18, 0.0 }
 0x15f   : > { %v10883_v15 = vpack.c.bf16 %v1907_v11, %v1906_v10  ;;  %v1503_v42 = vmax.f32 %v1201_v21, 0.0 }
 0x160   : > { %v10886_v16 = vpack.c.bf16 %v1905_v63, %v1904_v14  ;;  %v1501_v45 = vmax.f32 %v1193_v17, 0.0 }
 0x161   : > { %1983 = vst [vmem:[#allocation2 + $0x68] sm:$0xff] %v10883_v15  ;;  %v8830_v19 = vpop.f32.mrb[60].mxu0  ;;  %v2110_v20 = vrot.slane %v10883_v15, 1 }
 0x162   : > { %1982 = vst [vmem:[#allocation2 + $0x60] sm:$0xff] %v10886_v16  ;;  %v1214_v23 = vadd.f32 %v8830_v19, %v10726_v7  ;;  %v1205_v24 = vpop.f32.mrb[61].mxu0  ;;  %v2108_v25 = vrot.slane %v10886_v16, 1 }
 0x163   : > { %v1206_v22 = vadd.f32 %v10726_v7, %v1205_v24  ;;  %v8831_v28 = vpop.f32.mrb[62].mxu0 }
 0x164   : > { %v1506_v29 = vmax.f32 %v1214_v23, 0.0  ;;  %v1217_v30 = vadd.f32 %v8831_v28, %v10726_v7  ;;  %v1208_v32 = vpop.f32.mrb[63].mxu0  ;;  %v2109_v35 = vsel %vm1684_vm1, %v2106_v37, %v2108_v25  ;;  %v2111_v36 = vsel %vm1684_vm1, %v2108_v25, %v2110_v20 }
 0x165   : > { %v1504_v40 = vmax.f32 %v1206_v22, 0.0  ;;  %v1209_v41 = vadd.f32 %v10726_v7, %v1208_v32  ;;  %8925 = vmatmul.mubr.bf16.gmra.mrb[140].mxu0 %v2109_v35 }
 0x166   : > { %v1594_v43 = vmax.f32 %v1502_v26, %v1506_v29  ;;  %v1507_v44 = vmax.f32 %v1217_v30, 0.0  ;;  %8928 = vmatprep.mubr.bf16.mxu0 %v2111_v36 }
 0x167   : > { %v1592_v46 = vmax.f32 %v1500_v38, %v1504_v40  ;;  %v1505_v47 = vmax.f32 %v1209_v41, 0.0 }
 0x168   : > { %v1595_v33 = vmax.f32 %v1503_v42, %v1507_v44  ;;  %v1737_v50 = vrot.slane %v1594_v43, 1 }
 0x169   : > { %v1734_v39 = vrot.slane %v1592_v46, 1  ;;  %v1593_v49 = vmax.f32 %v1501_v45, %v1505_v47  ;;  %v8834_v37 = vpop.f32.mrb[64].mxu0 }
 0x16a   : > { %v1739_v51 = vrot.slane %v1595_v33, 1  ;;  %v1221_v53 = vpop.f32.mrb[65].mxu0  ;;  %v1230_v1 = vadd.f32 %v8834_v37, %v10726_v7 }
 0x16b   : > { %v1735_v54 = vrot.slane %v1593_v49, 1  ;;  %v8835_v55 = vpop.f32.mrb[66].mxu0  ;;  %v1222_v3 = vadd.f32 %v10726_v7, %v1221_v53 }
 0x16c   : > { %v1740_v56 = vsel %vm1684_vm1, %v1737_v50, %v1739_v51  ;;  %v1872_v57 = vsel %vm1684_vm1, %v1739_v51, %v1734_v39  ;;  %v1224_v58 = vpop.f32.mrb[67].mxu0  ;;  %v1233_v8 = vadd.f32 %v8835_v55, %v10726_v7  ;;  %v1510_v12 = vmax.f32 %v1230_v1, 0.0 }
 0x16d   : > { %v1910_v59 = vmax.f32 %v1594_v43, %v1740_v56  ;;  %v1911_v60 = vmax.f32 %v1595_v33, %v1872_v57  ;;  %v1736_v61 = vsel %vm1684_vm1, %v1734_v39, %v1735_v54  ;;  %v1738_v48 = vsel %vm1684_vm1, %v1735_v54, %v1737_v50 }
 0x16e   : > { %v1908_v62 = vmax.f32 %v1592_v46, %v1736_v61  ;;  %v1909_v52 = vmax.f32 %v1593_v49, %v1738_v48  ;;  %v1225_v13 = vadd.f32 %v10726_v7, %v1224_v58  ;;  %v1508_v24 = vmax.f32 %v1222_v3, 0.0 }
 0x16f   : > { %v10909_v0 = vpack.c.bf16 %v1911_v60, %v1910_v59  ;;  %v1511_v17 = vmax.f32 %v1233_v8, 0.0 }
 0x170   : > { %v10912_v2 = vpack.c.bf16 %v1909_v52, %v1908_v62  ;;  %v1509_v29 = vmax.f32 %v1225_v13, 0.0 }
 0x171   : > { %1985 = vst [vmem:[#allocation2 + $0x78] sm:$0xff] %v10909_v0  ;;  %v8838_v5 = vpop.f32.mrb[68].mxu0  ;;  %v2114_v6 = vrot.slane %v10909_v0, 1 }
 0x172   : > { %1984 = vst [vmem:[#allocation2 + $0x70] sm:$0xff] %v10912_v2  ;;  %v1246_v9 = vadd.f32 %v8838_v5, %v10726_v7  ;;  %v1237_v10 = vpop.f32.mrb[69].mxu0  ;;  %v2112_v11 = vrot.slane %v10912_v2, 1 }
 0x173   : > { %v1238_v14 = vadd.f32 %v10726_v7, %v1237_v10  ;;  %v8839_v63 = vpop.f32.mrb[70].mxu0 }
 0x174   : > { %v1514_v4 = vmax.f32 %v1246_v9, 0.0  ;;  %v1249_v18 = vadd.f32 %v8839_v63, %v10726_v7  ;;  %v1240_v19 = vpop.f32.mrb[71].mxu0  ;;  %v2113_v21 = vsel %vm1684_vm1, %v2110_v20, %v2112_v11  ;;  %v2115_v23 = vsel %vm1684_vm1, %v2112_v11, %v2114_v6 }
 0x175   : > { %v1512_v25 = vmax.f32 %v1238_v14, 0.0  ;;  %v1241_v26 = vadd.f32 %v10726_v7, %v1240_v19  ;;  %8929 = vmatmul.mubr.bf16.gmra.mrb[144].mxu0 %v2113_v21 }
 0x176   : > { %v1598_v22 = vmax.f32 %v1510_v12, %v1514_v4  ;;  %v1515_v28 = vmax.f32 %v1249_v18, 0.0  ;;  %8932 = vmatprep.mubr.bf16.mxu0 %v2115_v23 }
 0x177   : > { %v1596_v30 = vmax.f32 %v1508_v24, %v1512_v25  ;;  %v1513_v32 = vmax.f32 %v1241_v26, 0.0 }
 0x178   : > { %v1599_v35 = vmax.f32 %v1511_v17, %v1515_v28  ;;  %v1744_v40 = vrot.slane %v1598_v22, 1 }
 0x179   : > { %v1741_v36 = vrot.slane %v1596_v30, 1  ;;  %v1597_v38 = vmax.f32 %v1509_v29, %v1513_v32  ;;  %v8842_v20 = vpop.f32.mrb[72].mxu0 }
 0x17a   : > { %v1746_v41 = vrot.slane %v1599_v35, 1  ;;  %v1253_v42 = vpop.f32.mrb[73].mxu0  ;;  %v1262_v54 = vadd.f32 %v8842_v20, %v10726_v7 }
 0x17b   : > { %v1742_v43 = vrot.slane %v1597_v38, 1  ;;  %v8843_v44 = vpop.f32.mrb[74].mxu0  ;;  %v1254_v56 = vadd.f32 %v10726_v7, %v1253_v42 }
 0x17c   : > { %v1747_v45 = vsel %vm1684_vm1, %v1744_v40, %v1746_v41  ;;  %v1873_v46 = vsel %vm1684_vm1, %v1746_v41, %v1741_v36  ;;  %v1256_v47 = vpop.f32.mrb[75].mxu0  ;;  %v1265_v59 = vadd.f32 %v8843_v44, %v10726_v7  ;;  %v1518_v62 = vmax.f32 %v1262_v54, 0.0 }
 0x17d   : > { %v1914_v33 = vmax.f32 %v1598_v22, %v1747_v45  ;;  %v1915_v39 = vmax.f32 %v1599_v35, %v1873_v46  ;;  %v1743_v49 = vsel %vm1684_vm1, %v1741_v36, %v1742_v43  ;;  %v1745_v37 = vsel %vm1684_vm1, %v1742_v43, %v1744_v40 }
 0x17e   : > { %v1912_v50 = vmax.f32 %v1596_v30, %v1743_v49  ;;  %v1913_v51 = vmax.f32 %v1597_v38, %v1745_v37  ;;  %v1257_v52 = vadd.f32 %v10726_v7, %v1256_v47  ;;  %v1516_v12 = vmax.f32 %v1254_v56, 0.0  ;;  %v10976_v56 = vld [vmem:[%s12741_s2] ss:$0 sm:$0xff] }
 0x17f   : > { %v10935_v53 = vpack.c.bf16 %v1915_v39, %v1914_v33  ;;  %v1519_v63 = vmax.f32 %v1265_v59, 0.0 }
 0x180   : > { %v10938_v55 = vpack.c.bf16 %v1913_v51, %v1912_v50  ;;  %v1517_v19 = vmax.f32 %v1257_v52, 0.0 }
 0x181   : > { %1987 = vst [vmem:[#allocation2 + $0x88] sm:$0xff] %v10935_v53  ;;  %v8846_v57 = vpop.f32.mrb[76].mxu0  ;;  %v2118_v58 = vrot.slane %v10935_v53, 1 }
 0x182   : > { %1986 = vst [vmem:[#allocation2 + $0x80] sm:$0xff] %v10938_v55  ;;  %v1278_v60 = vadd.f32 %v8846_v57, %v10726_v7  ;;  %v1269_v61 = vpop.f32.mrb[77].mxu0  ;;  %v2116_v48 = vrot.slane %v10938_v55, 1 }
 0x183   : > { %v1270_v1 = vadd.f32 %v10726_v7, %v1269_v61  ;;  %v8847_v3 = vpop.f32.mrb[78].mxu0  ;;  %v10360_v61 = vld [vmem:[%s12742_s3 + $0x8] sm:$0xff]  }
 0x184   : > { %v1522_v5 = vmax.f32 %v1278_v60, 0.0  ;;  %v1281_v8 = vadd.f32 %v8847_v3, %v10726_v7  ;;  %v1272_v9 = vpop.f32.mrb[79].mxu0  ;;  %v2117_v10 = vsel %vm1684_vm1, %v2114_v6, %v2116_v48  ;;  %v2119_v11 = vsel %vm1684_vm1, %v2116_v48, %v2118_v58 }
 0x185   : > { %v1520_v13 = vmax.f32 %v1270_v1, 0.0  ;;  %v1273_v14 = vadd.f32 %v10726_v7, %v1272_v9  ;;  %8933 = vmatmul.mubr.bf16.gmra.mrb[148].mxu0 %v2117_v10  ;;  %8936 = vmatprep.mubr.bf16.mxu1 %v2119_v11 }
 0x186   : > { %v1602_v4 = vmax.f32 %v1518_v62, %v1522_v5  ;;  %v1523_v18 = vmax.f32 %v1281_v8, 0.0 }
 0x187   : > { %v1600_v21 = vmax.f32 %v1516_v12, %v1520_v13  ;;  %v1521_v23 = vmax.f32 %v1273_v14, 0.0 }
 0x188   : > { %v1603_v24 = vmax.f32 %v1519_v63, %v1523_v18  ;;  %v1751_v17 = vrot.slane %v1602_v4, 1 }
 0x189   : > { %v1748_v25 = vrot.slane %v1600_v21, 1  ;;  %v1601_v26 = vmax.f32 %v1517_v19, %v1521_v23  ;;  %v8850_v6 = vpop.f32.mrb[80].mxu0 }
 0x18a   : > { %v1753_v22 = vrot.slane %v1603_v24, 1  ;;  %v1285_v28 = vpop.f32.mrb[81].mxu0  ;;  %v1294_v45 = vadd.f32 %v8850_v6, %v10726_v7 }
 0x18b   : > { %v1749_v29 = vrot.slane %v1601_v26, 1  ;;  %v8851_v30 = vpop.f32.mrb[82].mxu0  ;;  %v1286_v47 = vadd.f32 %v10726_v7, %v1285_v28 }
 0x18c   : > { %v1754_v32 = vsel %vm1684_vm1, %v1751_v17, %v1753_v22  ;;  %v1874_v35 = vsel %vm1684_vm1, %v1753_v22, %v1748_v25  ;;  %v1288_v36 = vpop.f32.mrb[83].mxu0  ;;  %v1297_v49 = vadd.f32 %v8851_v30, %v10726_v7  ;;  %v1526_v54 = vmax.f32 %v1294_v45, 0.0 }
 0x18d   : > { %v1918_v38 = vmax.f32 %v1602_v4, %v1754_v32  ;;  %v1919_v20 = vmax.f32 %v1603_v24, %v1874_v35  ;;  %v1750_v40 = vsel %vm1684_vm1, %v1748_v25, %v1749_v29  ;;  %v1752_v41 = vsel %vm1684_vm1, %v1749_v29, %v1751_v17 }
 0x18e   : > { %v1916_v42 = vmax.f32 %v1600_v21, %v1750_v40  ;;  %v1917_v43 = vmax.f32 %v1601_v26, %v1752_v41  ;;  %v1289_v57 = vadd.f32 %v10976_v56, %v1288_v36  ;;  %v1524_v3 = vmax.f32 %v1286_v47, 0.0  ;;  %v10363_v40 = vld [vmem:[%s12742_s3 + $0x20] sm:$0xff]  }
 0x18f   : > { %v10961_v44 = vpack.c.bf16 %v1919_v20, %v1918_v38  ;;  %v1527_v9 = vmax.f32 %v1297_v49, 0.0 }
 0x190   : > { %v10964_v46 = vpack.c.bf16 %v1917_v43, %v1916_v42  ;;  %v1525_v12 = vmax.f32 %v1289_v57, 0.0 }
 0x191   : > { %1989 = vst [vmem:[#allocation2 + $0x98] sm:$0xff] %v10961_v44  ;;  %v8854_v33 = vpop.f32.mrb[84].mxu0  ;;  %v2122_v39 = vrot.slane %v10961_v44, 1 }
 0x192   : > { %1988 = vst [vmem:[#allocation2 + $0x90] sm:$0xff] %v10964_v46  ;;  %v1310_v37 = vadd.f32 %v8854_v33, %v10726_v7  ;;  %v1301_v50 = vpop.f32.mrb[85].mxu0  ;;  %v2120_v51 = vrot.slane %v10964_v46, 1 }
 0x193   : > { %v1302_v59 = vadd.f32 %v10976_v56, %v1301_v50  ;;  %v8855_v60 = vpop.f32.mrb[86].mxu0 }
 0x194   : > { %v1530_v48 = vmax.f32 %v1310_v37, 0.0  ;;  %v1313_v7 = vadd.f32 %v10976_v56, %v8855_v60  ;;  %v1304_v62 = vpop.f32.mrb[87].mxu0  ;;  %v2121_v52 = vsel %vm1684_vm1, %v2118_v58, %v2120_v51  ;;  %v2123_v1 = vsel %vm1684_vm1, %v2120_v51, %v2122_v39  ;;  %v10361_v58 = vld [vmem:[%s12742_s3 + $0x10] sm:$0xff]  }
 0x195   : > { %v1528_v5 = vmax.f32 %v1302_v59, 0.0  ;;  %v1305_v8 = vadd.f32 %v10976_v56, %v1304_v62  ;;  %8937 = vmatmul.mubr.bf16.vlgmr.msra.gmra.mrb[0].mxu1 %v2121_v52  ;;  %v10364_v59 = vld [vmem:[%s12742_s3 + $0x28] sm:$0xff]  }
 0x196   : > { %v1606_v10 = vmax.f32 %v1526_v54, %v1530_v48  ;;  %v1531_v11 = vmax.f32 %v1313_v7, 0.0  ;;  %8940 = vmatprep.mubr.bf16.mxu1 %v2123_v1  ;;  %8953 = vmatpush3.bf16.msra.mxu1 %v10828_v27  ;;  %v10362_v27 = vld [vmem:[%s12742_s3 + $0x18] sm:$0xff]  }
 0x197   : > { %v1604_v13 = vmax.f32 %v1524_v3, %v1528_v5  ;;  %v1529_v14 = vmax.f32 %v1305_v8, 0.0  ;;  %8954 = vmatprep.subr.bf16.mxu1 %v10360_v61 }
 0x198   : > { %v1607_v63 = vmax.f32 %v1527_v9, %v1531_v11  ;;  %v1758_v21 = vrot.slane %v1606_v10, 1 }
 0x199   : > { %v1755_v4 = vrot.slane %v1604_v13, 1  ;;  %v1605_v18 = vmax.f32 %v1525_v12, %v1529_v14  ;;  %v8858_v19 = vpop.f32.mrb[88].mxu0 }
 0x19a   : > { %v1760_v23 = vrot.slane %v1607_v63, 1  ;;  %v1317_v24 = vpop.f32.mrb[89].mxu0  ;;  %8955 = vmatpush3.bf16.msra.mxu1 %v10360_v61  ;;  %v1326_v20 = vadd.f32 %v10976_v56, %v8858_v19 }
 0x19b   : > { %v1756_v25 = vrot.slane %v1605_v18, 1  ;;  %v8859_v26 = vpop.f32.mrb[90].mxu0  ;;  %8956 = vmatprep.subr.bf16.mxu1 %v10361_v58  ;;  %v1318_v42 = vadd.f32 %v10976_v56, %v1317_v24  ;;  %v10366_v24 = vld [vmem:[%s12742_s3 + $0x38] sm:$0xff]  }
 0x19c   : > { %v1761_v6 = vsel %vm1684_vm1, %v1758_v21, %v1760_v23  ;;  %v1875_v17 = vsel %vm1684_vm1, %v1760_v23, %v1755_v4  ;;  %v1320_v22 = vpop.f32.mrb[91].mxu0  ;;  %v1329_v47 = vadd.f32 %v10976_v56, %v8859_v26  ;;  %v1534_v50 = vmax.f32 %v1326_v20, 0.0 }
 0x19d   : > { %v1922_v28 = vmax.f32 %v1606_v10, %v1761_v6  ;;  %v1923_v29 = vmax.f32 %v1607_v63, %v1875_v17  ;;  %v1757_v30 = vsel %vm1684_vm1, %v1755_v4, %v1756_v25  ;;  %v1759_v32 = vsel %vm1684_vm1, %v1756_v25, %v1758_v21 }
 0x19e   : > { %v1920_v35 = vmax.f32 %v1604_v13, %v1757_v30  ;;  %v1921_v36 = vmax.f32 %v1605_v18, %v1759_v32  ;;  %8957 = vmatpush3.bf16.msra.mxu1 %v10361_v58  ;;  %v1321_v51 = vadd.f32 %v10976_v56, %v1320_v22  ;;  %v1532_v52 = vmax.f32 %v1318_v42, 0.0 }
 0x19f   : > { %v11002_v38 = vpack.c.bf16 %v1923_v29, %v1922_v28  ;;  %8958 = vmatprep.subr.bf16.mxu1 %v10362_v27  ;;  %v1535_v5 = vmax.f32 %v1329_v47, 0.0 }
 0x1a0   : > { %v11008_v41 = vpack.c.bf16 %v1921_v36, %v1920_v35  ;;  %v1533_v10 = vmax.f32 %v1321_v51, 0.0  ;;  %v11046_v36 = vld [vmem:[%s12742_s3 + $0x80] sm:$0xff]  }
 0x1a1   : > { %1991 = vst [vmem:[#allocation2 + $0xa8] sm:$0xff] %v11002_v38  ;;  %v8862_v43 = vpop.f32.mrb[92].mxu0  ;;  %v2126_v45 = vrot.slane %v11002_v38, 1 }
 0x1a2   : > { %1990 = vst [vmem:[#allocation2 + $0xa0] sm:$0xff] %v11008_v41  ;;  %v1342_v33 = vadd.f32 %v10976_v56, %v8862_v43  ;;  %v1333_v49 = vpop.f32.mrb[93].mxu0  ;;  %v2124_v37 = vrot.slane %v11008_v41, 1  ;;  %8959 = vmatpush3.bf16.msra.mxu1 %v10362_v27 }
 0x1a3   : > { %v1334_v54 = vadd.f32 %v10976_v56, %v1333_v49  ;;  %v8863_v57 = vpop.f32.mrb[94].mxu0  ;;  %8960 = vmatprep.subr.bf16.mxu1 %v10363_v40 }
 0x1a4   : > { %v1538_v60 = vmax.f32 %v1342_v33, 0.0  ;;  %v1345_v61 = vadd.f32 %v10976_v56, %v8863_v57  ;;  %v1336_v48 = vpop.f32.mrb[95].mxu0  ;;  %v2125_v7 = vsel %vm1684_vm1, %v2122_v39, %v2124_v37  ;;  %v2127_v62 = vsel %vm1684_vm1, %v2124_v37, %v2126_v45  ;;  %v10365_v39 = vld [vmem:[%s12742_s3 + $0x30] sm:$0xff]  }
 0x1a5   : > { %v1536_v1 = vmax.f32 %v1334_v54, 0.0  ;;  %v1337_v3 = vadd.f32 %v10976_v56, %v1336_v48  ;;  %8941 = vmatmul.mubr.bf16.gmra.mrb[4].mxu1 %v2125_v7 }
 0x1a6   : > { %v1610_v8 = vmax.f32 %v1534_v50, %v1538_v60  ;;  %v1539_v9 = vmax.f32 %v1345_v61, 0.0  ;;  %8944 = vmatprep.mubr.bf16.mxu1 %v2127_v62  ;;  %8961 = vmatpush3.bf16.msra.mxu1 %v10363_v40 }
 0x1a7   : > { %v1608_v11 = vmax.f32 %v1532_v52, %v1536_v1  ;;  %v1537_v12 = vmax.f32 %v1337_v3, 0.0  ;;  %8962 = vmatprep.subr.bf16.mxu1 %v10364_v59 }
 0x1a8   : > { %v1611_v13 = vmax.f32 %v1535_v5, %v1539_v9  ;;  %v1765_v4 = vrot.slane %v1610_v8, 1 }
 0x1a9   : > { %v1762_v14 = vrot.slane %v1608_v11, 1  ;;  %v1609_v58 = vmax.f32 %v1533_v10, %v1537_v12  ;;  %v8866_v63 = vpop.f32.mrb[96].mxu0 }
 0x1aa   : > { %v1767_v18 = vrot.slane %v1611_v13, 1  ;;  %v1349_v19 = vpop.f32.mrb[97].mxu0  ;;  %8963 = vmatpush3.bf16.msra.mxu1 %v10364_v59  ;;  %v1358_v35 = vadd.f32 %v10976_v56, %v8866_v63 }
 0x1ab   : > { %v1763_v21 = vrot.slane %v1609_v58, 1  ;;  %v8867_v23 = vpop.f32.mrb[98].mxu0  ;;  %8964 = vmatprep.subr.bf16.mxu1 %v10365_v39  ;;  %v1350_v40 = vadd.f32 %v10976_v56, %v1349_v19 }
 0x1ac   : > { %v1768_v25 = vsel %vm1684_vm1, %v1765_v4, %v1767_v18  ;;  %v1876_v26 = vsel %vm1684_vm1, %v1767_v18, %v1762_v14  ;;  %v1352_v27 = vpop.f32.mrb[99].mxu0  ;;  %v1361_v47 = vadd.f32 %v10976_v56, %v8867_v23  ;;  %v1542_v50 = vmax.f32 %v1358_v35, 0.0 }
 0x1ad   : > { %v1926_v6 = vmax.f32 %v1610_v8, %v1768_v25  ;;  %v1927_v17 = vmax.f32 %v1611_v13, %v1876_v26  ;;  %v1764_v22 = vsel %vm1684_vm1, %v1762_v14, %v1763_v21  ;;  %v1766_v28 = vsel %vm1684_vm1, %v1763_v21, %v1765_v4 }
 0x1ae   : > { %v1924_v29 = vmax.f32 %v1608_v11, %v1764_v22  ;;  %v1925_v30 = vmax.f32 %v1609_v58, %v1766_v28  ;;  %8965 = vmatpush3.bf16.msra.mxu1 %v10365_v39  ;;  %v1353_v51 = vadd.f32 %v10976_v56, %v1352_v27  ;;  %v1540_v62 = vmax.f32 %v1350_v40, 0.0 }
 0x1af   : > { %v11040_v32 = vpack.c.bf16 %v1927_v17, %v1926_v6  ;;  %8966 = vmatprep.subr.bf16.mxu1 %v10366_v24  ;;  %v1543_v3 = vmax.f32 %v1361_v47, 0.0 }
 0x1b0   : > { %v11048_v20 = vpack.c.bf16 %v1925_v30, %v1924_v29  ;;  %v1541_v9 = vmax.f32 %v1353_v51, 0.0 }
 0x1b1   : > { %1993 = vst [vmem:[#allocation2 + $0xb8] sm:$0xff] %v11040_v32  ;;  %v8870_v42 = vpop.f32.mrb[100].mxu0  ;;  %v2130_v43 = vrot.slane %v11040_v32, 1 }
 0x1b2   : > { %1992 = vst [vmem:[#allocation2 + $0xb0] sm:$0xff] %v11048_v20  ;;  %v1374_v33 = vadd.f32 %v10976_v56, %v8870_v42  ;;  %v1365_v49 = vpop.f32.mrb[101].mxu0  ;;  %v2128_v37 = vrot.slane %v11048_v20, 1  ;;  %8967 = vmatpush3.bf16.msra.mxu1 %v10366_v24 }
 0x1b3   : > { %v1366_v54 = vadd.f32 %v10976_v56, %v1365_v49  ;;  %v8871_v57 = vpop.f32.mrb[102].mxu0  ;;  %9016 = vmatprep.subr.bf16.mxu1 %v11046_v36 }
 0x1b4   : > { %v1546_v59 = vmax.f32 %v1374_v33, 0.0  ;;  %v1377_v60 = vadd.f32 %v10976_v56, %v8871_v57  ;;  %v1368_v61 = vpop.f32.mrb[103].mxu0  ;;  %v2129_v48 = vsel %vm1684_vm1, %v2126_v45, %v2128_v37  ;;  %v2131_v7 = vsel %vm1684_vm1, %v2128_v37, %v2130_v43 }
 0x1b5   : > { %v1544_v52 = vmax.f32 %v1366_v54, 0.0  ;;  %v1369_v1 = vadd.f32 %v10976_v56, %v1368_v61  ;;  %8945 = vmatmul.mubr.bf16.gmra.mrb[8].mxu1 %v2129_v48 }
 0x1b6   : > { %v1614_v5 = vmax.f32 %v1542_v50, %v1546_v59  ;;  %v1547_v8 = vmax.f32 %v1377_v60, 0.0  ;;  %8948 = vmatprep.mubr.bf16.mxu1 %v2131_v7 }
 0x1b7   : > { %v1612_v10 = vmax.f32 %v1540_v62, %v1544_v52  ;;  %v1545_v11 = vmax.f32 %v1369_v1, 0.0 }
 0x1b8   : > { %v1615_v12 = vmax.f32 %v1543_v3, %v1547_v8  ;;  %v1772_v14 = vrot.slane %v1614_v5, 1 }
 0x1b9   : > { %v1769_v39 = vrot.slane %v1612_v10, 1  ;;  %v1613_v13 = vmax.f32 %v1541_v9, %v1545_v11  ;;  %v8874_v45 = vpop.f32.mrb[104].mxu0 }
 0x1ba   : > { %v1774_v58 = vrot.slane %v1615_v12, 1  ;;  %v1381_v63 = vpop.f32.mrb[105].mxu0  ;;  %v1390_v22 = vadd.f32 %v10976_v56, %v8874_v45 }
 0x1bb   : > { %v1770_v4 = vrot.slane %v1613_v13, 1  ;;  %v8875_v18 = vpop.f32.mrb[106].mxu0  ;;  %v1382_v29 = vadd.f32 %v10976_v56, %v1381_v63 }
 0x1bc   : > { %v1775_v19 = vsel %vm1684_vm1, %v1772_v14, %v1774_v58  ;;  %v1877_v21 = vsel %vm1684_vm1, %v1774_v58, %v1769_v39  ;;  %v1384_v23 = vpop.f32.mrb[107].mxu0  ;;  %v1393_v35 = vadd.f32 %v10976_v56, %v8875_v18  ;;  %v1550_v47 = vmax.f32 %v1390_v22, 0.0 }
 0x1bd   : > { %v1930_v24 = vmax.f32 %v1614_v5, %v1775_v19  ;;  %v1931_v25 = vmax.f32 %v1615_v12, %v1877_v21  ;;  %v1771_v26 = vsel %vm1684_vm1, %v1769_v39, %v1770_v4  ;;  %v1773_v27 = vsel %vm1684_vm1, %v1770_v4, %v1772_v14 }
 0x1be   : > { %v1928_v6 = vmax.f32 %v1612_v10, %v1771_v26  ;;  %v1929_v17 = vmax.f32 %v1613_v13, %v1773_v27  ;;  %v1385_v40 = vadd.f32 %v10976_v56, %v1384_v23  ;;  %v1548_v37 = vmax.f32 %v1382_v29, 0.0  ;;  %v2000_v26 = vld [vmem:[#allocation2] sm:$0xff] }
 0x1bf   : > { %v11073_v28 = vpack.c.bf16 %v1931_v25, %v1930_v24  ;;  %v1551_v54 = vmax.f32 %v1393_v35, 0.0 }
 0x1c0   : > { %v11076_v30 = vpack.c.bf16 %v1929_v17, %v1928_v6  ;;  %v1549_v61 = vmax.f32 %v1385_v40, 0.0 }
 0x1c1   : > { %1995 = vst [vmem:[#allocation2 + $0xc8] sm:$0xff] %v11073_v28  ;;  %v8878_v42 = vpop.f32.mrb[108].mxu0 }
 0x1c2   : > { %1994 = vst [vmem:[#allocation2 + $0xc0] sm:$0xff] %v11076_v30  ;;  %v1406_v33 = vadd.f32 %v10976_v56, %v8878_v42  ;;  %v1397_v49 = vpop.f32.mrb[109].mxu0 }
 0x1c3   : > { %v1398_v50 = vadd.f32 %v10976_v56, %v1397_v49  ;;  %v8879_v51 = vpop.f32.mrb[110].mxu0  ;;  %v10368_v49 = vld [vmem:[%s12742_s3 + $0x88] sm:$0xff]  }
 0x1c4   : > { %v1554_v57 = vmax.f32 %v1406_v33, 0.0  ;;  %v1409_v59 = vadd.f32 %v10976_v56, %v8879_v51  ;;  %v1400_v60 = vpop.f32.mrb[111].mxu0 }
 0x1c5   : > { %v1552_v48 = vmax.f32 %v1398_v50, 0.0  ;;  %v1401_v7 = vadd.f32 %v10976_v56, %v1400_v60 }
 0x1c6   : > { %v1618_v62 = vmax.f32 %v1550_v47, %v1554_v57  ;;  %v1555_v52 = vmax.f32 %v1409_v59, 0.0  ;;  %v11101_v59 = vld [vmem:[#allocation2 + $0x8] sm:$0xff] }
 0x1c7   : > { %v1616_v1 = vmax.f32 %v1548_v37, %v1552_v48  ;;  %v1553_v3 = vmax.f32 %v1401_v7, 0.0  ;;  %v11105_v7 = vld [vmem:[#allocation2 + $0x10] sm:$0xff] }
 0x1c8   : > { %v1619_v5 = vmax.f32 %v1551_v54, %v1555_v52  ;;  %v1779_v8 = vrot.slane %v1618_v62, 1 }
 0x1c9   : > { %v1776_v9 = vrot.slane %v1616_v1, 1  ;;  %v1617_v10 = vmax.f32 %v1549_v61, %v1553_v3  ;;  %v2041_v11 = vld [vmem:[#allocation2 + $0xc0] sm:$0x1]  ;;  %v8882_v12 = vpop.f32.mrb[112].mxu0  ;;  %v10369_v3 = vld [vmem:[%s12742_s3 + $0x90] sm:$0xff]  }
 0x1ca   : > { %v1781_v39 = vrot.slane %v1619_v5, 1  ;;  %v2132_v13 = vrot.slane %v2041_v11, 1  ;;  %v1413_v45 = vpop.f32.mrb[113].mxu0  ;;  %v1422_v17 = vadd.f32 %v10976_v56, %v8882_v12  ;;  %v11115_v11 = vld [vmem:[#allocation2 + $0x18] sm:$0xff] }
 0x1cb   : > { %v1777_v14 = vrot.slane %v1617_v10, 1  ;;  %v8883_v58 = vpop.f32.mrb[114].mxu0  ;;  %v1414_v29 = vadd.f32 %v10976_v56, %v1413_v45 }
 0x1cc   : > { %v1782_v63 = vsel %vm1684_vm1, %v1779_v8, %v1781_v39  ;;  %v1878_v4 = vsel %vm1684_vm1, %v1781_v39, %v1776_v9  ;;  %v2133_v18 = vsel %vm1684_vm1, %v2130_v43, %v2132_v13  ;;  %v1416_v19 = vpop.f32.mrb[115].mxu0  ;;  %v1558_v42 = vmax.f32 %v1422_v17, 0.0  ;;  %v11120_v39 = vld [vmem:[#allocation2 + $0x20] sm:$0xff] }
 0x1cd   : > { %v1934_v21 = vmax.f32 %v1618_v62, %v1782_v63  ;;  %v1935_v23 = vmax.f32 %v1619_v5, %v1878_v4  ;;  %v1778_v24 = vsel %vm1684_vm1, %v1776_v9, %v1777_v14  ;;  %v1780_v25 = vsel %vm1684_vm1, %v1777_v14, %v1779_v8  ;;  %8949 = vmatmul.mubr.bf16.gmra.mrb[12].mxu1 %v2133_v18  ;;  %v10371_v14 = vld [vmem:[%s12742_s3 + $0xa0] sm:$0xff]   ;;  %v10372_v63 = vld [vmem:[%s12742_s3 + $0xa8] sm:$0xff]   ;;  %v11132_v18 = vld [vmem:[#allocation2 + $0x30] sm:$0xff] }
 0x1ce   : > { %v1932_v27 = vmax.f32 %v1616_v1, %v1778_v24  ;;  %v1933_v6 = vmax.f32 %v1617_v10, %v1780_v25  ;;  %8968 = vmatprep.mubr.bf16.mxu1 %v2000_v26  ;;  %v1417_v43 = vadd.f32 %v10976_v56, %v1416_v19  ;;  %v1556_v37 = vmax.f32 %v1414_v29, 0.0  ;;  %v11129_v4 = vld [vmem:[#allocation2 + $0x28] sm:$0xff]  ;;  %v10373_v19 = vld [vmem:[%s12742_s3 + $0xb0] sm:$0xff]   ;;  %v10374_v26 = vld [vmem:[%s12742_s3 + $0xb8] sm:$0xff]  }
 0x1cf   : > { %v1967_v22 = vpack.c.bf16 %v1935_v23, %v1934_v21  ;;  %v10375_v17 = vld [vmem:[%s12742_s3 + $0xc0] sm:$0xff]  }
 0x1d0   : > { %v1966_v35 = vpack.c.bf16 %v1933_v6, %v1932_v27  ;;  %v1557_v60 = vmax.f32 %v1417_v43, 0.0  ;;  %v11149_v27 = vld [vmem:[#allocation2 + $0x38] sm:$0xff]  ;;  %v11152_v6 = vld [vmem:[#allocation2 + $0x40] sm:$0xff] }
 0x1d1   : > { %1997 = vst [vmem:[#allocation2 + $0xd8] sm:$0xff] %v1967_v22  ;;  %v8886_v40 = vpop.f32.mrb[116].mxu0  ;;  %v11158_v22 = vld [vmem:[#allocation2 + $0x48] sm:$0xff] }
 0x1d2   : > { %1996 = vst [vmem:[#allocation2 + $0xd0] sm:$0xff] %v1966_v35  ;;  %v1438_v47 = vadd.f32 %v10976_v56, %v8886_v40  ;;  %v1429_v33 = vpop.f32.mrb[117].mxu0 }
 0x1d3   : > { %v1430_v50 = vadd.f32 %v10976_v56, %v1429_v33  ;;  %v8887_v51 = vpop.f32.mrb[118].mxu0 }
 0x1d4   : > { %v1562_v54 = vmax.f32 %v1438_v47, 0.0  ;;  %v1432_v57 = vpop.f32.mrb[119].mxu0 }
 0x1d5   : > { %8969 = vmatmul.mubr.bf16.vlgmr.msra.gmra.mrb[16].mxu1 %v11101_v59  ;;  %v1560_v61 = vmax.f32 %v1430_v50, 0.0  ;;  %v1433_v48 = vadd.f32 %v10976_v56, %v1432_v57  ;;  %v10370_v56 = vld [vmem:[%s12742_s3 + $0x98] sm:$0xff]  }
 0x1d6   : > { %8972 = vmatprep.mubr.bf16.mxu1 %v11105_v7  ;;  %9017 = vmatpush3.bf16.msra.mxu1 %v11046_v36  ;;  %v1622_v62 = vmax.f32 %v1558_v42, %v1562_v54 }
 0x1d7   : > { %9018 = vmatprep.subr.bf16.mxu1 %v10368_v49  ;;  %v1620_v52 = vmax.f32 %v1556_v37, %v1560_v61  ;;  %v1561_v1 = vmax.f32 %v1433_v48, 0.0  ;;  %v2704_v37 = vld [vmem:[#allocation2] sm:$0xfc] }
 0x1d8   : > { %v1786_v5 = vrot.slane %v1622_v62, 1  ;;  %v2726_v51 = vrot.slane %v2704_v37, 2  ;;  %v2729_v62 = vrot.slane %v11105_v7, 2  ;;  %v2733_v7 = vrot.slane %v11120_v39, 2 }
 0x1d9   : > { %v1783_v8 = vrot.slane %v1620_v52, 1  ;;  %v1621_v9 = vmax.f32 %v1557_v60, %v1561_v1  ;;  %v2727_v60 = vrot.slane %v11101_v59, 2  ;;  %v10376_v1 = vld [vmem:[%s12742_s3 + $0xc8] sm:$0xff]  }
 0x1da   : > { %9019 = vmatpush3.bf16.msra.mxu1 %v10368_v49 }
 0x1db   : > { %v1784_v10 = vrot.slane %v1621_v9, 1  ;;  %9020 = vmatprep.subr.bf16.mxu1 %v10369_v3  ;;  %v2728_v48 = vsel %vm2725_vm2, %v2726_v51, %v2727_v60 }
 0x1dd   : > { %8973 = vmatmul.mubr.bf16.gmra.mrb[20].mxu1 %v11115_v11  ;;  %v1785_v36 = vsel %vm1684_vm1, %v1783_v8, %v1784_v10  ;;  %v1787_v12 = vsel %vm1684_vm1, %v1784_v10, %v1786_v5  ;;  %v10377_v5 = vld [vmem:[%s12742_s3 + $0xd0] sm:$0xff]  }
 0x1de   : > { %8976 = vmatprep.mubr.bf16.mxu1 %v11120_v39  ;;  %v1936_v13 = vmax.f32 %v1620_v52, %v1785_v36  ;;  %v1937_v45 = vmax.f32 %v1621_v9, %v1787_v12  ;;  %9021 = vmatpush3.bf16.msra.mxu1 %v10369_v3  ;;  %v2731_v52 = vrot.slane %v11115_v11, 2  ;;  %v2730_v3 = vsel %vm2725_vm2, %v2727_v60, %v2729_v62  ;;  %v10378_v36 = vld [vmem:[%s12742_s3 + $0xd8] sm:$0xff]  }
 0x1df   : > { %9022 = vmatprep.subr.bf16.mxu1 %v10370_v56  ;;  %v2735_v9 = vrot.slane %v11129_v4, 2  ;;  %v10382_v60 = vld [vmem:[%s12742_s3 + $0xf8] sm:$0xff]  }
 0x1e0   : > { %v1968_v58 = vpack.c.bf16 %v1937_v45, %v1936_v13  ;;  %v2732_v59 = vsel %vm2725_vm2, %v2729_v62, %v2731_v52  ;;  %v2734_v12 = vsel %vm2725_vm2, %v2731_v52, %v2733_v7  ;;  %v10379_v13 = vld [vmem:[%s12742_s3 + $0xe0] sm:$0xff]   ;;  %v2737_v45 = vrot.slane %v11132_v18, 2  ;;  %v10506_v62 = vld [vmem:[#allocation2 + $0x50] sm:$0xff] }
 0x1e1   : > { %v2736_v39 = vsel %vm2725_vm2, %v2733_v7, %v2735_v9  ;;  %v2745_v52 = vrot.slane %v10506_v62, 2  ;;  %v10508_v7 = vld [vmem:[#allocation2 + $0x60] sm:$0xff] }
 0x1e2   : > { %1998 = vst [vmem:[#allocation2 + $0xe0] sm:$0xff] %v1968_v58  ;;  %9023 = vmatpush3.bf16.msra.mxu1 %v10370_v56  ;;  %v10380_v58 = vld [vmem:[%s12742_s3 + $0xe8] sm:$0xff]  }
 0x1e3   : > { %9024 = vmatprep.subr.bf16.mxu1 %v10371_v14 }
 0x1e5   : > { %8977 = vmatmul.mubr.bf16.gmra.mrb[24].mxu1 %v11129_v4 }
 0x1e6   : > { %8980 = vmatprep.mubr.bf16.mxu1 %v11132_v18  ;;  %9025 = vmatpush3.bf16.msra.mxu1 %v10371_v14  ;;  %v2739_v14 = vrot.slane %v11149_v27, 2  ;;  %v10381_v18 = vld [vmem:[%s12742_s3 + $0xf0] sm:$0xff]  }
 0x1e7   : > { %9026 = vmatprep.subr.bf16.mxu1 %v10372_v63 }
 0x1e8   : > { %v11138_v21 = vpop.f32.mrb[120].mxu0  ;;  %v2740_v4 = vsel %vm2725_vm2, %v2737_v45, %v2739_v14 }
 0x1e9   : > { %12756 = vst [vmem:[#allocation4_spill] sm:$0xff] %v11138_v21  ;;  %v11140_v23 = vpop.f32.mrb[121].mxu0 }
 0x1ea   : > { %12757 = vst [vmem:[#allocation5_spill] sm:$0xff] %v11140_v23  ;;  %v11142_v24 = vpop.f32.mrb[122].mxu0  ;;  %9027 = vmatpush3.bf16.msra.mxu1 %v10372_v63  ;;  %v2738_v63 = vsel %vm2725_vm2, %v2735_v9, %v2737_v45  ;;  %v2749_v9 = vrot.slane %v10508_v7, 2 }
 0x1eb   : > { %12758 = vst [vmem:[#allocation6_spill] sm:$0xff] %v11142_v24  ;;  %v11144_v25 = vpop.f32.mrb[123].mxu0  ;;  %9028 = vmatprep.subr.bf16.mxu1 %v10373_v19 }
 0x1ec   : > { %12759 = vst [vmem:[#allocation7_spill] sm:$0xff] %v11144_v25 }
 0x1ed   : > { %8981 = vmatmul.mubr.bf16.gmra.mrb[28].mxu1 %v11149_v27  ;;  %v2743_v27 = vrot.slane %v11158_v22, 2 }
 0x1ee   : > { %8984 = vmatprep.mubr.bf16.mxu1 %v11152_v6  ;;  %9029 = vmatpush3.bf16.msra.mxu1 %v10373_v19  ;;  %v2741_v19 = vrot.slane %v11152_v6, 2 }
 0x1ef   : > { %9030 = vmatprep.subr.bf16.mxu1 %v10374_v26 }
 0x1f0   : > { %v2744_v6 = vsel %vm2725_vm2, %v2741_v19, %v2743_v27 }
 0x1f2   : > { %9031 = vmatpush3.bf16.msra.mxu1 %v10374_v26 }
 0x1f3   : > { %9080 = vmatprep.subr.bf16.mxu1 %v10375_v17 }
 0x1f5   : > { %8985 = vmatmul.mubr.bf16.gmra.mrb[32].mxu1 %v11158_v22  ;;  %v11265_v22 = vld [vmem:[%s12742_s3 + $0x100] sm:$0xff]  }
 0x1f6   : > { %8988 = vmatprep.mubr.bf16.mxu1 %v10860_v34 }
 0x1f8   : > { %v11162_v29 = vpop.f32.mrb[124].mxu0 }
 0x1f9   : > { %12760 = vst [vmem:[#allocation8_spill] sm:$0xff] %v11162_v29  ;;  %v11164_v35 = vpop.f32.mrb[125].mxu0 }
 0x1fa   : > { %12761 = vst [vmem:[#allocation9_spill] sm:$0xff] %v11164_v35  ;;  %v11166_v43 = vpop.f32.mrb[126].mxu0 }
 0x1fb   : > { %12762 = vst [vmem:[#allocation10_spill] sm:$0xff] %v11166_v43  ;;  %v11168_v40 = vpop.f32.mrb[127].mxu0 }
 0x1fc   : > { %12763 = vst [vmem:[#allocation11_spill] sm:$0xff] %v11168_v40 }
 0x1fd   : > { %8989 = vmatmul.mubr.bf16.gmra.mrb[36].mxu1 %v10857_v31 }
 0x1fe   : > { %8992 = vmatprep.mubr.bf16.mxu1 %v10886_v16 }
 0x205   : > { %8993 = vmatmul.mubr.bf16.gmra.mrb[40].mxu1 %v10883_v15 }
 0x206   : > { %8996 = vmatprep.mubr.bf16.mxu1 %v10912_v2 }
 0x208   : > { %v11174_v42 = vpop.f32.mrb[128].mxu0 }
 0x209   : > { %12764 = vst [vmem:[#allocation12_spill] sm:$0xff] %v11174_v42  ;;  %v11176_v47 = vpop.f32.mrb[129].mxu0  ;;  %v10400_v42 = vld [vmem:[%s12742_s3 + $0x188] sm:$0xff]  }
 0x20a   : > { %12765 = vst [vmem:[#allocation13_spill] sm:$0xff] %v11176_v47  ;;  %v11178_v34 = vpop.f32.mrb[130].mxu0 }
 0x20b   : > { %12766 = vst [vmem:[#allocation14_spill] sm:$0xff] %v11178_v34  ;;  %v11180_v33 = vpop.f32.mrb[131].mxu0 }
 0x20c   : > { %12767 = vst [vmem:[#allocation15_spill] sm:$0xff] %v11180_v33 }
 0x20d   : > { %8997 = vmatmul.mubr.bf16.gmra.mrb[44].mxu1 %v10909_v0 }
 0x20e   : > { %9000 = vmatprep.mubr.bf16.mxu1 %v10938_v55 }
 0x215   : > { %9001 = vmatmul.mubr.bf16.gmra.mrb[0].mxu1 %v10935_v53 }
 0x216   : > { %9004 = vmatprep.mubr.bf16.mxu1 %v10964_v46 }
 0x218   : > { %v11186_v31 = vpop.f32.mrb[132].mxu0 }
 0x219   : > { %12768 = vst [vmem:[#allocation16_spill] sm:$0xff] %v11186_v31  ;;  %v11188_v15 = vpop.f32.mrb[133].mxu0 }
 0x21a   : > { %12769 = vst [vmem:[#allocation17_spill] sm:$0xff] %v11188_v15  ;;  %v11190_v16 = vpop.f32.mrb[134].mxu0 }
 0x21b   : > { %12770 = vst [vmem:[#allocation18_spill] sm:$0xff] %v11190_v16  ;;  %v11192_v49 = vpop.f32.mrb[135].mxu0  ;;  %v3943_v16 = vld [vmem:[#allocation2 + $0x10] sm:$0xfc] }
 0x21c   : > { %12771 = vst [vmem:[#allocation19_spill] sm:$0xff] %v11192_v49  ;;  %v3964_v31 = vrot.slane %v3943_v16, 2 }
 0x21d   : > { %9005 = vmatmul.mubr.bf16.gmra.mrb[4].mxu1 %v10961_v44 }
 0x21e   : > { %9008 = vmatprep.mubr.bf16.mxu1 %v11008_v41 }
 0x225   : > { %9009 = vmatmul.mubr.bf16.gmra.mrb[8].mxu1 %v11002_v38 }
 0x226   : > { %9012 = vmatprep.mubr.bf16.mxu1 %v11048_v20 }
 0x228   : > { %v11198_v50 = vpop.f32.mrb[136].mxu0 }
 0x229   : > { %12772 = vst [vmem:[#allocation20_spill] sm:$0xff] %v11198_v50  ;;  %v11200_v54 = vpop.f32.mrb[137].mxu0 }
 0x22a   : > { %12773 = vst [vmem:[#allocation21_spill] sm:$0xff] %v11200_v54  ;;  %v11202_v57 = vpop.f32.mrb[138].mxu0 }
 0x22b   : > { %12774 = vst [vmem:[#allocation22_spill] sm:$0xff] %v11202_v57  ;;  %v11205_v61 = vpop.f32.mrb[139].mxu0  ;;  %v11520_v57 = vld [vmem:[#allocation2 + $0xc8] sm:$0xff] }
 0x22c   : > { %12775 = vst [vmem:[#allocation23_spill] sm:$0xff] %v11205_v61  ;;  %v11524_v50 = vrot.slane %v11520_v57, 1 }
 0x22d   : > { %9013 = vmatmul.mubr.bf16.gmra.mrb[12].mxu1 %v11040_v32 }
 0x22e   : > { %9032 = vmatprep.mubr.bf16.mxu1 %v2728_v48  ;;  %v2742_v48 = vsel %vm2725_vm2, %v2739_v14, %v2741_v19 }
 0x235   : > { %9033 = vmatmul.mubr.bf16.vlgmr.msra.gmra.mrb[16].mxu1 %v2730_v3 }
 0x236   : > { %9036 = vmatprep.mubr.bf16.mxu1 %v2732_v59  ;;  %9081 = vmatpush3.bf16.msra.mxu1 %v10375_v17  ;;  %v2746_v59 = vsel %vm2725_vm2, %v2743_v27, %v2745_v52 }
 0x237   : > { %9082 = vmatprep.subr.bf16.mxu1 %v10376_v1 }
 0x238   : > { %v11220_v8 = vpop.f32.mrb[140].mxu0 }
 0x239   : > { %12776 = vst [vmem:[#allocation24_spill] sm:$0xff] %v11220_v8  ;;  %v11223_v10 = vpop.f32.mrb[141].mxu0 }
 0x23a   : > { %12777 = vst [vmem:[#allocation25_spill] sm:$0xff] %v11223_v10  ;;  %v11225_v56 = vpop.f32.mrb[142].mxu0  ;;  %9083 = vmatpush3.bf16.msra.mxu1 %v10376_v1  ;;  %v10507_v1 = vld [vmem:[#allocation2 + $0x58] sm:$0xff] }
 0x23b   : > { %12778 = vst [vmem:[#allocation26_spill] sm:$0xff] %v11225_v56  ;;  %v11227_v11 = vpop.f32.mrb[143].mxu0  ;;  %9084 = vmatprep.subr.bf16.mxu1 %v10377_v5  ;;  %v2747_v3 = vrot.slane %v10507_v1, 2 }
 0x23c   : > { %12779 = vst [vmem:[#allocation27_spill] sm:$0xff] %v11227_v11 }
 0x23d   : > { %9037 = vmatmul.mubr.bf16.gmra.mrb[20].mxu1 %v2734_v12  ;;  %v10509_v12 = vld [vmem:[#allocation2 + $0x68] sm:$0xff] }
 0x23e   : > { %9040 = vmatprep.mubr.bf16.mxu1 %v2736_v39  ;;  %9085 = vmatpush3.bf16.msra.mxu1 %v10377_v5  ;;  %v2748_v5 = vsel %vm2725_vm2, %v2745_v52, %v2747_v3  ;;  %v2751_v39 = vrot.slane %v10509_v12, 2  ;;  %v3120_v12 = vld [vmem:[#allocation2 + $0x10] sm:$0xff] }
 0x23f   : > { %9086 = vmatprep.subr.bf16.mxu1 %v10378_v36 }
 0x242   : > { %9087 = vmatpush3.bf16.msra.mxu1 %v10378_v36 }
 0x243   : > { %9088 = vmatprep.subr.bf16.mxu1 %v10379_v13 }
 0x245   : > { %9041 = vmatmul.mubr.bf16.gmra.mrb[24].mxu1 %v2738_v63  ;;  %v2752_v63 = vsel %vm2725_vm2, %v2749_v9, %v2751_v39 }
 0x246   : > { %9044 = vmatprep.mubr.bf16.mxu1 %v2740_v4  ;;  %9089 = vmatpush3.bf16.msra.mxu1 %v10379_v13  ;;  %v2753_v4 = vrot.slane %v10912_v2, 2  ;;  %v2761_v2 = vrot.slane %v10964_v46, 2  ;;  %v2769_v46 = vrot.slane %v11048_v20, 2 }
 0x247   : > { %9090 = vmatprep.subr.bf16.mxu1 %v10380_v58 }
 0x248   : > { %v11248_v26 = vpop.f32.mrb[144].mxu0  ;;  %v2754_v19 = vsel %vm2725_vm2, %v2751_v39, %v2753_v4  ;;  %v10384_v39 = vld [vmem:[%s12742_s3 + $0x108] sm:$0xff]  }
 0x249   : > { %12780 = vst [vmem:[#allocation28_spill] sm:$0xff] %v11248_v26  ;;  %v11251_v17 = vpop.f32.mrb[145].mxu0 }
 0x24a   : > { %12781 = vst [vmem:[#allocation29_spill] sm:$0xff] %v11251_v17  ;;  %v11253_v37 = vpop.f32.mrb[146].mxu0  ;;  %9091 = vmatpush3.bf16.msra.mxu1 %v10380_v58  ;;  %v2750_v58 = vsel %vm2725_vm2, %v2747_v3, %v2749_v9  ;;  %v2705_v9 = vld [vmem:[#allocation2 + $0xc0] sm:$0x3] }
 0x24b   : > { %12782 = vst [vmem:[#allocation30_spill] sm:$0xff] %v11253_v37  ;;  %v11255_v51 = vpop.f32.mrb[147].mxu0  ;;  %9092 = vmatprep.subr.bf16.mxu1 %v10381_v18 }
 0x24c   : > { %12783 = vst [vmem:[#allocation31_spill] sm:$0xff] %v11255_v51 }
 0x24d   : > { %9045 = vmatmul.mubr.bf16.gmra.mrb[28].mxu1 %v2742_v48  ;;  %v2759_v48 = vrot.slane %v10935_v53, 2  ;;  %v2767_v53 = vrot.slane %v11002_v38, 2 }
 0x24e   : > { %9048 = vmatprep.mubr.bf16.mxu1 %v2744_v6  ;;  %9093 = vmatpush3.bf16.msra.mxu1 %v10381_v18  ;;  %v2755_v18 = vrot.slane %v10909_v0, 2  ;;  %v2763_v0 = vrot.slane %v10961_v44, 2  ;;  %v2771_v44 = vrot.slane %v11040_v32, 2 }
 0x24f   : > { %9094 = vmatprep.subr.bf16.mxu1 %v10382_v60  ;;  %v2762_v52 = vsel %vm2725_vm2, %v2759_v48, %v2761_v2 }
 0x250   : > { %v2756_v27 = vsel %vm2725_vm2, %v2753_v4, %v2755_v18  ;;  %v2764_v1 = vsel %vm2725_vm2, %v2761_v2, %v2763_v0  ;;  %v2772_v7 = vsel %vm2725_vm2, %v2769_v46, %v2771_v44  ;;  %v10385_v4 = vld [vmem:[%s12742_s3 + $0x110] sm:$0xff]   ;;  %v10390_v2 = vld [vmem:[%s12742_s3 + $0x138] sm:$0xff]  }
 0x252   : > { %9095 = vmatpush3.bf16.msra.mxu1 %v10382_v60  ;;  %v2757_v60 = vrot.slane %v10938_v55, 2  ;;  %v2765_v55 = vrot.slane %v11008_v41, 2  ;;  %v2773_v41 = vrot.slane %v2705_v9, 2  ;;  %v11374_v9 = vld [vmem:[#allocation2 + $0x98] sm:$0xff] }
 0x253   : > { %9144 = vmatprep.subr.bf16.mxu1 %v11265_v22 }
 0x254   : > { %v2758_v6 = vsel %vm2725_vm2, %v2755_v18, %v2757_v60  ;;  %v2760_v62 = vsel %vm2725_vm2, %v2757_v60, %v2759_v48  ;;  %v2766_v3 = vsel %vm2725_vm2, %v2763_v0, %v2765_v55  ;;  %v2774_v38 = vsel %vm2725_vm2, %v2771_v44, %v2773_v41  ;;  %v10386_v18 = vld [vmem:[%s12742_s3 + $0x118] sm:$0xff]   ;;  %v10388_v60 = vld [vmem:[%s12742_s3 + $0x128] sm:$0xff]   ;;  %v11365_v44 = vld [vmem:[#allocation2 + $0x80] sm:$0xff] }
 0x255   : > { %9049 = vmatmul.mubr.bf16.gmra.mrb[32].mxu1 %v2746_v59  ;;  %v2768_v59 = vsel %vm2725_vm2, %v2765_v55, %v2767_v53  ;;  %v11329_v48 = vld [vmem:[#allocation2 + $0x38] sm:$0xff]  ;;  %v11341_v0 = vld [vmem:[#allocation2 + $0x48] sm:$0xff]  ;;  %v11377_v41 = vld [vmem:[#allocation2 + $0xa0] sm:$0xff] }
 0x256   : > { %9052 = vmatprep.mubr.bf16.mxu1 %v2748_v5  ;;  %v2770_v5 = vsel %vm2725_vm2, %v2767_v53, %v2769_v46  ;;  %v11350_v55 = vld [vmem:[#allocation2 + $0x58] sm:$0xff]  ;;  %v11353_v53 = vld [vmem:[#allocation2 + $0x60] sm:$0xff] }
 0x257   : > { %v11362_v46 = vld [vmem:[#allocation2 + $0x78] sm:$0xff]  ;;  %v3981_v40 = vrot.slane %v11350_v55, 2  ;;  %v3983_v43 = vrot.slane %v11353_v53, 2 }
 0x258   : > { %v11270_v36 = vpop.f32.mrb[148].mxu0  ;;  %v3989_v29 = vrot.slane %v11362_v46, 2 }
 0x259   : > { %12784 = vst [vmem:[#allocation32_spill] sm:$0xff] %v11270_v36  ;;  %v11272_v13 = vpop.f32.mrb[149].mxu0 }
 0x25a   : > { %12785 = vst [vmem:[#allocation33_spill] sm:$0xff] %v11272_v13  ;;  %v11274_v45 = vpop.f32.mrb[150].mxu0  ;;  %v3574_v13 = vrot.slane %v11362_v46, 1 }
 0x25b   : > { %12786 = vst [vmem:[#allocation34_spill] sm:$0xff] %v11274_v45  ;;  %v11276_v14 = vpop.f32.mrb[151].mxu0 }
 0x25c   : > { %12787 = vst [vmem:[#allocation35_spill] sm:$0xff] %v11276_v14  ;;  %v3568_v14 = vrot.slane %v11353_v53, 1 }
 0x25d   : > { %9053 = vmatmul.mubr.bf16.gmra.mrb[36].mxu1 %v2750_v58  ;;  %v11304_v58 = vld [vmem:[#allocation2 + $0x18] sm:$0xff] }
 0x25e   : > { %9056 = vmatprep.mubr.bf16.mxu1 %v2752_v63  ;;  %v11307_v63 = vld [vmem:[#allocation2 + $0x20] sm:$0xff]  ;;  %v3965_v33 = vrot.slane %v11304_v58, 2 }
 0x25f   : > { %v3967_v47 = vrot.slane %v11307_v63, 2 }
 0x261   : > { %v3968_v16 = vsel %vm2725_vm2, %v3965_v33, %v3967_v47 }
 0x265   : > { %9057 = vmatmul.mubr.bf16.gmra.mrb[40].mxu1 %v2754_v19  ;;  %v11317_v19 = vld [vmem:[#allocation2 + $0x28] sm:$0xff] }
 0x266   : > { %9060 = vmatprep.mubr.bf16.mxu1 %v2756_v27  ;;  %v11320_v27 = vld [vmem:[#allocation2 + $0x30] sm:$0xff] }
 0x26d   : > { %9061 = vmatmul.mubr.bf16.gmra.mrb[44].mxu1 %v2758_v6  ;;  %v11332_v6 = vld [vmem:[#allocation2 + $0x40] sm:$0xff] }
 0x26e   : > { %9064 = vmatprep.mubr.bf16.mxu1 %v2760_v62  ;;  %v10389_v62 = vld [vmem:[%s12742_s3 + $0x130] sm:$0xff]  }
 0x275   : > { %9065 = vmatmul.mubr.bf16.gmra.mrb[0].mxu1 %v2762_v52  ;;  %v11344_v52 = vld [vmem:[#allocation2 + $0x50] sm:$0xff] }
 0x276   : > { %9068 = vmatprep.mubr.bf16.mxu1 %v2764_v1  ;;  %v10391_v1 = vld [vmem:[%s12742_s3 + $0x140] sm:$0xff]  }
 0x27d   : > { %9069 = vmatmul.mubr.bf16.gmra.mrb[4].mxu1 %v2766_v3  ;;  %v11356_v3 = vld [vmem:[#allocation2 + $0x68] sm:$0xff] }
 0x27e   : > { %9072 = vmatprep.mubr.bf16.mxu1 %v2768_v59  ;;  %v11359_v59 = vld [vmem:[#allocation2 + $0x70] sm:$0xff]  ;;  %v3570_v45 = vrot.slane %v11356_v3, 1  ;;  %v3985_v35 = vrot.slane %v11356_v3, 2 }
 0x285   : > { %9073 = vmatmul.mubr.bf16.gmra.mrb[8].mxu1 %v2770_v5  ;;  %v11368_v5 = vld [vmem:[#allocation2 + $0x88] sm:$0xff] }
 0x286   : > { %9076 = vmatprep.mubr.bf16.mxu1 %v2772_v7  ;;  %v11371_v7 = vld [vmem:[#allocation2 + $0x90] sm:$0xff] }
 0x28d   : > { %9077 = vmatmul.mubr.bf16.gmra.mrb[12].mxu1 %v2774_v38  ;;  %v11380_v38 = vld [vmem:[#allocation2 + $0xa8] sm:$0xff] }
 0x28e   : > { %9096 = vmatprep.mubr.bf16.mxu1 %v3120_v12  ;;  %v3482_v12 = vld [vmem:[#allocation2 + $0x10] sm:$0xfe] }
 0x295   : > { %9097 = vmatmul.mubr.bf16.vlgmr.msra.gmra.mrb[16].mxu1 %v11304_v58 }
 0x296   : > { %9100 = vmatprep.mubr.bf16.mxu1 %v11307_v63  ;;  %9145 = vmatpush3.bf16.msra.mxu1 %v11265_v22  ;;  %v10387_v22 = vld [vmem:[%s12742_s3 + $0x120] sm:$0xff]  }
 0x297   : > { %9146 = vmatprep.subr.bf16.mxu1 %v10384_v39 }
 0x29a   : > { %9147 = vmatpush3.bf16.msra.mxu1 %v10384_v39  ;;  %v3549_v39 = vrot.slane %v3482_v12, 1  ;;  %v10394_v12 = vld [vmem:[%s12742_s3 + $0x158] sm:$0xff]  }
 0x29b   : > { %9148 = vmatprep.subr.bf16.mxu1 %v10385_v4 }
 0x29d   : > { %9101 = vmatmul.mubr.bf16.gmra.mrb[20].mxu1 %v11317_v19 }
 0x29e   : > { %9104 = vmatprep.mubr.bf16.mxu1 %v11320_v27  ;;  %9149 = vmatpush3.bf16.msra.mxu1 %v10385_v4  ;;  %v3550_v4 = vrot.slane %v11304_v58, 1 }
 0x29f   : > { %9150 = vmatprep.subr.bf16.mxu1 %v10386_v18 }
 0x2a2   : > { %9151 = vmatpush3.bf16.msra.mxu1 %v10386_v18  ;;  %v3551_v18 = vsel %vm1684_vm1, %v3549_v39, %v3550_v4 }
 0x2a3   : > { %9152 = vmatprep.subr.bf16.mxu1 %v10387_v22 }
 0x2a5   : > { %9105 = vmatmul.mubr.bf16.gmra.mrb[24].mxu1 %v11329_v48 }
 0x2a6   : > { %9108 = vmatprep.mubr.bf16.mxu1 %v11332_v6  ;;  %9153 = vmatpush3.bf16.msra.mxu1 %v10387_v22  ;;  %v3552_v22 = vrot.slane %v11307_v63, 1 }
 0x2a7   : > { %9154 = vmatprep.subr.bf16.mxu1 %v10388_v60 }
 0x2aa   : > { %9155 = vmatpush3.bf16.msra.mxu1 %v10388_v60  ;;  %v11391_v60 = vrot.slane %v11317_v19, 1 }
 0x2ab   : > { %9156 = vmatprep.subr.bf16.mxu1 %v10389_v62 }
 0x2ad   : > { %9109 = vmatmul.mubr.bf16.gmra.mrb[28].mxu1 %v11341_v0 }
 0x2ae   : > { %9112 = vmatprep.mubr.bf16.mxu1 %v11344_v52  ;;  %9157 = vmatpush3.bf16.msra.mxu1 %v10389_v62  ;;  %v3556_v62 = vrot.slane %v11320_v27, 1 }
 0x2af   : > { %9158 = vmatprep.subr.bf16.mxu1 %v10390_v2 }
 0x2b0   : > { %v11409_v39 = vsel %vm1684_vm1, %v11391_v60, %v3556_v62 }
 0x2b2   : > { %9159 = vmatpush3.bf16.msra.mxu1 %v10390_v2  ;;  %v3558_v2 = vrot.slane %v11329_v48, 1 }
 0x2b3   : > { %9208 = vmatprep.subr.bf16.mxu1 %v10391_v1 }
 0x2b5   : > { %9113 = vmatmul.mubr.bf16.gmra.mrb[32].mxu1 %v11350_v55 }
 0x2b6   : > { %9116 = vmatprep.mubr.bf16.mxu1 %v11353_v53 }
 0x2bd   : > { %9117 = vmatmul.mubr.bf16.gmra.mrb[36].mxu1 %v11356_v3 }
 0x2be   : > { %9120 = vmatprep.mubr.bf16.mxu1 %v11359_v59 }
 0x2c5   : > { %9121 = vmatmul.mubr.bf16.gmra.mrb[40].mxu1 %v11362_v46 }
 0x2c6   : > { %9124 = vmatprep.mubr.bf16.mxu1 %v11365_v44 }
 0x2cd   : > { %9125 = vmatmul.mubr.bf16.gmra.mrb[44].mxu1 %v11368_v5 }
 0x2ce   : > { %9128 = vmatprep.mubr.bf16.mxu1 %v11371_v7 }
 0x2d5   : > { %9129 = vmatmul.mubr.bf16.gmra.mrb[0].mxu1 %v11374_v9 }
 0x2d6   : > { %9132 = vmatprep.mubr.bf16.mxu1 %v11377_v41 }
 0x2dd   : > { %9133 = vmatmul.mubr.bf16.gmra.mrb[4].mxu1 %v11380_v38 }
 0x2de   : > { %9136 = vmatprep.mubr.bf16.mxu1 %v11048_v20  ;;  %v3553_v20 = vsel %vm1684_vm1, %v3550_v4, %v3552_v22  ;;  %v10395_v4 = vld [vmem:[%s12742_s3 + $0x160] sm:$0xff]  }
 0x2e5   : > { %9137 = vmatmul.mubr.bf16.gmra.mrb[8].mxu1 %v11040_v32  ;;  %v10392_v32 = vld [vmem:[%s12742_s3 + $0x148] sm:$0xff]  }
 0x2e6   : > { %9140 = vmatprep.mubr.bf16.mxu1 %v11076_v30  ;;  %v3555_v30 = vsel %vm1684_vm1, %v3552_v22, %v11391_v60  ;;  %v3562_v22 = vrot.slane %v11341_v0, 1 }
 0x2ed   : > { %9141 = vmatmul.mubr.bf16.gmra.mrb[12].mxu1 %v11073_v28  ;;  %v10393_v28 = vld [vmem:[%s12742_s3 + $0x150] sm:$0xff]  }
 0x2ee   : > { %9160 = vmatprep.mubr.bf16.mxu1 %v3551_v18  ;;  %v3560_v18 = vrot.slane %v11332_v6, 1 }
 0x2f5   : > { %9161 = vmatmul.mubr.bf16.vlgmr.msra.gmra.mrb[16].mxu1 %v3553_v20  ;;  %v11425_v20 = vsel %vm1684_vm1, %v3558_v2, %v3560_v18 }
 0x2f6   : > { %9164 = vmatprep.mubr.bf16.mxu1 %v3555_v30  ;;  %9209 = vmatpush3.bf16.msra.mxu1 %v10391_v1  ;;  %v11413_v1 = vsel %vm1684_vm1, %v3556_v62, %v3558_v2  ;;  %v11429_v30 = vsel %vm1684_vm1, %v3560_v18, %v3562_v22  ;;  %v3564_v62 = vrot.slane %v11344_v52, 1  ;;  %v10398_v2 = vld [vmem:[%s12742_s3 + $0x178] sm:$0xff]  }
 0x2f7   : > { %9210 = vmatprep.subr.bf16.mxu1 %v10392_v32 }
 0x2f8   : > { %v11441_v18 = vsel %vm1684_vm1, %v3562_v22, %v3564_v62 }
 0x2fa   : > { %9211 = vmatpush3.bf16.msra.mxu1 %v10392_v32  ;;  %v10396_v32 = vld [vmem:[%s12742_s3 + $0x168] sm:$0xff]  }
 0x2fb   : > { %9212 = vmatprep.subr.bf16.mxu1 %v10393_v28 }
 0x2fd   : > { %9165 = vmatmul.mubr.bf16.gmra.mrb[20].mxu1 %v11409_v39 }
 0x2fe   : > { %9168 = vmatprep.mubr.bf16.mxu1 %v11413_v1  ;;  %9213 = vmatpush3.bf16.msra.mxu1 %v10393_v28  ;;  %v10397_v28 = vld [vmem:[%s12742_s3 + $0x170] sm:$0xff]  }
 0x2ff   : > { %9214 = vmatprep.subr.bf16.mxu1 %v10394_v12 }
 0x302   : > { %9215 = vmatpush3.bf16.msra.mxu1 %v10394_v12  ;;  %v3566_v12 = vrot.slane %v11350_v55, 1 }
 0x303   : > { %9216 = vmatprep.subr.bf16.mxu1 %v10395_v4 }
 0x304   : > { %v11457_v22 = vsel %vm1684_vm1, %v3566_v12, %v3568_v14 }
 0x305   : > { %9169 = vmatmul.mubr.bf16.gmra.mrb[24].mxu1 %v11425_v20 }
 0x306   : > { %9172 = vmatprep.mubr.bf16.mxu1 %v11429_v30  ;;  %9217 = vmatpush3.bf16.msra.mxu1 %v10395_v4  ;;  %v11445_v4 = vsel %vm1684_vm1, %v3564_v62, %v3566_v12  ;;  %v3572_v62 = vrot.slane %v11359_v59, 1  ;;  %v3576_v12 = vrot.slane %v11365_v44, 1 }
 0x307   : > { %9218 = vmatprep.subr.bf16.mxu1 %v10396_v32 }
 0x308   : > { %v11467_v36 = vsel %vm1684_vm1, %v3570_v45, %v3572_v62  ;;  %v11477_v51 = vsel %vm1684_vm1, %v3574_v13, %v3576_v12 }
 0x30a   : > { %9219 = vmatpush3.bf16.msra.mxu1 %v10396_v32  ;;  %v11451_v32 = vld [vmem:[%s12742_s3 + $0x180] sm:$0xff]  }
 0x30b   : > { %9220 = vmatprep.subr.bf16.mxu1 %v10397_v28 }
 0x30d   : > { %9173 = vmatmul.mubr.bf16.gmra.mrb[28].mxu1 %v11441_v18 }
 0x30e   : > { %9176 = vmatprep.mubr.bf16.mxu1 %v11445_v4  ;;  %9221 = vmatpush3.bf16.msra.mxu1 %v10397_v28  ;;  %v11461_v28 = vsel %vm1684_vm1, %v3568_v14, %v3570_v45  ;;  %v3578_v14 = vrot.slane %v11368_v5, 1  ;;  %v3580_v45 = vrot.slane %v11371_v7, 1 }
 0x30f   : > { %9222 = vmatprep.subr.bf16.mxu1 %v10398_v2 }
 0x310   : > { %v11481_v37 = vsel %vm1684_vm1, %v3576_v12, %v3578_v14  ;;  %v11487_v17 = vsel %vm1684_vm1, %v3578_v14, %v3580_v45  ;;  %v3586_v12 = vrot.slane %v11380_v38, 1  ;;  %v11503_v14 = vld [vmem:[#allocation2 + $0xb0] sm:$0xff] }
 0x311   : > { %v3588_v10 = vrot.slane %v11503_v14, 1 }
 0x312   : > { %9223 = vmatpush3.bf16.msra.mxu1 %v10398_v2  ;;  %v11471_v2 = vsel %vm1684_vm1, %v3572_v62, %v3574_v13  ;;  %v3582_v62 = vrot.slane %v11374_v9, 1  ;;  %v3584_v13 = vrot.slane %v11377_v41, 1 }
 0x313   : > { %9272 = vmatprep.subr.bf16.mxu1 %v11451_v32  ;;  %v11511_v61 = vsel %vm1684_vm1, %v3586_v12, %v3588_v10 }
 0x314   : > { %v11491_v26 = vsel %vm1684_vm1, %v3580_v45, %v3582_v62  ;;  %v11497_v11 = vsel %vm1684_vm1, %v3582_v62, %v3584_v13  ;;  %v11501_v56 = vsel %vm1684_vm1, %v3584_v13, %v3586_v12  ;;  %v11506_v45 = vld [vmem:[#allocation2 + $0xb8] sm:$0xff]  ;;  %v11517_v13 = vld [vmem:[#allocation2 + $0xc0] sm:$0xff]  ;;  %v3506_v12 = vld [vmem:[#allocation2 + $0xd0] sm:$0x1] }
 0x315   : > { %9177 = vmatmul.mubr.bf16.gmra.mrb[32].mxu1 %v11457_v22  ;;  %v3590_v8 = vrot.slane %v11506_v45, 1  ;;  %v3592_v54 = vrot.slane %v11517_v13, 1  ;;  %v3596_v15 = vrot.slane %v3506_v12, 1  ;;  %v3975_v12 = vrot.slane %v11332_v6, 2 }
 0x316   : > { %9180 = vmatprep.mubr.bf16.mxu1 %v11461_v28 }
 0x317   : > { %v11515_v62 = vsel %vm1684_vm1, %v3588_v10, %v3590_v8  ;;  %v11527_v49 = vsel %vm1684_vm1, %v3590_v8, %v3592_v54  ;;  %v11532_v10 = vsel %vm1684_vm1, %v3592_v54, %v11524_v50  ;;  %v3597_v34 = vsel %vm1684_vm1, %v11524_v50, %v3596_v15 }
 0x318   : > { %v3966_v8 = vsel %vm2725_vm2, %v3964_v31, %v3965_v33  ;;  %v11541_v54 = vrot.slane %v11317_v19, 2  ;;  %v3971_v31 = vrot.slane %v11320_v27, 2  ;;  %v3973_v15 = vrot.slane %v11329_v48, 2  ;;  %v10402_v33 = vld [vmem:[%s12742_s3 + $0x198] sm:$0xff]  }
 0x31a   : > { %v3970_v58 = vsel %vm2725_vm2, %v3967_v47, %v11541_v54  ;;  %v11560_v47 = vsel %vm2725_vm2, %v11541_v54, %v3971_v31 }
 0x31d   : > { %9181 = vmatmul.mubr.bf16.gmra.mrb[36].mxu1 %v11467_v36 }
 0x31e   : > { %9184 = vmatprep.mubr.bf16.mxu1 %v11471_v2 }
 0x325   : > { %9185 = vmatmul.mubr.bf16.gmra.mrb[40].mxu1 %v11477_v51 }
 0x326   : > { %9188 = vmatprep.mubr.bf16.mxu1 %v11481_v37 }
 0x32d   : > { %9189 = vmatmul.mubr.bf16.gmra.mrb[44].mxu1 %v11487_v17 }
 0x32e   : > { %9192 = vmatprep.mubr.bf16.mxu1 %v11491_v26 }
 0x335   : > { %9193 = vmatmul.mubr.bf16.gmra.mrb[0].mxu1 %v11497_v11 }
 0x336   : > { %9196 = vmatprep.mubr.bf16.mxu1 %v11501_v56 }
 0x33d   : > { %9197 = vmatmul.mubr.bf16.gmra.mrb[4].mxu1 %v11511_v61 }
 0x33e   : > { %9200 = vmatprep.mubr.bf16.mxu1 %v11515_v62 }
 0x345   : > { %9201 = vmatmul.mubr.bf16.gmra.mrb[8].mxu1 %v11527_v49 }
 0x346   : > { %9204 = vmatprep.mubr.bf16.mxu1 %v11532_v10 }
 0x34d   : > { %9205 = vmatmul.mubr.bf16.gmra.mrb[12].mxu1 %v3597_v34  ;;  %v10401_v34 = vld [vmem:[%s12742_s3 + $0x190] sm:$0xff]  }
 0x34e   : > { %9224 = vmatprep.mubr.bf16.mxu1 %v3966_v8  ;;  %v3977_v8 = vrot.slane %v11341_v0, 2 }
 0x355   : > { %9225 = vmatmul.mubr.bf16.vlgmr.msra.gmra.mrb[16].mxu1 %v3968_v16  ;;  %v10404_v16 = vld [vmem:[%s12742_s3 + $0x1a8] sm:$0xff]  }
 0x356   : > { %9228 = vmatprep.mubr.bf16.mxu1 %v3970_v58  ;;  %9273 = vmatpush3.bf16.msra.mxu1 %v11451_v32  ;;  %v11564_v32 = vsel %vm2725_vm2, %v3971_v31, %v3973_v15  ;;  %v11576_v58 = vsel %vm2725_vm2, %v3973_v15, %v3975_v12  ;;  %v10405_v31 = vld [vmem:[%s12742_s3 + $0x1b0] sm:$0xff]   ;;  %v10406_v15 = vld [vmem:[%s12742_s3 + $0x1b8] sm:$0xff]  }
 0x357   : > { %9274 = vmatprep.subr.bf16.mxu1 %v10400_v42 }
 0x35a   : > { %9275 = vmatpush3.bf16.msra.mxu1 %v10400_v42  ;;  %v10403_v42 = vld [vmem:[%s12742_s3 + $0x1a0] sm:$0xff]  }
 0x35b   : > { %9276 = vmatprep.subr.bf16.mxu1 %v10401_v34 }
 0x35d   : > { %9229 = vmatmul.mubr.bf16.gmra.mrb[20].mxu1 %v11560_v47 }
 0x35e   : > { %9232 = vmatprep.mubr.bf16.mxu1 %v11564_v32  ;;  %9277 = vmatpush3.bf16.msra.mxu1 %v10401_v34  ;;  %v11580_v34 = vsel %vm2725_vm2, %v3975_v12, %v3977_v8 }
 0x35f   : > { %9278 = vmatprep.subr.bf16.mxu1 %v10402_v33 }
 0x362   : > { %9279 = vmatpush3.bf16.msra.mxu1 %v10402_v33  ;;  %v3979_v33 = vrot.slane %v11344_v52, 2 }
 0x363   : > { %9280 = vmatprep.subr.bf16.mxu1 %v10403_v42 }
 0x364   : > { %v11592_v12 = vsel %vm2725_vm2, %v3977_v8, %v3979_v33  ;;  %v11605_v8 = vsel %vm2725_vm2, %v3981_v40, %v3983_v43 }
 0x365   : > { %9233 = vmatmul.mubr.bf16.gmra.mrb[24].mxu1 %v11576_v58 }
 0x366   : > { %9236 = vmatprep.mubr.bf16.mxu1 %v11580_v34  ;;  %9281 = vmatpush3.bf16.msra.mxu1 %v10403_v42  ;;  %v11596_v42 = vsel %vm2725_vm2, %v3979_v33, %v3981_v40  ;;  %v11609_v33 = vsel %vm2725_vm2, %v3983_v43, %v3985_v35  ;;  %v3991_v40 = vrot.slane %v11365_v44, 2  ;;  %v3993_v43 = vrot.slane %v11368_v5, 2 }
 0x367   : > { %9282 = vmatprep.subr.bf16.mxu1 %v10404_v16 }
 0x368   : > { %v11625_v24 = vsel %vm2725_vm2, %v3989_v29, %v3991_v40  ;;  %v11629_v23 = vsel %vm2725_vm2, %v3991_v40, %v3993_v43  ;;  %v4001_v40 = vrot.slane %v11380_v38, 2 }
 0x369   : > { %12789 = vst [vmem:[#allocation37_spill] sm:$0xff] %v11625_v24  ;;  %12790 = vst [vmem:[#allocation38_spill] sm:$0xff] %v11629_v23 }
 0x36a   : > { %9283 = vmatpush3.bf16.msra.mxu1 %v10404_v16  ;;  %v10407_v16 = vld [vmem:[%s12742_s3 + $0x1c0] sm:$0xff]  }
 0x36b   : > { %9284 = vmatprep.subr.bf16.mxu1 %v10405_v31 }
 0x36d   : > { %9237 = vmatmul.mubr.bf16.gmra.mrb[28].mxu1 %v11592_v12 }
 0x36e   : > { %9240 = vmatprep.mubr.bf16.mxu1 %v11596_v42  ;;  %9285 = vmatpush3.bf16.msra.mxu1 %v10405_v31  ;;  %v3987_v31 = vrot.slane %v11359_v59, 2 }
 0x36f   : > { %9286 = vmatprep.subr.bf16.mxu1 %v10406_v15 }
 0x370   : > { %v11615_v25 = vsel %vm2725_vm2, %v3985_v35, %v3987_v31  ;;  %v3995_v35 = vrot.slane %v11371_v7, 2 }
 0x372   : > { %9287 = vmatpush3.bf16.msra.mxu1 %v10406_v15  ;;  %v11619_v15 = vsel %vm2725_vm2, %v3987_v31, %v3989_v29  ;;  %v3997_v31 = vrot.slane %v11374_v9, 2  ;;  %v11635_v21 = vsel %vm2725_vm2, %v3993_v43, %v3995_v35  ;;  %v3999_v29 = vrot.slane %v11377_v41, 2 }
 0x373   : > { %9336 = vmatprep.subr.bf16.mxu1 %v10407_v16  ;;  %12788 = vst [vmem:[#allocation36_spill] sm:$0xff] %v11619_v15  ;;  %12791 = vst [vmem:[#allocation39_spill] sm:$0xff] %v11635_v21  ;;  %v4003_v43 = vrot.slane %v11503_v14, 2 }
 0x375   : > { %9241 = vmatmul.mubr.bf16.gmra.mrb[32].mxu1 %v11605_v8 }
 0x376   : > { %9244 = vmatprep.mubr.bf16.mxu1 %v11609_v33 }
 0x37d   : > { %9245 = vmatmul.mubr.bf16.gmra.mrb[36].mxu1 %v11615_v25 }
 0x37e   : > { %9248 = vmatprep.mubr.bf16.mxu1 %v11619_v15  ;;  %v11639_v15 = vsel %vm2725_vm2, %v3995_v35, %v3997_v31  ;;  %v4005_v35 = vrot.slane %v11506_v45, 2 }
 0x37f   : > { %12792 = vst [vmem:[#allocation40_spill] sm:$0xff] %v11639_v15 }
 0x385   : > { %9249 = vmatmul.mubr.bf16.gmra.mrb[40].mxu1 %v11625_v24  ;;  %v11649_v24 = vsel %vm2725_vm2, %v3999_v29, %v4001_v40 }
 0x386   : > { %9252 = vmatprep.mubr.bf16.mxu1 %v11629_v23  ;;  %v11645_v23 = vsel %vm2725_vm2, %v3997_v31, %v3999_v29  ;;  %12793 = vst [vmem:[#allocation41_spill] sm:$0xff] %v11649_v24  ;;  %v4007_v31 = vrot.slane %v11517_v13, 2  ;;  %v11664_v29 = vrot.slane %v11520_v57, 2 }
 0x38d   : > { %9253 = vmatmul.mubr.bf16.gmra.mrb[44].mxu1 %v11635_v21  ;;  %v11659_v21 = vsel %vm2725_vm2, %v4003_v43, %v4005_v35 }
 0x38e   : > { %9256 = vmatprep.mubr.bf16.mxu1 %v11639_v15  ;;  %v11655_v15 = vsel %vm2725_vm2, %v4001_v40, %v4003_v43  ;;  %12795 = vst [vmem:[#allocation43_spill] sm:$0xff] %v11659_v21  ;;  %v11672_v40 = vsel %vm2725_vm2, %v4007_v31, %v11664_v29 }
 0x38f   : > { %12794 = vst [vmem:[#allocation42_spill] sm:$0xff] %v11655_v15 }
 0x395   : > { %9257 = vmatmul.mubr.bf16.gmra.mrb[0].mxu1 %v11645_v23 }
 0x396   : > { %9260 = vmatprep.mubr.bf16.mxu1 %v11649_v24  ;;  %v11667_v24 = vsel %vm2725_vm2, %v4005_v35, %v4007_v31  ;;  %v10408_v35 = vld [vmem:[%s12742_s3 + $0x1c8] sm:$0xff]  }
 0x39d   : > { %9261 = vmatmul.mubr.bf16.gmra.mrb[4].mxu1 %v11655_v15  ;;  %v3944_v15 = vld [vmem:[#allocation2 + $0xd0] sm:$0x3] }
 0x39e   : > { %9264 = vmatprep.mubr.bf16.mxu1 %v11659_v21  ;;  %v4011_v43 = vrot.slane %v3944_v15, 2  ;;  %v10409_v15 = vld [vmem:[%s12742_s3 + $0x1d0] sm:$0xff]  }
 0x3a0   : > { %v4012_v21 = vsel %vm2725_vm2, %v11664_v29, %v4011_v43 }
 0x3a5   : > { %9265 = vmatmul.mubr.bf16.gmra.mrb[8].mxu1 %v11667_v24 }
 0x3a6   : > { %9268 = vmatprep.mubr.bf16.mxu1 %v11672_v40 }
 0x3ad   : > { %9269 = vmatmul.mubr.bf16.gmra.mrb[12].mxu1 %v4012_v21  ;;  %v10410_v21 = vld [vmem:[%s12742_s3 + $0x1d8] sm:$0xff]  }
 0x3ae   : > { %9288 = vmatprep.mubr.bf16.mxu1 %v11307_v63  ;;  %v10411_v63 = vld [vmem:[%s12742_s3 + $0x1e0] sm:$0xff]  }
 0x3b5   : > { %9289 = vmatmul.mubr.bf16.vlgmr.msra.gmra.mrb[16].mxu1 %v11317_v19  ;;  %v10412_v19 = vld [vmem:[%s12742_s3 + $0x1e8] sm:$0xff]  }
 0x3b6   : > { %9292 = vmatprep.mubr.bf16.mxu1 %v11320_v27  ;;  %9337 = vmatpush3.bf16.msra.mxu1 %v10407_v16  ;;  %v10413_v27 = vld [vmem:[%s12742_s3 + $0x1f0] sm:$0xff]  }
 0x3b7   : > { %9338 = vmatprep.subr.bf16.mxu1 %v10408_v35 }
 0x3ba   : > { %9339 = vmatpush3.bf16.msra.mxu1 %v10408_v35  ;;  %v12807_v35 = vld [vmem:[#allocation7_spill] sm:$0xff] }
 0x3bb   : > { %9340 = vmatprep.subr.bf16.mxu1 %v10409_v15 }
 0x3bd   : > { %9293 = vmatmul.mubr.bf16.gmra.mrb[20].mxu1 %v11329_v48  ;;  %v10414_v48 = vld [vmem:[%s12742_s3 + $0x1f8] sm:$0xff]  }
 0x3be   : > { %9296 = vmatprep.mubr.bf16.mxu1 %v11332_v6  ;;  %9341 = vmatpush3.bf16.msra.mxu1 %v10409_v15  ;;  %v10415_v6 = vld [vmem:[%s12742_s3 + $0x200] sm:$0xff]  }
 0x3bf   : > { %9342 = vmatprep.subr.bf16.mxu1 %v10410_v21 }
 0x3c2   : > { %9343 = vmatpush3.bf16.msra.mxu1 %v10410_v21  ;;  %v11848_v21 = vld [vmem:[%s12743_s4] ss:$0 sm:$0xff] }
 0x3c3   : > { %9344 = vmatprep.subr.bf16.mxu1 %v10411_v63 }
 0x3c5   : > { %9297 = vmatmul.mubr.bf16.gmra.mrb[24].mxu1 %v11341_v0  ;;  %v11723_v0 = vld [vmem:[#allocation2 + $0xd0] sm:$0xff] }
 0x3c6   : > { %9300 = vmatprep.mubr.bf16.mxu1 %v11344_v52  ;;  %9345 = vmatpush3.bf16.msra.mxu1 %v10411_v63  ;;  %v4720_v52 = vld [vmem:[#allocation2 + $0x20] sm:$0xfe] }
 0x3c7   : > { %9346 = vmatprep.subr.bf16.mxu1 %v10412_v19 }
 0x3ca   : > { %9347 = vmatpush3.bf16.msra.mxu1 %v10412_v19 }
 0x3cb   : > { %9348 = vmatprep.subr.bf16.mxu1 %v10413_v27 }
 0x3cd   : > { %9301 = vmatmul.mubr.bf16.gmra.mrb[28].mxu1 %v11350_v55  ;;  %v4787_v55 = vrot.slane %v4720_v52, 1  ;;  %v12809_v52 = vld [vmem:[#allocation9_spill] sm:$0xff] }
 0x3ce   : > { %9304 = vmatprep.mubr.bf16.mxu1 %v11353_v53  ;;  %9349 = vmatpush3.bf16.msra.mxu1 %v10413_v27  ;;  %v11726_v53 = vld [vmem:[#allocation2 + $0xd8] sm:$0xff]  ;;  %v12808_v27 = vld [vmem:[#allocation8_spill] sm:$0xff] }
 0x3cf   : > { %9350 = vmatprep.subr.bf16.mxu1 %v10414_v48 }
 0x3d2   : > { %9351 = vmatpush3.bf16.msra.mxu1 %v10414_v48 }
 0x3d3   : > { %9400 = vmatprep.subr.bf16.mxu1 %v10415_v6 }
 0x3d5   : > { %9305 = vmatmul.mubr.bf16.gmra.mrb[32].mxu1 %v11356_v3  ;;  %v4789_v3 = vsel %vm1684_vm1, %v4787_v55, %v11391_v60 }
 0x3d6   : > { %9308 = vmatprep.mubr.bf16.mxu1 %v11359_v59  ;;  %v10416_v59 = vld [vmem:[%s12742_s3 + $0x208] sm:$0xff]  }
 0x3dd   : > { %9309 = vmatmul.mubr.bf16.gmra.mrb[36].mxu1 %v11362_v46  ;;  %v10418_v46 = vld [vmem:[%s12742_s3 + $0x218] sm:$0xff]  }
 0x3de   : > { %9312 = vmatprep.mubr.bf16.mxu1 %v11365_v44  ;;  %v10419_v44 = vld [vmem:[%s12742_s3 + $0x220] sm:$0xff]  }
 0x3e5   : > { %9313 = vmatmul.mubr.bf16.gmra.mrb[40].mxu1 %v11368_v5  ;;  %v10420_v5 = vld [vmem:[%s12742_s3 + $0x228] sm:$0xff]  }
 0x3e6   : > { %9316 = vmatprep.mubr.bf16.mxu1 %v11371_v7  ;;  %v10421_v7 = vld [vmem:[%s12742_s3 + $0x230] sm:$0xff]  }
 0x3ed   : > { %9317 = vmatmul.mubr.bf16.gmra.mrb[44].mxu1 %v11374_v9  ;;  %v10422_v9 = vld [vmem:[%s12742_s3 + $0x238] sm:$0xff]  }
 0x3ee   : > { %9320 = vmatprep.mubr.bf16.mxu1 %v11377_v41  ;;  %v10423_v41 = vld [vmem:[%s12744_s5 + $0x40] sm:$0xff]  }
 0x3f5   : > { %9321 = vmatmul.mubr.bf16.gmra.mrb[0].mxu1 %v11380_v38  ;;  %v10518_v38 = vmov 0.0  }
 0x3f6   : > { %9324 = vmatprep.mubr.bf16.mxu1 %v11503_v14  ;;  %9464 = vmatprep.subr.bf16.mxu0 %v10518_v38 }
 0x3f7   : > { %9465 = vmatpush3.bf16.msra.mxu0 %v10423_v41  ;;  %9480 = vmatprep.mubr.msk.bf16.mxu0 %vm10519_vm3, %v10518_v38 }
 0x3f8   : > { %9466 = vmatprep.subr.bf16.mxu0 %v10518_v38 }
 0x3fd   : > { %9325 = vmatmul.mubr.bf16.gmra.mrb[4].mxu1 %v11506_v45  ;;  %v5182_v45 = vld [vmem:[#allocation2 + $0xe0] sm:$0x3] }
 0x3fe   : > { %9328 = vmatprep.mubr.bf16.mxu1 %v11517_v13 }
 0x405   : > { %9329 = vmatmul.mubr.bf16.gmra.mrb[8].mxu1 %v11520_v57  ;;  %v10417_v57 = vld [vmem:[%s12742_s3 + $0x210] sm:$0xff]  }
 0x406   : > { %9332 = vmatprep.mubr.bf16.mxu1 %v11723_v0 }
 0x40d   : > { %9333 = vmatmul.mubr.bf16.gmra.mrb[12].mxu1 %v11726_v53 }
 0x40e   : > { %9352 = vmatprep.mubr.bf16.mxu1 %v4789_v3 }
 0x415   : > { %9353 = vmatmul.mubr.bf16.vlgmr.msra.gmra.mrb[16].mxu1 %v11409_v39 }
 0x416   : > { %9356 = vmatprep.mubr.bf16.mxu1 %v11413_v1  ;;  %9401 = vmatpush3.bf16.msra.mxu1 %v10415_v6  ;;  %v12797_v1 = vld [vmem:[#allocation37_spill] sm:$0xff] }
 0x417   : > { %9402 = vmatprep.subr.bf16.mxu1 %v10416_v59 }
 0x41a   : > { %9403 = vmatpush3.bf16.msra.mxu1 %v10416_v59 }
 0x41b   : > { %9404 = vmatprep.subr.bf16.mxu1 %v10417_v57 }
 0x41d   : > { %9357 = vmatmul.mubr.bf16.gmra.mrb[20].mxu1 %v11425_v20  ;;  %v12798_v20 = vld [vmem:[#allocation38_spill] sm:$0xff] }
 0x41e   : > { %9360 = vmatprep.mubr.bf16.mxu1 %v11429_v30  ;;  %9405 = vmatpush3.bf16.msra.mxu1 %v10417_v57  ;;  %v12799_v30 = vld [vmem:[#allocation39_spill] sm:$0xff]  ;;  %v12810_v57 = vld [vmem:[#allocation10_spill] sm:$0xff] }
 0x41f   : > { %9406 = vmatprep.subr.bf16.mxu1 %v10418_v46 }
 0x422   : > { %9407 = vmatpush3.bf16.msra.mxu1 %v10418_v46 }
 0x423   : > { %9408 = vmatprep.subr.bf16.mxu1 %v10419_v44 }
 0x425   : > { %9361 = vmatmul.mubr.bf16.gmra.mrb[24].mxu1 %v11441_v18  ;;  %v12800_v18 = vld [vmem:[#allocation40_spill] sm:$0xff] }
 0x426   : > { %9364 = vmatprep.mubr.bf16.mxu1 %v11445_v4  ;;  %9409 = vmatpush3.bf16.msra.mxu1 %v10419_v44  ;;  %v12801_v4 = vld [vmem:[#allocation41_spill] sm:$0xff] }
 0x427   : > { %9410 = vmatprep.subr.bf16.mxu1 %v10420_v5 }
 0x42a   : > { %9411 = vmatpush3.bf16.msra.mxu1 %v10420_v5 }
 0x42b   : > { %9412 = vmatprep.subr.bf16.mxu1 %v10421_v7 }
 0x42d   : > { %9365 = vmatmul.mubr.bf16.gmra.mrb[28].mxu1 %v11457_v22  ;;  %v12802_v22 = vld [vmem:[#allocation42_spill] sm:$0xff] }
 0x42e   : > { %9368 = vmatprep.mubr.bf16.mxu1 %v11461_v28  ;;  %9413 = vmatpush3.bf16.msra.mxu1 %v10421_v7  ;;  %v12803_v28 = vld [vmem:[#allocation43_spill] sm:$0xff] }
 0x42f   : > { %9414 = vmatprep.subr.bf16.mxu1 %v10422_v9 }
 0x432   : > { %9415 = vmatpush3.bf16.msra.mxu1 %v10422_v9  ;;  %v12811_v9 = vld [vmem:[#allocation11_spill] sm:$0xff] }
 0x435   : > { %9369 = vmatmul.mubr.bf16.gmra.mrb[32].mxu1 %v11467_v36  ;;  %v5181_v36 = vld [vmem:[#allocation2 + $0x20] sm:$0xfc] }
 0x436   : > { %9372 = vmatprep.mubr.bf16.mxu1 %v11471_v2  ;;  %v5202_v60 = vrot.slane %v5181_v36, 2  ;;  %v5247_v2 = vrot.slane %v11726_v53, 2 }
 0x43d   : > { %9373 = vmatmul.mubr.bf16.gmra.mrb[36].mxu1 %v11477_v51  ;;  %v4744_v51 = vld [vmem:[#allocation2 + $0xe0] sm:$0x1] }
 0x43e   : > { %9376 = vmatprep.mubr.bf16.mxu1 %v11481_v37  ;;  %v10424_v37 = vld [vmem:[%s12744_s5 + $0x48] sm:$0xff]  }
 0x43f   : > { %9467 = vmatpush3.bf16.msra.mxu0 %v10424_v37 }
 0x440   : > { %9468 = vmatprep.subr.bf16.mxu0 %v10518_v38 }
 0x445   : > { %9377 = vmatmul.mubr.bf16.gmra.mrb[40].mxu1 %v11487_v17 }
 0x446   : > { %9380 = vmatprep.mubr.bf16.mxu1 %v11491_v26 }
 0x44d   : > { %9381 = vmatmul.mubr.bf16.gmra.mrb[44].mxu1 %v11497_v11  ;;  %v4832_v11 = vrot.slane %v11726_v53, 1 }
 0x44e   : > { %9384 = vmatprep.mubr.bf16.mxu1 %v11501_v56  ;;  %v4830_v56 = vrot.slane %v11723_v0, 1 }
 0x450   : > { %v4831_v26 = vsel %vm1684_vm1, %v11524_v50, %v4830_v56  ;;  %v4833_v17 = vsel %vm1684_vm1, %v4830_v56, %v4832_v11  ;;  %v12796_v50 = vld [vmem:[#allocation36_spill] sm:$0xff] }
 0x455   : > { %9385 = vmatmul.mubr.bf16.gmra.mrb[0].mxu1 %v11511_v61  ;;  %v4834_v61 = vrot.slane %v4744_v51, 1 }
 0x456   : > { %9388 = vmatprep.mubr.bf16.mxu1 %v11515_v62  ;;  %v5249_v62 = vrot.slane %v5182_v45, 2 }
 0x457   : > { %v4835_v39 = vsel %vm1684_vm1, %v4832_v11, %v4834_v61 }
 0x458   : > { %v5250_v13 = vsel %vm2725_vm2, %v5247_v2, %v5249_v62  ;;  %v12814_v62 = vld [vmem:[#allocation14_spill] sm:$0xff] }
 0x45d   : > { %9389 = vmatmul.mubr.bf16.gmra.mrb[4].mxu1 %v11527_v49  ;;  %v5204_v49 = vsel %vm2725_vm2, %v5202_v60, %v11541_v54  ;;  %v10427_v54 = vld [vmem:[%s12744_s5 + $0x60] sm:$0xff]  }
 0x45e   : > { %9392 = vmatprep.mubr.bf16.mxu1 %v11532_v10  ;;  %v10426_v10 = vld [vmem:[%s12744_s5 + $0x58] sm:$0xff]  }
 0x465   : > { %9393 = vmatmul.mubr.bf16.gmra.mrb[8].mxu1 %v4831_v26 }
 0x466   : > { %9396 = vmatprep.mubr.bf16.mxu1 %v4833_v17 }
 0x46d   : > { %9397 = vmatmul.mubr.bf16.gmra.mrb[12].mxu1 %v4835_v39 }
 0x46e   : > { %9416 = vmatprep.mubr.bf16.mxu1 %v5204_v49 }
 0x475   : > { %9417 = vmatmul.mubr.bf16.vlgmr.msra.gmra.mrb[16].mxu1 %v11560_v47  ;;  %v10428_v47 = vld [vmem:[%s12744_s5 + $0x68] sm:$0xff]  }
 0x476   : > { %9420 = vmatprep.mubr.bf16.mxu1 %v11564_v32  ;;  %v10429_v32 = vld [vmem:[%s12744_s5 + $0x70] sm:$0xff]  }
 0x47d   : > { %9421 = vmatmul.mubr.bf16.gmra.mrb[20].mxu1 %v11576_v58  ;;  %v10430_v58 = vld [vmem:[%s12744_s5 + $0x78] sm:$0xff]  }
 0x47e   : > { %9424 = vmatprep.mubr.bf16.mxu1 %v11580_v34 }
 0x485   : > { %9425 = vmatmul.mubr.bf16.gmra.mrb[24].mxu1 %v11592_v12  ;;  %v12804_v12 = vld [vmem:[#allocation4_spill] sm:$0xff] }
 0x486   : > { %9428 = vmatprep.mubr.bf16.mxu1 %v11596_v42 }
 0x48d   : > { %9429 = vmatmul.mubr.bf16.gmra.mrb[28].mxu1 %v11605_v8  ;;  %v12805_v8 = vld [vmem:[#allocation5_spill] sm:$0xff] }
 0x48e   : > { %9432 = vmatprep.mubr.bf16.mxu1 %v11609_v33 }
 0x495   : > { %9433 = vmatmul.mubr.bf16.gmra.mrb[32].mxu1 %v11615_v25  ;;  %v5245_v25 = vrot.slane %v11723_v0, 2 }
 0x496   : > { %9436 = vmatprep.mubr.bf16.mxu1 %v12796_v50 }
 0x497   : > { %v5246_v14 = vsel %vm2725_vm2, %v11664_v29, %v5245_v25  ;;  %v12806_v29 = vld [vmem:[#allocation6_spill] sm:$0xff] }
 0x49d   : > { %9437 = vmatmul.mubr.bf16.gmra.mrb[36].mxu1 %v12797_v1 }
 0x49e   : > { %9440 = vmatprep.mubr.bf16.mxu1 %v12798_v20 }
 0x4a5   : > { %9441 = vmatmul.mubr.bf16.gmra.mrb[40].mxu1 %v12799_v30  ;;  %v12812_v30 = vld [vmem:[#allocation12_spill] sm:$0xff] }
 0x4a6   : > { %9444 = vmatprep.mubr.bf16.mxu1 %v12800_v18 }
 0x4ad   : > { %9445 = vmatmul.mubr.bf16.gmra.mrb[44].mxu1 %v11645_v23  ;;  %v5248_v23 = vsel %vm2725_vm2, %v5245_v25, %v5247_v2  ;;  %v12813_v25 = vld [vmem:[#allocation13_spill] sm:$0xff] }
 0x4ae   : > { %9448 = vmatprep.mubr.bf16.mxu1 %v12801_v4 }
 0x4b5   : > { %9449 = vmatmul.mubr.bf16.gmra.mrb[0].mxu1 %v12802_v22 }
 0x4b6   : > { %9452 = vmatprep.mubr.bf16.mxu1 %v12803_v28 }
 0x4bd   : > { %9453 = vmatmul.mubr.bf16.gmra.mrb[4].mxu1 %v11667_v24  ;;  %v10425_v24 = vld [vmem:[%s12744_s5 + $0x50] sm:$0xff]  }
 0x4be   : > { %9456 = vmatprep.mubr.bf16.mxu1 %v11672_v40  ;;  %9469 = vmatpush3.bf16.msra.mxu0 %v10425_v24 }
 0x4bf   : > { %9470 = vmatprep.subr.bf16.mxu0 %v10518_v38 }
 0x4c2   : > { %9471 = vmatpush3.bf16.msra.mxu0 %v10426_v10 }
 0x4c3   : > { %9472 = vmatprep.subr.bf16.mxu0 %v10518_v38 }
 0x4c5   : > { %9457 = vmatmul.mubr.bf16.gmra.mrb[8].mxu1 %v5246_v14 }
 0x4c6   : > { %9460 = vmatprep.mubr.bf16.mxu1 %v5248_v23  ;;  %9473 = vmatpush3.bf16.msra.mxu0 %v10427_v54  ;;  %v12815_v54 = vld [vmem:[#allocation15_spill] sm:$0xff] }
 0x4c7   : > { %9474 = vmatprep.subr.bf16.mxu0 %v10518_v38 }
 0x4ca   : > { %9475 = vmatpush3.bf16.msra.mxu0 %v10428_v47 }
 0x4cb   : > { %9476 = vmatprep.subr.bf16.mxu0 %v10518_v38 }
 0x4cd   : > { %9461 = vmatmul.mubr.bf16.gmra.mrb[12].mxu1 %v5250_v13 }
 0x4ce   : > { %9477 = vmatpush3.bf16.msra.mxu0 %v10429_v32 }
 0x4cf   : > { %9478 = vmatprep.subr.bf16.mxu0 %v10518_v38 }
 0x4d2   : > { %9479 = vmatpush3.bf16.msra.mxu0 %v10430_v58 }
 0x4d3   : > { %9508 = vmatprep.subr.bf16.mxu0 %v10518_v38 }
 0x548   : > { %v9418_v34 = vpop.f32.mrb[16].mxu1 }
 0x549   : > { %v9894_v42 = vadd.f32 %v9418_v34, %v12804_v12  ;;  %v5357_v16 = vpop.f32.mrb[17].mxu1 }
 0x54a   : > { %v9895_v33 = vadd.f32 %v5357_v16, %v12805_v8  ;;  %v9419_v31 = vpop.f32.mrb[18].mxu1 }
 0x54b   : > { %v9896_v40 = vadd.f32 %v9419_v31, %v12806_v29  ;;  %v5360_v43 = vpop.f32.mrb[19].mxu1  ;;  %v5605_v19 = vadd.f32 %v9894_v42, %v11848_v21 }
 0x54c   : > { %v9897_v15 = vadd.f32 %v5360_v43, %v12807_v35  ;;  %v5603_v0 = vadd.f32 %v9895_v33, %v11848_v21  ;;  %v12816_v35 = vld [vmem:[#allocation16_spill] sm:$0xff] }
 0x54d   : > { %v5606_v3 = vadd.f32 %v9896_v40, %v11848_v21  ;;  %v5653_v37 = vmax.f32 %v5605_v19, 0.0 }
 0x54e   : > { %v5604_v5 = vadd.f32 %v9897_v15, %v11848_v21  ;;  %v5651_v26 = vmax.f32 %v5603_v0, 0.0 }
 0x54f   : > { %v5654_v36 = vmax.f32 %v5606_v3, 0.0 }
 0x550   : > { %v9422_v63 = vpop.f32.mrb[20].mxu1  ;;  %v5652_v39 = vmax.f32 %v5604_v5, 0.0 }
 0x551   : > { %v9898_v48 = vadd.f32 %v9422_v63, %v12808_v27  ;;  %v5373_v6 = vpop.f32.mrb[21].mxu1  ;;  %v12817_v27 = vld [vmem:[#allocation17_spill] sm:$0xff] }
 0x552   : > { %v9899_v55 = vadd.f32 %v5373_v6, %v12809_v52  ;;  %v9423_v53 = vpop.f32.mrb[22].mxu1 }
 0x553   : > { %v5609_v59 = vadd.f32 %v9898_v48, %v11848_v21  ;;  %v9900_v46 = vadd.f32 %v9423_v53, %v12810_v57  ;;  %v5376_v44 = vpop.f32.mrb[23].mxu1 }
 0x554   : > { %v5607_v7 = vadd.f32 %v9899_v55, %v11848_v21  ;;  %v9901_v41 = vadd.f32 %v5376_v44, %v12811_v9  ;;  %v12818_v55 = vld [vmem:[#allocation18_spill] sm:$0xff] }
 0x555   : > { %v5657_v56 = vmax.f32 %v5609_v59, 0.0  ;;  %v5610_v11 = vadd.f32 %v9900_v46, %v11848_v21  ;;  %v12819_v46 = vld [vmem:[#allocation19_spill] sm:$0xff] }
 0x556   : > { %v5655_v17 = vmax.f32 %v5607_v7, 0.0  ;;  %v5608_v51 = vadd.f32 %v9901_v41, %v11848_v21 }
 0x557   : > { %v5701_v61 = vmax.f32 %v5653_v37, %v5657_v56  ;;  %v5658_v60 = vmax.f32 %v5610_v11, 0.0 }
 0x558   : > { %v5699_v49 = vmax.f32 %v5651_v26, %v5655_v17  ;;  %v5656_v50 = vmax.f32 %v5608_v51, 0.0  ;;  %v9426_v1 = vpop.f32.mrb[24].mxu1 }
 0x559   : > { %v5702_v20 = vmax.f32 %v5654_v36, %v5658_v60  ;;  %v9902_v18 = vadd.f32 %v9426_v1, %v12812_v30  ;;  %v5389_v4 = vpop.f32.mrb[25].mxu1  ;;  %v5751_v23 = vrot.slane %v5701_v61, 2 }
 0x55a   : > { %v5748_v22 = vrot.slane %v5699_v49, 2  ;;  %v5700_v28 = vmax.f32 %v5652_v39, %v5656_v50  ;;  %v9903_v2 = vadd.f32 %v5389_v4, %v12813_v25  ;;  %v9427_v14 = vpop.f32.mrb[26].mxu1 }
 0x55b   : > { %v5753_v45 = vrot.slane %v5702_v20, 2  ;;  %v9904_v13 = vadd.f32 %v9427_v14, %v12814_v62  ;;  %v5392_v24 = vpop.f32.mrb[27].mxu1  ;;  %v5613_v43 = vadd.f32 %v9902_v18, %v11848_v21  ;;  %v12821_v18 = vld [vmem:[#allocation21_spill] sm:$0xff]  ;;  %v12822_v14 = vld [vmem:[#allocation22_spill] sm:$0xff] }
 0x55c   : > { %v5749_v10 = vrot.slane %v5700_v28, 2  ;;  %v9905_v47 = vadd.f32 %v5392_v24, %v12815_v54  ;;  %v5611_v19 = vadd.f32 %v9903_v2, %v11848_v21 }
 0x55d   : > { %v5754_v32 = vsel %vm2725_vm2, %v5751_v23, %v5753_v45  ;;  %v5820_v58 = vsel %vm2725_vm2, %v5753_v45, %v5748_v22  ;;  %v5614_v0 = vadd.f32 %v9904_v13, %v11848_v21  ;;  %v5661_v5 = vmax.f32 %v5613_v43, 0.0  ;;  %v12823_v13 = vld [vmem:[#allocation23_spill] sm:$0xff] }
 0x55e   : > { %v5828_v34 = vmax.f32 %v5701_v61, %v5754_v32  ;;  %v5829_v12 = vmax.f32 %v5702_v20, %v5820_v58  ;;  %v5750_v42 = vsel %vm2725_vm2, %v5748_v22, %v5749_v10  ;;  %v5752_v16 = vsel %vm2725_vm2, %v5749_v10, %v5751_v23 }
 0x55f   : > { %v5826_v8 = vmax.f32 %v5699_v49, %v5750_v42  ;;  %v5827_v33 = vmax.f32 %v5700_v28, %v5752_v16  ;;  %v5612_v59 = vadd.f32 %v9905_v47, %v11848_v21  ;;  %v5659_v41 = vmax.f32 %v5611_v19, 0.0  ;;  %v12820_v49 = vld [vmem:[#allocation20_spill] sm:$0xff]  ;;  %v10431_v16 = vld [vmem:[%s12744_s5] sm:$0xff]  }
 0x560   : > { %v11870_v31 = vpack.c.bf16 %v5829_v12, %v5828_v34  ;;  %v9430_v29 = vpop.f32.mrb[28].mxu1  ;;  %v5662_v11 = vmax.f32 %v5614_v0, 0.0  ;;  %v12824_v19 = vld [vmem:[#allocation24_spill] sm:$0xff]  ;;  %v12825_v0 = vld [vmem:[#allocation25_spill] sm:$0xff] }
 0x561   : > { %v11872_v40 = vpack.c.bf16 %v5827_v33, %v5826_v8  ;;  %v9906_v15 = vadd.f32 %v9430_v29, %v12816_v35  ;;  %v5405_v63 = vpop.f32.mrb[29].mxu1  ;;  %v5660_v51 = vmax.f32 %v5612_v59, 0.0 }
 0x562   : > { %v9907_v48 = vadd.f32 %v5405_v63, %v12817_v27  ;;  %v9431_v6 = vpop.f32.mrb[30].mxu1  ;;  %v5925_v32 = vrot.slane %v11870_v31, 2 }
 0x563   : > { %5862 = vst [vmem:[#allocation3] sm:$0xff] %v11872_v40  ;;  %v5617_v52 = vadd.f32 %v9906_v15, %v11848_v21  ;;  %v9908_v53 = vadd.f32 %v9431_v6, %v12818_v55  ;;  %v5408_v3 = vpop.f32.mrb[31].mxu1 }
 0x564   : > { %v5615_v57 = vadd.f32 %v9907_v48, %v11848_v21  ;;  %v9909_v44 = vadd.f32 %v5408_v3, %v12819_v46 }
 0x565   : > { %v5665_v7 = vmax.f32 %v5617_v52, 0.0  ;;  %v5618_v9 = vadd.f32 %v9908_v53, %v11848_v21  ;;  %v10432_v53 = vld [vmem:[%s12744_s5 + $0x8] sm:$0xff]  }
 0x566   : > { %v5663_v37 = vmax.f32 %v5615_v57, 0.0  ;;  %v5616_v56 = vadd.f32 %v9909_v44, %v11848_v21  ;;  %v12826_v57 = vld [vmem:[#allocation26_spill] sm:$0xff] }
 0x567   : > { %v5705_v26 = vmax.f32 %v5661_v5, %v5665_v7  ;;  %v5666_v17 = vmax.f32 %v5618_v9, 0.0 }
 0x568   : > { %v5703_v36 = vmax.f32 %v5659_v41, %v5663_v37  ;;  %v5664_v61 = vmax.f32 %v5616_v56, 0.0  ;;  %v9434_v60 = vpop.f32.mrb[32].mxu1  ;;  %v12827_v41 = vld [vmem:[#allocation27_spill] sm:$0xff] }
 0x569   : > { %v5706_v39 = vmax.f32 %v5662_v11, %v5666_v17  ;;  %v9910_v50 = vadd.f32 %v9434_v60, %v12820_v49  ;;  %v5421_v1 = vpop.f32.mrb[33].mxu1  ;;  %v5758_v25 = vrot.slane %v5705_v26, 2  ;;  %v10433_v60 = vld [vmem:[%s12744_s5 + $0x10] sm:$0xff]  }
 0x56a   : > { %v5755_v20 = vrot.slane %v5703_v36, 2  ;;  %v5704_v30 = vmax.f32 %v5660_v51, %v5664_v61  ;;  %v9911_v4 = vadd.f32 %v5421_v1, %v12821_v18  ;;  %v9435_v22 = vpop.f32.mrb[34].mxu1  ;;  %v5897_v28 = vld [vmem:[#allocation3] sm:$0xfc] }
 0x56b   : > { %v5760_v2 = vrot.slane %v5706_v39, 2  ;;  %v9912_v23 = vadd.f32 %v9435_v22, %v12822_v14  ;;  %v5424_v45 = vpop.f32.mrb[35].mxu1  ;;  %v5924_v10 = vrot.slane %v5897_v28, 2  ;;  %v5621_v63 = vadd.f32 %v9910_v50, %v11848_v21  ;;  %v12828_v22 = vld [vmem:[#allocation28_spill] sm:$0xff] }
 0x56c   : > { %v5756_v62 = vrot.slane %v5704_v30, 2  ;;  %v9913_v24 = vadd.f32 %v5424_v45, %v12823_v13  ;;  %v5619_v6 = vadd.f32 %v9911_v4, %v11848_v21  ;;  %v10434_v13 = vld [vmem:[%s12744_s5 + $0x18] sm:$0xff]  }
 0x56d   : > { %v5761_v54 = vsel %vm2725_vm2, %v5758_v25, %v5760_v2  ;;  %v5821_v47 = vsel %vm2725_vm2, %v5760_v2, %v5755_v20  ;;  %v5926_v43 = vsel %vm2725_vm2, %v5924_v10, %v5925_v32  ;;  %v5622_v3 = vadd.f32 %v9912_v23, %v11848_v21  ;;  %v12829_v23 = vld [vmem:[#allocation29_spill] sm:$0xff] }
 0x56e   : > { %v5832_v58 = vmax.f32 %v5705_v26, %v5761_v54  ;;  %v5833_v34 = vmax.f32 %v5706_v39, %v5821_v47  ;;  %v5757_v12 = vsel %vm2725_vm2, %v5755_v20, %v5756_v62  ;;  %v5759_v42 = vsel %vm2725_vm2, %v5756_v62, %v5758_v25  ;;  %9481 = vmatmul.mubr.bf16.vlgmr.msra.gmra.mrb[152].mxu0 %v5926_v43  ;;  %v12830_v54 = vld [vmem:[#allocation30_spill] sm:$0xff] }
 0x56f   : > { %v5830_v8 = vmax.f32 %v5703_v36, %v5757_v12  ;;  %v5831_v33 = vmax.f32 %v5704_v30, %v5759_v42  ;;  %9509 = vmatpush3.bf16.msra.mxu0 %v10431_v16  ;;  %9484 = vmatprep.mubr.msk.bf16.mxu0 %vm10519_vm3, %v10518_v38  ;;  %v5620_v7 = vadd.f32 %v9913_v24, %v11848_v21  ;;  %v5669_v56 = vmax.f32 %v5621_v63, 0.0 }
 0x570   : > { %v11899_v29 = vpack.c.bf16 %v5833_v34, %v5832_v58  ;;  %v9438_v35 = vpop.f32.mrb[36].mxu1  ;;  %9510 = vmatprep.subr.bf16.mxu0 %v10518_v38  ;;  %v5667_v17 = vmax.f32 %v5619_v6, 0.0  ;;  %v5670_v39 = vmax.f32 %v5622_v3, 0.0  ;;  %v12831_v34 = vld [vmem:[#allocation31_spill] sm:$0xff]  ;;  %v12832_v3 = vld [vmem:[#allocation32_spill] sm:$0xff] }
 0x571   : > { %v11902_v15 = vpack.c.bf16 %v5831_v33, %v5830_v8  ;;  %v9914_v27 = vadd.f32 %v9438_v35, %v12824_v19  ;;  %v5437_v48 = vpop.f32.mrb[37].mxu1  ;;  %v5668_v1 = vmax.f32 %v5620_v7, 0.0  ;;  %v10435_v19 = vld [vmem:[%s12744_s5 + $0x20] sm:$0xff]  }
 0x572   : > { %v9915_v52 = vadd.f32 %v5437_v48, %v12825_v0  ;;  %v9439_v55 = vpop.f32.mrb[38].mxu1  ;;  %v11940_v42 = vrot.slane %v11899_v29, 2 }
 0x573   : > { %5864 = vst [vmem:[#allocation3 + $0x10] sm:$0xff] %v11902_v15  ;;  %v5625_v59 = vadd.f32 %v9914_v27, %v11848_v21  ;;  %v9916_v46 = vadd.f32 %v9439_v55, %v12826_v57  ;;  %v5440_v44 = vpop.f32.mrb[39].mxu1  ;;  %v5927_v5 = vrot.slane %v11902_v15, 2  ;;  %9511 = vmatpush3.bf16.msra.mxu0 %v10432_v53 }
 0x574   : > { %v5623_v9 = vadd.f32 %v9915_v52, %v11848_v21  ;;  %v9917_v37 = vadd.f32 %v5440_v44, %v12827_v41  ;;  %9512 = vmatprep.subr.bf16.mxu0 %v10518_v38  ;;  %v12833_v44 = vld [vmem:[#allocation33_spill] sm:$0xff] }
 0x575   : > { %v5673_v11 = vmax.f32 %v5625_v59, 0.0  ;;  %v5626_v26 = vadd.f32 %v9916_v46, %v11848_v21  ;;  %v5928_v61 = vsel %vm2725_vm2, %v5925_v32, %v5927_v5  ;;  %v5930_v52 = vsel %vm2725_vm2, %v5927_v5, %v11940_v42  ;;  %v10436_v5 = vld [vmem:[%s12744_s5 + $0x28] sm:$0xff]  }
 0x576   : > { %v5671_v51 = vmax.f32 %v5623_v9, 0.0  ;;  %v5624_v36 = vadd.f32 %v9917_v37, %v11848_v21  ;;  %9485 = vmatmul.mubr.bf16.gmra.mrb[156].mxu0 %v5928_v61  ;;  %v12835_v61 = vld [vmem:[#allocation35_spill] sm:$0xff] }
 0x577   : > { %v5709_v49 = vmax.f32 %v5669_v56, %v5673_v11  ;;  %v5674_v50 = vmax.f32 %v5626_v26, 0.0  ;;  %9488 = vmatprep.mubr.msk.bf16.mxu0 %vm10519_vm3, %v10518_v38  ;;  %9513 = vmatpush3.bf16.msra.mxu0 %v10433_v60  ;;  %v12834_v56 = vld [vmem:[#allocation34_spill] sm:$0xff] }
 0x578   : > { %v5707_v20 = vmax.f32 %v5667_v17, %v5671_v51  ;;  %v5672_v30 = vmax.f32 %v5624_v36, 0.0  ;;  %v9442_v18 = vpop.f32.mrb[40].mxu1  ;;  %9514 = vmatprep.subr.bf16.mxu0 %v10518_v38 }
 0x579   : > { %v5710_v4 = vmax.f32 %v5670_v39, %v5674_v50  ;;  %v9918_v28 = vadd.f32 %v9442_v18, %v12828_v22  ;;  %v5453_v25 = vpop.f32.mrb[41].mxu1  ;;  %v5765_v24 = vrot.slane %v5709_v49, 2 }
 0x57a   : > { %v5762_v2 = vrot.slane %v5707_v20, 2  ;;  %v5708_v14 = vmax.f32 %v5668_v1, %v5672_v30  ;;  %v9919_v45 = vadd.f32 %v5453_v25, %v12829_v23  ;;  %v9443_v62 = vpop.f32.mrb[42].mxu1 }
 0x57b   : > { %v5767_v10 = vrot.slane %v5710_v4, 2  ;;  %v9920_v47 = vadd.f32 %v9443_v62, %v12830_v54  ;;  %v5456_v32 = vpop.f32.mrb[43].mxu1  ;;  %9515 = vmatpush3.bf16.msra.mxu0 %v10434_v13  ;;  %v5629_v53 = vadd.f32 %v9918_v28, %v11848_v21 }
 0x57c   : > { %v5763_v58 = vrot.slane %v5708_v14, 2  ;;  %v9921_v12 = vadd.f32 %v5456_v32, %v12831_v34  ;;  %9516 = vmatprep.subr.bf16.mxu0 %v10518_v38  ;;  %v5627_v46 = vadd.f32 %v9919_v45, %v11848_v21 }
 0x57d   : > { %v5768_v16 = vsel %vm2725_vm2, %v5765_v24, %v5767_v10  ;;  %v5822_v8 = vsel %vm2725_vm2, %v5767_v10, %v5762_v2  ;;  %v5630_v41 = vadd.f32 %v9920_v47, %v11848_v21  ;;  %v5677_v39 = vmax.f32 %v5629_v53, 0.0  ;;  %v10438_v47 = vld [vmem:[%s12744_s5 + $0x38] sm:$0xff]  }
 0x57e   : > { %v5836_v33 = vmax.f32 %v5709_v49, %v5768_v16  ;;  %v5837_v43 = vmax.f32 %v5710_v4, %v5822_v8  ;;  %v5764_v35 = vsel %vm2725_vm2, %v5762_v2, %v5763_v58  ;;  %v5766_v63 = vsel %vm2725_vm2, %v5763_v58, %v5765_v24  ;;  %9489 = vmatmul.mubr.bf16.gmra.mrb[160].mxu0 %v5930_v52  ;;  %v10437_v4 = vld [vmem:[%s12744_s5 + $0x30] sm:$0xff]  }
 0x57f   : > { %v5834_v27 = vmax.f32 %v5707_v20, %v5764_v35  ;;  %v5835_v48 = vmax.f32 %v5708_v14, %v5766_v63  ;;  %9492 = vmatprep.mubr.msk.bf16.mxu0 %vm10519_vm3, %v10518_v38  ;;  %9517 = vmatpush3.bf16.msra.mxu0 %v10435_v19  ;;  %v5628_v51 = vadd.f32 %v9921_v12, %v11848_v21  ;;  %v5675_v1 = vmax.f32 %v5627_v46, 0.0 }
 0x580   : > { %v11950_v6 = vpack.c.bf16 %v5837_v43, %v5836_v33  ;;  %v9446_v0 = vpop.f32.mrb[44].mxu1  ;;  %9518 = vmatprep.subr.bf16.mxu0 %v10518_v38  ;;  %v5678_v22 = vmax.f32 %v5630_v41, 0.0 }
 0x581   : > { %v11954_v55 = vpack.c.bf16 %v5835_v48, %v5834_v27  ;;  %v9922_v59 = vadd.f32 %v9446_v0, %v12832_v3  ;;  %v5469_v57 = vpop.f32.mrb[45].mxu1  ;;  %v5676_v2 = vmax.f32 %v5628_v51, 0.0 }
 0x582   : > { %5867 = vst [vmem:[#allocation3 + $0x28] sm:$0xff] %v11950_v6  ;;  %v9923_v7 = vadd.f32 %v5469_v57, %v12833_v44  ;;  %v9447_v9 = vpop.f32.mrb[46].mxu1  ;;  %v5933_v16 = vrot.slane %v11950_v6, 2 }
 0x583   : > { %5866 = vst [vmem:[#allocation3 + $0x20] sm:$0xff] %v11954_v55  ;;  %v5633_v37 = vadd.f32 %v9922_v59, %v11848_v21  ;;  %v9924_v11 = vadd.f32 %v9447_v9, %v12834_v56  ;;  %v5472_v26 = vpop.f32.mrb[47].mxu1  ;;  %v5931_v17 = vrot.slane %v11954_v55, 2  ;;  %9519 = vmatpush3.bf16.msra.mxu0 %v10436_v5 }
 0x584   : > { %v5631_v36 = vadd.f32 %v9923_v7, %v11848_v21  ;;  %v9925_v60 = vadd.f32 %v5472_v26, %v12835_v61  ;;  %9520 = vmatprep.subr.bf16.mxu0 %v10518_v38 }
 0x585   : > { %v5681_v49 = vmax.f32 %v5633_v37, 0.0  ;;  %v5634_v50 = vadd.f32 %v9924_v11, %v11848_v21  ;;  %v11979_v18 = vsel %vm2725_vm2, %v11940_v42, %v5931_v17  ;;  %v12003_v59 = vsel %vm2725_vm2, %v5931_v17, %v5933_v16 }
 0x586   : > { %v5679_v20 = vmax.f32 %v5631_v36, 0.0  ;;  %v5632_v30 = vadd.f32 %v9925_v60, %v11848_v21  ;;  %9493 = vmatmul.mubr.bf16.gmra.mrb[164].mxu0 %v11979_v18 }
 0x587   : > { %v5713_v28 = vmax.f32 %v5677_v39, %v5681_v49  ;;  %v5682_v25 = vmax.f32 %v5634_v50, 0.0  ;;  %9496 = vmatprep.mubr.msk.bf16.mxu0 %vm10519_vm3, %v10518_v38  ;;  %9521 = vmatpush3.bf16.msra.mxu0 %v10437_v4 }
 0x588   : > { %v5711_v14 = vmax.f32 %v5675_v1, %v5679_v20  ;;  %v5680_v23 = vmax.f32 %v5632_v30, 0.0  ;;  %v9450_v45 = vpop.f32.mrb[0].mxu1  ;;  %9522 = vmatprep.subr.bf16.mxu0 %v10518_v38 }
 0x589   : > { %v5714_v62 = vmax.f32 %v5678_v22, %v5682_v25  ;;  %v5485_v13 = vpop.f32.mrb[1].mxu1  ;;  %v5772_v32 = vrot.slane %v5713_v28, 2  ;;  %v5637_v0 = vadd.f32 %v9450_v45, %v11848_v21 }
 0x58a   : > { %v5769_v24 = vrot.slane %v5711_v14, 2  ;;  %v5712_v10 = vmax.f32 %v5676_v2, %v5680_v23  ;;  %v9451_v54 = vpop.f32.mrb[2].mxu1  ;;  %v5635_v53 = vadd.f32 %v11848_v21, %v5485_v13 }
 0x58b   : > { %v5774_v58 = vrot.slane %v5714_v62, 2  ;;  %v5488_v34 = vpop.f32.mrb[3].mxu1  ;;  %9523 = vmatpush3.bf16.msra.mxu0 %v10438_v47  ;;  %v5638_v46 = vadd.f32 %v9451_v54, %v11848_v21  ;;  %v5685_v37 = vmax.f32 %v5637_v0, 0.0 }
 0x58c   : > { %v5770_v12 = vrot.slane %v5712_v10, 2  ;;  %9552 = vmatprep.subr.bf16.mxu0 %v10518_v38  ;;  %v5636_v9 = vadd.f32 %v11848_v21, %v5488_v34  ;;  %v5683_v51 = vmax.f32 %v5635_v53, 0.0 }
 0x58d   : > { %v5775_v8 = vsel %vm2725_vm2, %v5772_v32, %v5774_v58  ;;  %v5823_v33 = vsel %vm2725_vm2, %v5774_v58, %v5769_v24  ;;  %v5686_v60 = vmax.f32 %v5638_v46, 0.0 }
 0x58e   : > { %v5840_v43 = vmax.f32 %v5713_v28, %v5775_v8  ;;  %v5841_v35 = vmax.f32 %v5714_v62, %v5823_v33  ;;  %v5771_v63 = vsel %vm2725_vm2, %v5769_v24, %v5770_v12  ;;  %v5773_v19 = vsel %vm2725_vm2, %v5770_v12, %v5772_v32  ;;  %9497 = vmatmul.mubr.bf16.gmra.mrb[168].mxu0 %v12003_v59 }
 0x58f   : > { %v5838_v27 = vmax.f32 %v5711_v14, %v5771_v63  ;;  %v5839_v48 = vmax.f32 %v5712_v10, %v5773_v19  ;;  %9500 = vmatprep.mubr.msk.bf16.mxu0 %vm10519_vm3, %v10518_v38  ;;  %v5684_v50 = vmax.f32 %v5636_v9, 0.0 }
 0x590   : > { %v11999_v52 = vpack.c.bf16 %v5841_v35, %v5840_v43  ;;  %v9454_v3 = vpop.f32.mrb[4].mxu1 }
 0x591   : > { %v12005_v57 = vpack.c.bf16 %v5839_v48, %v5838_v27  ;;  %v5641_v44 = vadd.f32 %v9454_v3, %v11848_v21  ;;  %v5501_v7 = vpop.f32.mrb[5].mxu1 }
 0x592   : > { %5869 = vst [vmem:[#allocation3 + $0x38] sm:$0xff] %v11999_v52  ;;  %v5639_v5 = vadd.f32 %v11848_v21, %v5501_v7  ;;  %v9455_v41 = vpop.f32.mrb[6].mxu1 }
 0x593   : > { %5868 = vst [vmem:[#allocation3 + $0x30] sm:$0xff] %v12005_v57  ;;  %v5689_v56 = vmax.f32 %v5641_v44, 0.0  ;;  %v5642_v11 = vadd.f32 %v9455_v41, %v11848_v21  ;;  %v5504_v26 = vpop.f32.mrb[7].mxu1  ;;  %v12018_v17 = vrot.slane %v12005_v57, 2 }
 0x594   : > { %v5687_v36 = vmax.f32 %v5639_v5, 0.0  ;;  %v5640_v61 = vadd.f32 %v11848_v21, %v5504_v26 }
 0x595   : > { %v5717_v39 = vmax.f32 %v5685_v37, %v5689_v56  ;;  %v5690_v49 = vmax.f32 %v5642_v11, 0.0  ;;  %v12023_v30 = vsel %vm2725_vm2, %v5933_v16, %v12018_v17 }
 0x596   : > { %v5715_v1 = vmax.f32 %v5683_v51, %v5687_v36  ;;  %v5688_v20 = vmax.f32 %v5640_v61, 0.0  ;;  %9501 = vmatmul.mubr.bf16.gmra.mrb[172].mxu0 %v12023_v30 }
 0x597   : > { %v5718_v4 = vmax.f32 %v5686_v60, %v5690_v49  ;;  %v5779_v2 = vrot.slane %v5717_v39, 2  ;;  %9504 = vmatprep.mubr.msk.bf16.mxu0 %vm10519_vm3, %v10518_v38  ;;  %v10439_v49 = vld [vmem:[%s12744_s5 + $0x80] sm:$0xff]  }
 0x598   : > { %v5776_v22 = vrot.slane %v5715_v1, 2  ;;  %v5716_v28 = vmax.f32 %v5684_v50, %v5688_v20  ;;  %v9458_v25 = vpop.f32.mrb[8].mxu1 }
 0x599   : > { %v5781_v14 = vrot.slane %v5718_v4, 2  ;;  %v5517_v23 = vpop.f32.mrb[9].mxu1  ;;  %v5898_v45 = vld [vmem:[#allocation3 + $0x38] sm:$0x3]  ;;  %v5645_v63 = vadd.f32 %v9458_v25, %v11848_v21 }
 0x59a   : > { %v5777_v62 = vrot.slane %v5716_v28, 2  ;;  %v9459_v13 = vpop.f32.mrb[10].mxu1  ;;  %v5937_v24 = vrot.slane %v5898_v45, 2  ;;  %v5643_v19 = vadd.f32 %v11848_v21, %v5517_v23 }
 0x59b   : > { %v5782_v10 = vsel %vm2725_vm2, %v5779_v2, %v5781_v14  ;;  %v5824_v54 = vsel %vm2725_vm2, %v5781_v14, %v5776_v22  ;;  %v5520_v47 = vpop.f32.mrb[11].mxu1  ;;  %v5646_v48 = vadd.f32 %v9459_v13, %v11848_v21  ;;  %v5693_v7 = vmax.f32 %v5645_v63, 0.0 }
 0x59c   : > { %v5844_v32 = vmax.f32 %v5717_v39, %v5782_v10  ;;  %v5845_v58 = vmax.f32 %v5718_v4, %v5824_v54  ;;  %v5778_v34 = vsel %vm2725_vm2, %v5776_v22, %v5777_v62  ;;  %v5780_v12 = vsel %vm2725_vm2, %v5777_v62, %v5779_v2  ;;  %v10441_v10 = vld [vmem:[%s12744_s5 + $0x90] sm:$0xff]  }
 0x59d   : > { %v5842_v16 = vmax.f32 %v5715_v1, %v5778_v34  ;;  %v5843_v8 = vmax.f32 %v5716_v28, %v5780_v12  ;;  %v5938_v43 = vsel %vm2725_vm2, %v12018_v17, %v5937_v24  ;;  %v5644_v3 = vadd.f32 %v11848_v21, %v5520_v47  ;;  %v10442_v47 = vld [vmem:[%s12744_s5 + $0x98] sm:$0xff]   ;;  %v10445_v34 = vld [vmem:[%s12744_s5 + $0xb0] sm:$0xff]  }
 0x59e   : > { %v5859_v33 = vpack.c.bf16 %v5845_v58, %v5844_v32  ;;  %9505 = vmatmul.mubr.bf16.gmra.mrb[176].mxu0 %v5938_v43  ;;  %v5691_v37 = vmax.f32 %v5643_v19, 0.0  ;;  %v5694_v26 = vmax.f32 %v5646_v48, 0.0  ;;  %v10443_v32 = vld [vmem:[%s12744_s5 + $0xa0] sm:$0xff]   ;;  %v10444_v58 = vld [vmem:[%s12744_s5 + $0xa8] sm:$0xff]   ;;  %v10446_v12 = vld [vmem:[%s12744_s5 + $0xb8] sm:$0xff]  }
 0x59f   : > { %v12034_v35 = vpack.c.bf16 %v5843_v8, %v5842_v16  ;;  %9524 = vmatprep.mubr.msk.bf16.mxu0 %vm10519_vm3, %v10518_v38  ;;  %v5692_v61 = vmax.f32 %v5644_v3, 0.0  ;;  %v6220_v16 = vld [vmem:[#allocation3] sm:$0xf0]  ;;  %v10447_v43 = vld [vmem:[%s12744_s5 + $0xc0] sm:$0xff]   ;;  %v10448_v19 = vld [vmem:[%s12744_s5 + $0xc8] sm:$0xff]  }
 0x5a0   : > { %5871 = vst [vmem:[#allocation3 + $0x48] sm:$0xff] %v5859_v33  ;;  %v9462_v27 = vpop.f32.mrb[12].mxu1  ;;  %v6242_v8 = vrot.slane %v6220_v16, 4  ;;  %v6243_v33 = vrot.slane %v11870_v31, 4  ;;  %v10451_v3 = vld [vmem:[%s12744_s5 + $0xe0] sm:$0xff]  }
 0x5a1   : > { %5870 = vst [vmem:[#allocation3 + $0x40] sm:$0xff] %v12034_v35  ;;  %v5649_v0 = vadd.f32 %v9462_v27, %v11848_v21  ;;  %v5533_v53 = vpop.f32.mrb[13].mxu1  ;;  %v6245_v27 = vrot.slane %v11902_v15, 4 }
 0x5a2   : > { %v5647_v46 = vadd.f32 %v11848_v21, %v5533_v53  ;;  %v9463_v44 = vpop.f32.mrb[14].mxu1  ;;  %v6244_v63 = vsel %vm6241_vm4, %v6242_v8, %v6243_v33  ;;  %v12128_v53 = vrot.slane %v11899_v29, 4 }
 0x5a3   : > { %v5697_v9 = vmax.f32 %v5649_v0, 0.0  ;;  %v5650_v5 = vadd.f32 %v9463_v44, %v11848_v21  ;;  %v5536_v41 = vpop.f32.mrb[15].mxu1  ;;  %v6246_v48 = vsel %vm6241_vm4, %v6243_v33, %v6245_v27  ;;  %v10450_v0 = vld [vmem:[%s12744_s5 + $0xd8] sm:$0xff]   ;;  %v10452_v44 = vld [vmem:[%s12744_s5 + $0xe8] sm:$0xff]  }
 0x5a4   : > { %v5695_v56 = vmax.f32 %v5647_v46, 0.0  ;;  %v5648_v11 = vadd.f32 %v11848_v21, %v5536_v41  ;;  %v10440_v21 = vld [vmem:[%s12744_s5 + $0x88] sm:$0xff]   ;;  %v6248_v46 = vsel %vm6241_vm4, %v6245_v27, %v12128_v53  ;;  %v10454_v41 = vld [vmem:[%s12744_s5 + $0xf8] sm:$0xff]   ;;  %v6632_v27 = vrot.slane %v11999_v52, 2 }
 0x5a5   : > { %v5721_v51 = vmax.f32 %v5693_v7, %v5697_v9  ;;  %v5698_v36 = vmax.f32 %v5650_v5, 0.0  ;;  %v6249_v7 = vrot.slane %v11954_v55, 4  ;;  %v10453_v9 = vld [vmem:[%s12744_s5 + $0xf0] sm:$0xff]  }
 0x5a6   : > { %v5719_v60 = vmax.f32 %v5691_v37, %v5695_v56  ;;  %v5696_v39 = vmax.f32 %v5648_v11, 0.0  ;;  %9525 = vmatmul.mubr.bf16.vlgmr.msra.gmra.mrb[180].mxu0 %v11872_v40  ;;  %v6251_v37 = vrot.slane %v11950_v6, 4  ;;  %v12167_v11 = vrot.slane %v12005_v57, 4 }
 0x5a7   : > { %v5722_v50 = vmax.f32 %v5694_v26, %v5698_v36  ;;  %v5786_v4 = vrot.slane %v5721_v51, 2  ;;  %9553 = vmatpush3.bf16.msra.mxu0 %v10439_v49  ;;  %9528 = vmatprep.mubr.msk.bf16.mxu0 %vm10519_vm3, %v10518_v38  ;;  %v12149_v5 = vsel %vm6241_vm4, %v12128_v53, %v6249_v7  ;;  %v10457_v49 = vld [vmem:[%s12744_s5 + $0x110] sm:$0xff]  }
 0x5a8   : > { %v5783_v1 = vrot.slane %v5719_v60, 2  ;;  %v5720_v20 = vmax.f32 %v5692_v61, %v5696_v39  ;;  %9554 = vmatprep.subr.bf16.mxu0 %v10518_v38  ;;  %v12161_v56 = vsel %vm6241_vm4, %v6249_v7, %v6251_v37  ;;  %v12171_v26 = vsel %vm6241_vm4, %v6251_v37, %v12167_v11  ;;  %v10456_v39 = vld [vmem:[%s12744_s5 + $0x108] sm:$0xff]   ;;  %v6597_v37 = vld [vmem:[#allocation3 + $0x48] sm:$0x3] }
 0x5a9   : > { %v5788_v22 = vrot.slane %v5722_v50, 2 }
 0x5aa   : > { %v5784_v28 = vrot.slane %v5720_v20, 2 }
 0x5ab   : > { %v5789_v25 = vsel %vm2725_vm2, %v5786_v4, %v5788_v22  ;;  %v5825_v2 = vsel %vm2725_vm2, %v5788_v22, %v5783_v1  ;;  %9555 = vmatpush3.bf16.msra.mxu0 %v10440_v21 }
 0x5ac   : > { %v5848_v14 = vmax.f32 %v5721_v51, %v5789_v25  ;;  %v5849_v23 = vmax.f32 %v5722_v50, %v5825_v2  ;;  %v5785_v45 = vsel %vm2725_vm2, %v5783_v1, %v5784_v28  ;;  %v5787_v40 = vsel %vm2725_vm2, %v5784_v28, %v5786_v4  ;;  %9556 = vmatprep.subr.bf16.mxu0 %v10518_v38  ;;  %v6221_v51 = vld [vmem:[#allocation3 + $0x38] sm:$0xf]  ;;  %v10459_v50 = vld [vmem:[%s12744_s5 + $0x120] sm:$0xff]   ;;  %v10461_v1 = vld [vmem:[%s12744_s5 + $0x130] sm:$0xff]  }
 0x5ad   : > { %v5846_v62 = vmax.f32 %v5719_v60, %v5785_v45  ;;  %v5847_v13 = vmax.f32 %v5720_v20, %v5787_v40  ;;  %v6255_v36 = vrot.slane %v6221_v51, 4  ;;  %v10455_v60 = vld [vmem:[%s12744_s5 + $0x100] sm:$0xff]   ;;  %v10464_v40 = vld [vmem:[%s12744_s5 + $0x148] sm:$0xff]   ;;  %v6636_v51 = vrot.slane %v6597_v37, 2 }
 0x5ae   : > { %v5861_v24 = vpack.c.bf16 %v5849_v23, %v5848_v14  ;;  %9529 = vmatmul.mubr.bf16.gmra.mrb[184].mxu0 %v11870_v31  ;;  %v10449_v31 = vld [vmem:[%s12744_s5 + $0xd0] sm:$0xff]   ;;  %v6590_v28 = vld [vmem:[#allocation3 + $0x10] sm:$0xfc] }
 0x5af   : > { %v5860_v54 = vpack.c.bf16 %v5847_v13, %v5846_v62  ;;  %9532 = vmatprep.mubr.msk.bf16.mxu0 %vm10519_vm3, %v10518_v38  ;;  %9557 = vmatpush3.bf16.msra.mxu0 %v10441_v10  ;;  %v6256_v61 = vsel %vm6241_vm4, %v12167_v11, %v6255_v36  ;;  %v6623_v21 = vrot.slane %v6590_v28, 2  ;;  %v10463_v14 = vld [vmem:[%s12744_s5 + $0x140] sm:$0xff]  }
 0x5b0   : > { %5873 = vst [vmem:[#allocation3 + $0x58] sm:$0xff] %v5861_v24  ;;  %9558 = vmatprep.subr.bf16.mxu0 %v10518_v38 }
 0x5b1   : > { %5872 = vst [vmem:[#allocation3 + $0x50] sm:$0xff] %v5860_v54  ;;  %v6625_v45 = vsel %vm2725_vm2, %v6623_v21, %v11940_v42  ;;  %v10465_v42 = vld [vmem:[%s12744_s5 + $0x150] sm:$0xff]   ;;  %v10466_v54 = vld [vmem:[%s12744_s5 + $0x158] sm:$0xff]  }
 0x5b3   : > { %9559 = vmatpush3.bf16.msra.mxu0 %v10442_v47 }
 0x5b4   : > { %9560 = vmatprep.subr.bf16.mxu0 %v10518_v38 }
 0x5b6   : > { %9533 = vmatmul.mubr.bf16.gmra.mrb[188].mxu0 %v11902_v15 }
 0x5b7   : > { %9536 = vmatprep.mubr.msk.bf16.mxu0 %vm10519_vm3, %v10518_v38  ;;  %9561 = vmatpush3.bf16.msra.mxu0 %v10443_v32 }
 0x5b8   : > { %9562 = vmatprep.subr.bf16.mxu0 %v10518_v38 }
 0x5bb   : > { %9563 = vmatpush3.bf16.msra.mxu0 %v10444_v58 }
 0x5bc   : > { %9564 = vmatprep.subr.bf16.mxu0 %v10518_v38 }
 0x5be   : > { %9537 = vmatmul.mubr.bf16.gmra.mrb[192].mxu0 %v11899_v29 }
 0x5bf   : > { %9540 = vmatprep.mubr.msk.bf16.mxu0 %vm10519_vm3, %v10518_v38  ;;  %9565 = vmatpush3.bf16.msra.mxu0 %v10445_v34 }
 0x5c0   : > { %9566 = vmatprep.subr.bf16.mxu0 %v10518_v38 }
 0x5c3   : > { %9567 = vmatpush3.bf16.msra.mxu0 %v10446_v12  ;;  %v10468_v12 = vld [vmem:[%s12744_s5 + $0x168] sm:$0xff]  }
 0x5c4   : > { %9596 = vmatprep.subr.bf16.mxu0 %v10518_v38 }
 0x5c6   : > { %9541 = vmatmul.mubr.bf16.gmra.mrb[196].mxu0 %v11954_v55 }
 0x5c7   : > { %9544 = vmatprep.mubr.msk.bf16.mxu0 %vm10519_vm3, %v10518_v38 }
 0x5ce   : > { %9545 = vmatmul.mubr.bf16.gmra.mrb[200].mxu0 %v11950_v6 }
 0x5cf   : > { %9548 = vmatprep.mubr.msk.bf16.mxu0 %vm10519_vm3, %v10518_v38 }
 0x5d6   : > { %9549 = vmatmul.mubr.bf16.gmra.mrb[204].mxu0 %v12005_v57 }
 0x5d7   : > { %9568 = vmatprep.mubr.msk.bf16.mxu0 %vm10519_vm3, %v10518_v38 }
 0x5de   : > { %9569 = vmatmul.mubr.bf16.vlgmr.msra.gmra.mrb[208].mxu0 %v6244_v63  ;;  %v10470_v63 = vld [vmem:[%s12744_s5 + $0x178] sm:$0xff]  }
 0x5df   : > { %9597 = vmatpush3.bf16.msra.mxu0 %v10447_v43  ;;  %9572 = vmatprep.mubr.msk.bf16.mxu0 %vm10519_vm3, %v10518_v38 }
 0x5e0   : > { %9598 = vmatprep.subr.bf16.mxu0 %v10518_v38 }
 0x5e3   : > { %9599 = vmatpush3.bf16.msra.mxu0 %v10448_v19 }
 0x5e4   : > { %9600 = vmatprep.subr.bf16.mxu0 %v10518_v38 }
 0x5e6   : > { %9573 = vmatmul.mubr.bf16.gmra.mrb[212].mxu0 %v6246_v48 }
 0x5e7   : > { %9576 = vmatprep.mubr.msk.bf16.mxu0 %vm10519_vm3, %v10518_v38  ;;  %9601 = vmatpush3.bf16.msra.mxu0 %v10449_v31 }
 0x5e8   : > { %9602 = vmatprep.subr.bf16.mxu0 %v10518_v38 }
 0x5eb   : > { %9603 = vmatpush3.bf16.msra.mxu0 %v10450_v0 }
 0x5ec   : > { %9604 = vmatprep.subr.bf16.mxu0 %v10518_v38 }
 0x5ee   : > { %9577 = vmatmul.mubr.bf16.gmra.mrb[216].mxu0 %v6248_v46  ;;  %v6634_v46 = vrot.slane %v12034_v35, 2 }
 0x5ef   : > { %9580 = vmatprep.mubr.msk.bf16.mxu0 %vm10519_vm3, %v10518_v38  ;;  %9605 = vmatpush3.bf16.msra.mxu0 %v10451_v3 }
 0x5f0   : > { %9606 = vmatprep.subr.bf16.mxu0 %v10518_v38 }
 0x5f3   : > { %9607 = vmatpush3.bf16.msra.mxu0 %v10452_v44 }
 0x5f4   : > { %9608 = vmatprep.subr.bf16.mxu0 %v10518_v38 }
 0x5f6   : > { %9581 = vmatmul.mubr.bf16.gmra.mrb[220].mxu0 %v12149_v5 }
 0x5f7   : > { %9584 = vmatprep.mubr.msk.bf16.mxu0 %vm10519_vm3, %v10518_v38  ;;  %9609 = vmatpush3.bf16.msra.mxu0 %v10453_v9 }
 0x5f8   : > { %9610 = vmatprep.subr.bf16.mxu0 %v10518_v38 }
 0x5fb   : > { %9611 = vmatpush3.bf16.msra.mxu0 %v10454_v41  ;;  %v6635_v41 = vsel %vm2725_vm2, %v6632_v27, %v6634_v46 }
 0x5fc   : > { %9640 = vmatprep.subr.bf16.mxu0 %v10518_v38 }
 0x5fe   : > { %9585 = vmatmul.mubr.bf16.gmra.mrb[224].mxu0 %v12161_v56 }
 0x5ff   : > { %9588 = vmatprep.mubr.msk.bf16.mxu0 %vm10519_vm3, %v10518_v38 }
 0x606   : > { %9589 = vmatmul.mubr.bf16.gmra.mrb[228].mxu0 %v12171_v26 }
 0x607   : > { %9592 = vmatprep.mubr.msk.bf16.mxu0 %vm10519_vm3, %v10518_v38 }
 0x60e   : > { %9593 = vmatmul.mubr.bf16.gmra.mrb[232].mxu0 %v6256_v61 }
 0x60f   : > { %9612 = vmatprep.mubr.msk.bf16.mxu0 %vm10519_vm3, %v10518_v38 }
 0x616   : > { %9613 = vmatmul.mubr.bf16.vlgmr.msra.gmra.mrb[236].mxu0 %v11902_v15  ;;  %v10458_v15 = vld [vmem:[%s12744_s5 + $0x118] sm:$0xff]  }
 0x617   : > { %9641 = vmatpush3.bf16.msra.mxu0 %v10455_v60  ;;  %9616 = vmatprep.mubr.msk.bf16.mxu0 %vm10519_vm3, %v10518_v38 }
 0x618   : > { %9642 = vmatprep.subr.bf16.mxu0 %v10518_v38 }
 0x61b   : > { %9643 = vmatpush3.bf16.msra.mxu0 %v10456_v39 }
 0x61c   : > { %9644 = vmatprep.subr.bf16.mxu0 %v10518_v38 }
 0x61e   : > { %9617 = vmatmul.mubr.bf16.gmra.mrb[240].mxu0 %v11899_v29  ;;  %v10460_v29 = vld [vmem:[%s12744_s5 + $0x128] sm:$0xff]  }
 0x61f   : > { %9620 = vmatprep.mubr.msk.bf16.mxu0 %vm10519_vm3, %v10518_v38  ;;  %9645 = vmatpush3.bf16.msra.mxu0 %v10457_v49 }
 0x620   : > { %9646 = vmatprep.subr.bf16.mxu0 %v10518_v38 }
 0x623   : > { %9647 = vmatpush3.bf16.msra.mxu0 %v10458_v15  ;;  %v6637_v15 = vsel %vm2725_vm2, %v6634_v46, %v6636_v51 }
 0x624   : > { %9648 = vmatprep.subr.bf16.mxu0 %v10518_v38 }
 0x626   : > { %9621 = vmatmul.mubr.bf16.gmra.mrb[244].mxu0 %v11954_v55  ;;  %v10462_v55 = vld [vmem:[%s12744_s5 + $0x138] sm:$0xff]  }
 0x627   : > { %9624 = vmatprep.mubr.msk.bf16.mxu0 %vm10519_vm3, %v10518_v38  ;;  %9649 = vmatpush3.bf16.msra.mxu0 %v10459_v50  ;;  %v6796_v50 = vld [vmem:[#allocation3 + $0x10] sm:$0xf0] }
 0x628   : > { %9650 = vmatprep.subr.bf16.mxu0 %v10518_v38 }
 0x62b   : > { %9651 = vmatpush3.bf16.msra.mxu0 %v10460_v29 }
 0x62c   : > { %9652 = vmatprep.subr.bf16.mxu0 %v10518_v38 }
 0x62e   : > { %9625 = vmatmul.mubr.bf16.gmra.mrb[248].mxu0 %v11950_v6 }
 0x62f   : > { %9628 = vmatprep.mubr.msk.bf16.mxu0 %vm10519_vm3, %v10518_v38  ;;  %9653 = vmatpush3.bf16.msra.mxu0 %v10461_v1  ;;  %v6817_v1 = vrot.slane %v6796_v50, 4 }
 0x630   : > { %9654 = vmatprep.subr.bf16.mxu0 %v10518_v38 }
 0x631   : > { %v6819_v21 = vsel %vm6241_vm4, %v6817_v1, %v12128_v53  ;;  %v10473_v53 = vld [vmem:[%s12744_s5 + $0x190] sm:$0xff]  }
 0x633   : > { %9655 = vmatpush3.bf16.msra.mxu0 %v10462_v55 }
 0x634   : > { %9684 = vmatprep.subr.bf16.mxu0 %v10518_v38 }
 0x636   : > { %9629 = vmatmul.mubr.bf16.gmra.mrb[252].mxu0 %v12005_v57 }
 0x637   : > { %9632 = vmatprep.mubr.msk.bf16.mxu0 %vm10519_vm3, %v10518_v38 }
 0x63e   : > { %9633 = vmatmul.mubr.bf16.gmra.mrb[0].mxu0 %v11999_v52 }
 0x63f   : > { %9636 = vmatprep.mubr.msk.bf16.mxu0 %vm10519_vm3, %v10518_v38 }
 0x641   : > { %v12230_v6 = vpop.f32.mrb[152].mxu0 }
 0x642   : > { %v9482_v20 = vpop.f32.mrb[153].mxu0 }
 0x643   : > { %v12232_v4 = vpop.f32.mrb[154].mxu0 }
 0x644   : > { %v9483_v22 = vpop.f32.mrb[155].mxu0 }
 0x646   : > { %9637 = vmatmul.mubr.bf16.gmra.mrb[4].mxu0 %v12034_v35 }
 0x647   : > { %9656 = vmatprep.mubr.msk.bf16.mxu0 %vm10519_vm3, %v10518_v38 }
 0x649   : > { %v12237_v57 = vpop.f32.mrb[156].mxu0 }
 0x64a   : > { %v9486_v25 = vpop.f32.mrb[157].mxu0 }
 0x64b   : > { %v12239_v2 = vpop.f32.mrb[158].mxu0 }
 0x64c   : > { %v9487_v23 = vpop.f32.mrb[159].mxu0 }
 0x64e   : > { %9657 = vmatmul.mubr.bf16.vlgmr.msra.gmra.mrb[8].mxu0 %v6625_v45 }
 0x64f   : > { %9685 = vmatpush3.bf16.msra.mxu0 %v10463_v14  ;;  %9660 = vmatprep.mubr.msk.bf16.mxu0 %vm10519_vm3, %v10518_v38 }
 0x650   : > { %9686 = vmatprep.subr.bf16.mxu0 %v10518_v38 }
 0x651   : > { %v12252_v62 = vpop.f32.mrb[160].mxu0 }
 0x652   : > { %v9490_v13 = vpop.f32.mrb[161].mxu0 }
 0x653   : > { %v12254_v24 = vpop.f32.mrb[162].mxu0  ;;  %9687 = vmatpush3.bf16.msra.mxu0 %v10464_v40 }
 0x654   : > { %v9491_v10 = vpop.f32.mrb[163].mxu0  ;;  %9688 = vmatprep.subr.bf16.mxu0 %v10518_v38 }
 0x656   : > { %9661 = vmatmul.mubr.bf16.gmra.mrb[12].mxu0 %v11979_v18  ;;  %v10467_v18 = vld [vmem:[%s12744_s5 + $0x160] sm:$0xff]  }
 0x657   : > { %9664 = vmatprep.mubr.msk.bf16.mxu0 %vm10519_vm3, %v10518_v38  ;;  %9689 = vmatpush3.bf16.msra.mxu0 %v10465_v42 }
 0x658   : > { %9690 = vmatprep.subr.bf16.mxu0 %v10518_v38 }
 0x659   : > { %v12267_v47 = vpop.f32.mrb[164].mxu0 }
 0x65a   : > { %v9494_v32 = vpop.f32.mrb[165].mxu0 }
 0x65b   : > { %v12269_v58 = vpop.f32.mrb[166].mxu0  ;;  %9691 = vmatpush3.bf16.msra.mxu0 %v10466_v54 }
 0x65c   : > { %v9495_v34 = vpop.f32.mrb[167].mxu0  ;;  %9692 = vmatprep.subr.bf16.mxu0 %v10518_v38 }
 0x65e   : > { %9665 = vmatmul.mubr.bf16.gmra.mrb[16].mxu0 %v12003_v59  ;;  %v10469_v59 = vld [vmem:[%s12744_s5 + $0x170] sm:$0xff]  }
 0x65f   : > { %9668 = vmatprep.mubr.msk.bf16.mxu0 %vm10519_vm3, %v10518_v38  ;;  %9693 = vmatpush3.bf16.msra.mxu0 %v10467_v18 }
 0x660   : > { %9694 = vmatprep.subr.bf16.mxu0 %v10518_v38 }
 0x661   : > { %v12282_v16 = vpop.f32.mrb[168].mxu0 }
 0x662   : > { %v9498_v8 = vpop.f32.mrb[169].mxu0 }
 0x663   : > { %v12284_v33 = vpop.f32.mrb[170].mxu0  ;;  %9695 = vmatpush3.bf16.msra.mxu0 %v10468_v12 }
 0x664   : > { %v9499_v43 = vpop.f32.mrb[171].mxu0  ;;  %9696 = vmatprep.subr.bf16.mxu0 %v10518_v38 }
 0x666   : > { %9669 = vmatmul.mubr.bf16.gmra.mrb[20].mxu0 %v12023_v30  ;;  %v6633_v30 = vsel %vm2725_vm2, %v12018_v17, %v6632_v27 }
 0x667   : > { %9672 = vmatprep.mubr.msk.bf16.mxu0 %vm10519_vm3, %v10518_v38  ;;  %9697 = vmatpush3.bf16.msra.mxu0 %v10469_v59 }
 0x668   : > { %9698 = vmatprep.subr.bf16.mxu0 %v10518_v38 }
 0x669   : > { %v12297_v19 = vpop.f32.mrb[172].mxu0 }
 0x66a   : > { %v9502_v31 = vpop.f32.mrb[173].mxu0 }
 0x66b   : > { %v12300_v48 = vpop.f32.mrb[174].mxu0  ;;  %9699 = vmatpush3.bf16.msra.mxu0 %v10470_v63  ;;  %v6826_v63 = vrot.slane %v11999_v52, 4 }
 0x66c   : > { %v9503_v0 = vpop.f32.mrb[175].mxu0  ;;  %9728 = vmatprep.subr.bf16.mxu0 %v10518_v38 }
 0x66e   : > { %9673 = vmatmul.mubr.bf16.gmra.mrb[24].mxu0 %v6633_v30  ;;  %v6827_v30 = vsel %vm6241_vm4, %v12167_v11, %v6826_v63  ;;  %v6797_v11 = vld [vmem:[#allocation3 + $0x48] sm:$0xf] }
 0x66f   : > { %9676 = vmatprep.mubr.msk.bf16.mxu0 %vm10519_vm3, %v10518_v38  ;;  %v6830_v51 = vrot.slane %v6797_v11, 4 }
 0x671   : > { %v12307_v3 = vpop.f32.mrb[176].mxu0 }
 0x672   : > { %v9506_v44 = vpop.f32.mrb[177].mxu0 }
 0x673   : > { %v12310_v7 = vpop.f32.mrb[178].mxu0 }
 0x674   : > { %v9507_v9 = vpop.f32.mrb[179].mxu0 }
 0x676   : > { %9677 = vmatmul.mubr.bf16.gmra.mrb[28].mxu0 %v6635_v41 }
 0x677   : > { %9680 = vmatprep.mubr.msk.bf16.mxu0 %vm10519_vm3, %v10518_v38 }
 0x679   : > { %v6165_v17 = vpop.f32.mrb[180].mxu0 }
 0x67a   : > { %v12316_v36 = vadd.f32 %v6165_v17, %v12230_v6  ;;  %v9526_v61 = vpop.f32.mrb[181].mxu0 }
 0x67b   : > { %v6168_v60 = vpop.f32.mrb[182].mxu0 }
 0x67c   : > { %v12319_v39 = vadd.f32 %v6168_v60, %v12232_v4  ;;  %v9527_v49 = vpop.f32.mrb[183].mxu0  ;;  %v10471_v4 = vld [vmem:[%s12744_s5 + $0x180] sm:$0xff]  }
 0x67e   : > { %9681 = vmatmul.mubr.bf16.gmra.mrb[32].mxu0 %v6637_v15 }
 0x67f   : > { %9700 = vmatprep.mubr.msk.bf16.mxu0 %vm10519_vm3, %v10518_v38 }
 0x681   : > { %v6173_v29 = vpop.f32.mrb[184].mxu0 }
 0x682   : > { %v12325_v55 = vadd.f32 %v6173_v29, %v12237_v57  ;;  %v9530_v6 = vpop.f32.mrb[185].mxu0  ;;  %v10472_v57 = vld [vmem:[%s12744_s5 + $0x188] sm:$0xff]  }
 0x683   : > { %v6176_v20 = vpop.f32.mrb[186].mxu0 }
 0x684   : > { %v12331_v22 = vadd.f32 %v6176_v20, %v12239_v2  ;;  %v9531_v28 = vpop.f32.mrb[187].mxu0  ;;  %v6990_v20 = vld [vmem:[#allocation3 + $0x20] sm:$0xff] }
 0x686   : > { %9701 = vmatmul.mubr.bf16.vlgmr.msra.gmra.mrb[36].mxu0 %v6819_v21 }
 0x687   : > { %9729 = vmatpush3.bf16.msra.mxu0 %v10471_v4  ;;  %9704 = vmatprep.mubr.msk.bf16.mxu0 %vm10519_vm3, %v10518_v38 }
 0x688   : > { %9730 = vmatprep.subr.bf16.mxu0 %v10518_v38 }
 0x689   : > { %v6181_v25 = vpop.f32.mrb[188].mxu0 }
 0x68a   : > { %v12342_v14 = vadd.f32 %v6181_v25, %v12252_v62  ;;  %v9534_v2 = vpop.f32.mrb[189].mxu0  ;;  %v10474_v62 = vld [vmem:[%s12744_s5 + $0x198] sm:$0xff]  }
 0x68b   : > { %v6184_v23 = vpop.f32.mrb[190].mxu0  ;;  %9731 = vmatpush3.bf16.msra.mxu0 %v10472_v57  ;;  %v10481_v57 = vld [vmem:[%s12744_s5 + $0x1d0] sm:$0xff]  }
 0x68c   : > { %v12348_v45 = vadd.f32 %v6184_v23, %v12254_v24  ;;  %v9535_v40 = vpop.f32.mrb[191].mxu0  ;;  %9732 = vmatprep.subr.bf16.mxu0 %v10518_v38  ;;  %v12448_v23 = vld [vmem:[#allocation3 + $0x28] sm:$0xff] }
 0x68e   : > { %9705 = vmatmul.mubr.bf16.gmra.mrb[40].mxu0 %v12149_v5  ;;  %v10475_v5 = vld [vmem:[%s12744_s5 + $0x1a0] sm:$0xff]  }
 0x68f   : > { %9708 = vmatprep.mubr.msk.bf16.mxu0 %vm10519_vm3, %v10518_v38  ;;  %9733 = vmatpush3.bf16.msra.mxu0 %v10473_v53 }
 0x690   : > { %9734 = vmatprep.subr.bf16.mxu0 %v10518_v38 }
 0x691   : > { %v6189_v13 = vpop.f32.mrb[192].mxu0 }
 0x692   : > { %v12359_v42 = vadd.f32 %v6189_v13, %v12267_v47  ;;  %v9538_v24 = vpop.f32.mrb[193].mxu0  ;;  %v10476_v47 = vld [vmem:[%s12744_s5 + $0x1a8] sm:$0xff]   ;;  %v10483_v13 = vld [vmem:[%s12744_s5 + $0x1e0] sm:$0xff]  }
 0x693   : > { %v6192_v10 = vpop.f32.mrb[194].mxu0  ;;  %9735 = vmatpush3.bf16.msra.mxu0 %v10474_v62 }
 0x694   : > { %v12365_v54 = vadd.f32 %v6192_v10, %v12269_v58  ;;  %v9539_v32 = vpop.f32.mrb[195].mxu0  ;;  %9736 = vmatprep.subr.bf16.mxu0 %v10518_v38 }
 0x696   : > { %9709 = vmatmul.mubr.bf16.gmra.mrb[44].mxu0 %v12161_v56  ;;  %v10477_v56 = vld [vmem:[%s12744_s5 + $0x1b0] sm:$0xff]  }
 0x697   : > { %9712 = vmatprep.mubr.msk.bf16.mxu0 %vm10519_vm3, %v10518_v38  ;;  %9737 = vmatpush3.bf16.msra.mxu0 %v10475_v5  ;;  %v12467_v5 = vld [vmem:[#allocation3 + $0x30] sm:$0xff] }
 0x698   : > { %9738 = vmatprep.subr.bf16.mxu0 %v10518_v38 }
 0x699   : > { %v6197_v18 = vpop.f32.mrb[196].mxu0 }
 0x69a   : > { %v12376_v34 = vadd.f32 %v6197_v18, %v12282_v16  ;;  %v9542_v58 = vpop.f32.mrb[197].mxu0  ;;  %v10478_v16 = vld [vmem:[%s12744_s5 + $0x1b8] sm:$0xff]  }
 0x69b   : > { %v6200_v12 = vpop.f32.mrb[198].mxu0  ;;  %9739 = vmatpush3.bf16.msra.mxu0 %v10476_v47  ;;  %v10485_v58 = vld [vmem:[%s12744_s5 + $0x1f0] sm:$0xff]  }
 0x69c   : > { %v12382_v8 = vadd.f32 %v6200_v12, %v12284_v33  ;;  %v9543_v59 = vpop.f32.mrb[199].mxu0  ;;  %9740 = vmatprep.subr.bf16.mxu0 %v10518_v38 }
 0x69d   : > { %v12486_v59 = vld [vmem:[#allocation3 + $0x38] sm:$0xff] }
 0x69e   : > { %9713 = vmatmul.mubr.bf16.gmra.mrb[48].mxu0 %v12171_v26 }
 0x69f   : > { %9716 = vmatprep.mubr.msk.bf16.mxu0 %vm10519_vm3, %v10518_v38  ;;  %9741 = vmatpush3.bf16.msra.mxu0 %v10477_v56 }
 0x6a0   : > { %9742 = vmatprep.subr.bf16.mxu0 %v10518_v38 }
 0x6a1   : > { %v6205_v43 = vpop.f32.mrb[200].mxu0 }
 0x6a2   : > { %v12394_v33 = vadd.f32 %v6205_v43, %v12297_v19  ;;  %v9546_v27 = vpop.f32.mrb[201].mxu0  ;;  %v6828_v19 = vrot.slane %v12034_v35, 4 }
 0x6a3   : > { %v6208_v31 = vpop.f32.mrb[202].mxu0  ;;  %9743 = vmatpush3.bf16.msra.mxu0 %v10478_v16 }
 0x6a4   : > { %v12397_v26 = vadd.f32 %v6208_v31, %v12300_v48  ;;  %v9547_v0 = vpop.f32.mrb[203].mxu0  ;;  %9772 = vmatprep.subr.bf16.mxu0 %v10518_v38  ;;  %v6829_v37 = vsel %vm6241_vm4, %v6826_v63, %v6828_v19  ;;  %v6831_v49 = vsel %vm6241_vm4, %v6828_v19, %v6830_v51 }
 0x6a5   : > { %v12502_v0 = vld [vmem:[#allocation3 + $0x40] sm:$0xff] }
 0x6a6   : > { %9717 = vmatmul.mubr.bf16.gmra.mrb[52].mxu0 %v6827_v30 }
 0x6a7   : > { %9720 = vmatprep.mubr.msk.bf16.mxu0 %vm10519_vm3, %v10518_v38 }
 0x6a9   : > { %v6213_v52 = vpop.f32.mrb[204].mxu0 }
 0x6aa   : > { %v12406_v46 = vadd.f32 %v6213_v52, %v12307_v3  ;;  %v9550_v44 = vpop.f32.mrb[205].mxu0 }
 0x6ab   : > { %v6216_v9 = vpop.f32.mrb[206].mxu0 }
 0x6ac   : > { %v12409_v48 = vadd.f32 %v6216_v9, %v12310_v7  ;;  %v9551_v41 = vpop.f32.mrb[207].mxu0  ;;  %v12513_v9 = vld [vmem:[#allocation3 + $0x48] sm:$0xff] }
 0x6ae   : > { %9721 = vmatmul.mubr.bf16.gmra.mrb[56].mxu0 %v6829_v37 }
 0x6af   : > { %9724 = vmatprep.mubr.msk.bf16.mxu0 %vm10519_vm3, %v10518_v38 }
 0x6b1   : > { %v6346_v17 = vpop.f32.mrb[208].mxu0 }
 0x6b2   : > { %v12415_v35 = vadd.f32 %v6346_v17, %v12316_v36  ;;  %v9570_v3 = vpop.f32.mrb[209].mxu0  ;;  %v10479_v36 = vld [vmem:[%s12744_s5 + $0x1c0] sm:$0xff]  }
 0x6b3   : > { %v6349_v61 = vpop.f32.mrb[210].mxu0  ;;  %v7165_v3 = vld [vmem:[#allocation3 + $0x20] sm:$0xfc] }
 0x6b4   : > { %v12418_v60 = vadd.f32 %v6349_v61, %v12319_v39  ;;  %v9571_v7 = vpop.f32.mrb[211].mxu0 }
 0x6b5   : > { %v7198_v7 = vrot.slane %v7165_v3, 2 }
 0x6b6   : > { %9725 = vmatmul.mubr.bf16.gmra.mrb[60].mxu0 %v6831_v49  ;;  %v7199_v49 = vrot.slane %v12448_v23, 2 }
 0x6b7   : > { %9744 = vmatprep.mubr.msk.bf16.mxu0 %vm10519_vm3, %v10518_v38 }
 0x6b9   : > { %v6354_v15 = vpop.f32.mrb[212].mxu0 }
 0x6ba   : > { %v12424_v50 = vadd.f32 %v6354_v15, %v12325_v55  ;;  %v9574_v29 = vpop.f32.mrb[213].mxu0  ;;  %v10480_v55 = vld [vmem:[%s12744_s5 + $0x1c8] sm:$0xff]  }
 0x6bb   : > { %v6357_v1 = vpop.f32.mrb[214].mxu0 }
 0x6bc   : > { %v12430_v39 = vadd.f32 %v6357_v1, %v12331_v22  ;;  %v9575_v6 = vpop.f32.mrb[215].mxu0 }
 0x6bd   : > { %v7200_v6 = vsel %vm2725_vm2, %v7198_v7, %v7199_v49 }
 0x6be   : > { %9745 = vmatmul.mubr.bf16.vlgmr.msra.gmra.mrb[64].mxu0 %v6990_v20 }
 0x6bf   : > { %9773 = vmatpush3.bf16.msra.mxu0 %v10479_v36  ;;  %9748 = vmatprep.mubr.msk.bf16.mxu0 %vm10519_vm3, %v10518_v38 }
 0x6c0   : > { %9774 = vmatprep.subr.bf16.mxu0 %v10518_v38 }
 0x6c1   : > { %v6362_v4 = vpop.f32.mrb[216].mxu0 }
 0x6c2   : > { %v12439_v28 = vadd.f32 %v6362_v4, %v12342_v14  ;;  %v9578_v21 = vpop.f32.mrb[217].mxu0  ;;  %v10482_v14 = vld [vmem:[%s12744_s5 + $0x1d8] sm:$0xff]  }
 0x6c3   : > { %v6365_v22 = vpop.f32.mrb[218].mxu0  ;;  %9775 = vmatpush3.bf16.msra.mxu0 %v10480_v55  ;;  %v7201_v55 = vrot.slane %v12467_v5, 2 }
 0x6c4   : > { %v12445_v25 = vadd.f32 %v6365_v22, %v12348_v45  ;;  %v9579_v2 = vpop.f32.mrb[219].mxu0  ;;  %9776 = vmatprep.subr.bf16.mxu0 %v10518_v38  ;;  %v10489_v22 = vld [vmem:[%s12744_s5 + $0x210] sm:$0xff]  }
 0x6c6   : > { %9749 = vmatmul.mubr.bf16.gmra.mrb[68].mxu0 %v12448_v23 }
 0x6c7   : > { %9752 = vmatprep.mubr.msk.bf16.mxu0 %vm10519_vm3, %v10518_v38  ;;  %9777 = vmatpush3.bf16.msra.mxu0 %v10481_v57 }
 0x6c8   : > { %9778 = vmatprep.subr.bf16.mxu0 %v10518_v38 }
 0x6c9   : > { %v6370_v53 = vpop.f32.mrb[220].mxu0 }
 0x6ca   : > { %v12458_v45 = vadd.f32 %v6370_v53, %v12359_v42  ;;  %v9582_v40 = vpop.f32.mrb[221].mxu0  ;;  %v10484_v42 = vld [vmem:[%s12744_s5 + $0x1e8] sm:$0xff]  }
 0x6cb   : > { %v6373_v62 = vpop.f32.mrb[222].mxu0  ;;  %9779 = vmatpush3.bf16.msra.mxu0 %v10482_v14  ;;  %v7202_v14 = vsel %vm2725_vm2, %v7199_v49, %v7201_v55 }
 0x6cc   : > { %v12464_v24 = vadd.f32 %v6373_v62, %v12365_v54  ;;  %v9583_v10 = vpop.f32.mrb[223].mxu0  ;;  %9780 = vmatprep.subr.bf16.mxu0 %v10518_v38 }
 0x6cd   : > { %v10491_v10 = vld [vmem:[%s12744_s5 + $0x220] sm:$0xff]  }
 0x6ce   : > { %9753 = vmatmul.mubr.bf16.gmra.mrb[72].mxu0 %v12467_v5 }
 0x6cf   : > { %9756 = vmatprep.mubr.msk.bf16.mxu0 %vm10519_vm3, %v10518_v38  ;;  %9781 = vmatpush3.bf16.msra.mxu0 %v10483_v13 }
 0x6d0   : > { %9782 = vmatprep.subr.bf16.mxu0 %v10518_v38 }
 0x6d1   : > { %v6378_v32 = vpop.f32.mrb[224].mxu0 }
 0x6d2   : > { %v12477_v54 = vadd.f32 %v6378_v32, %v12376_v34  ;;  %v9586_v47 = vpop.f32.mrb[225].mxu0  ;;  %v10486_v34 = vld [vmem:[%s12744_s5 + $0x1f8] sm:$0xff]  }
 0x6d3   : > { %v6381_v18 = vpop.f32.mrb[226].mxu0  ;;  %9783 = vmatpush3.bf16.msra.mxu0 %v10484_v42 }
 0x6d4   : > { %v12483_v12 = vadd.f32 %v6381_v18, %v12382_v8  ;;  %v9587_v56 = vpop.f32.mrb[227].mxu0  ;;  %9784 = vmatprep.subr.bf16.mxu0 %v10518_v38 }
 0x6d6   : > { %9757 = vmatmul.mubr.bf16.gmra.mrb[76].mxu0 %v12486_v59 }
 0x6d7   : > { %9760 = vmatprep.mubr.msk.bf16.mxu0 %vm10519_vm3, %v10518_v38  ;;  %9785 = vmatpush3.bf16.msra.mxu0 %v10485_v58 }
 0x6d8   : > { %9786 = vmatprep.subr.bf16.mxu0 %v10518_v38 }
 0x6d9   : > { %v6386_v16 = vpop.f32.mrb[228].mxu0 }
 0x6da   : > { %v12496_v8 = vadd.f32 %v6386_v16, %v12394_v33  ;;  %v9590_v43 = vpop.f32.mrb[229].mxu0  ;;  %v10493_v16 = vld [vmem:[%s12744_s5 + $0x230] sm:$0xff]  }
 0x6db   : > { %v6389_v63 = vpop.f32.mrb[230].mxu0  ;;  %9787 = vmatpush3.bf16.msra.mxu0 %v10486_v34 }
 0x6dc   : > { %v12499_v27 = vadd.f32 %v6389_v63, %v12397_v26  ;;  %v9591_v31 = vpop.f32.mrb[231].mxu0  ;;  %9816 = vmatprep.subr.bf16.mxu0 %v10518_v38 }
 0x6de   : > { %9761 = vmatmul.mubr.bf16.gmra.mrb[80].mxu0 %v12502_v0 }
 0x6df   : > { %9764 = vmatprep.mubr.msk.bf16.mxu0 %vm10519_vm3, %v10518_v38 }
 0x6e1   : > { %v6394_v30 = vpop.f32.mrb[232].mxu0 }
 0x6e2   : > { %v12508_v33 = vadd.f32 %v6394_v30, %v12406_v46  ;;  %v9594_v52 = vpop.f32.mrb[233].mxu0 }
 0x6e3   : > { %v6397_v19 = vpop.f32.mrb[234].mxu0 }
 0x6e4   : > { %v12511_v44 = vadd.f32 %v6397_v19, %v12409_v48  ;;  %v9595_v26 = vpop.f32.mrb[235].mxu0  ;;  %v12524_v48 = vld [vmem:[#allocation3 + $0x50] sm:$0xff] }
 0x6e5   : > { %v7209_v3 = vrot.slane %v12524_v48, 2 }
 0x6e6   : > { %9765 = vmatmul.mubr.bf16.gmra.mrb[84].mxu0 %v12513_v9 }
 0x6e7   : > { %9768 = vmatprep.mubr.msk.bf16.mxu0 %vm10519_vm3, %v10518_v38 }
 0x6e9   : > { %v6521_v41 = vpop.f32.mrb[236].mxu0 }
 0x6ea   : > { %v12519_v37 = vadd.f32 %v6521_v41, %v12415_v35  ;;  %v9614_v11 = vpop.f32.mrb[237].mxu0 }
 0x6eb   : > { %v6524_v46 = vpop.f32.mrb[238].mxu0 }
 0x6ec   : > { %v12522_v17 = vadd.f32 %v6524_v46, %v12418_v60  ;;  %v9615_v51 = vpop.f32.mrb[239].mxu0  ;;  %v10487_v60 = vld [vmem:[%s12744_s5 + $0x200] sm:$0xff]  }
 0x6ee   : > { %9769 = vmatmul.mubr.bf16.gmra.mrb[88].mxu0 %v12524_v48 }
 0x6ef   : > { %9788 = vmatprep.mubr.msk.bf16.mxu0 %vm10519_vm3, %v10518_v38 }
 0x6f1   : > { %v6529_v61 = vpop.f32.mrb[240].mxu0 }
 0x6f2   : > { %v12531_v35 = vadd.f32 %v6529_v61, %v12424_v50  ;;  %v9618_v15 = vpop.f32.mrb[241].mxu0  ;;  %v10488_v50 = vld [vmem:[%s12744_s5 + $0x208] sm:$0xff]  }
 0x6f3   : > { %v6532_v29 = vpop.f32.mrb[242].mxu0 }
 0x6f4   : > { %v12537_v1 = vadd.f32 %v6532_v29, %v12430_v39  ;;  %v9619_v36 = vpop.f32.mrb[243].mxu0  ;;  %v7172_v29 = vld [vmem:[#allocation3 + $0x58] sm:$0x3] }
 0x6f5   : > { %v7211_v36 = vrot.slane %v7172_v29, 2 }
 0x6f6   : > { %9789 = vmatmul.mubr.bf16.vlgmr.msra.gmra.mrb[92].mxu0 %v7200_v6 }
 0x6f7   : > { %9817 = vmatpush3.bf16.msra.mxu0 %v10487_v60  ;;  %9792 = vmatprep.mubr.msk.bf16.mxu0 %vm10519_vm3, %v10518_v38 }
 0x6f8   : > { %9818 = vmatprep.subr.bf16.mxu0 %v10518_v38 }
 0x6f9   : > { %v6537_v20 = vpop.f32.mrb[244].mxu0 }
 0x6fa   : > { %v12548_v39 = vadd.f32 %v6537_v20, %v12439_v28  ;;  %v9622_v4 = vpop.f32.mrb[245].mxu0  ;;  %v10490_v28 = vld [vmem:[%s12744_s5 + $0x218] sm:$0xff]  }
 0x6fb   : > { %v6540_v21 = vpop.f32.mrb[246].mxu0  ;;  %9819 = vmatpush3.bf16.msra.mxu0 %v10488_v50  ;;  %v7371_v4 = vld [vmem:[#allocation3 + $0x20] sm:$0xf0] }
 0x6fc   : > { %v12554_v57 = vadd.f32 %v6540_v21, %v12445_v25  ;;  %v9623_v2 = vpop.f32.mrb[247].mxu0  ;;  %9820 = vmatprep.subr.bf16.mxu0 %v10518_v38  ;;  %v7203_v25 = vrot.slane %v12486_v59, 2 }
 0x6fd   : > { %v7393_v2 = vrot.slane %v12448_v23, 4 }
 0x6fe   : > { %9793 = vmatmul.mubr.bf16.gmra.mrb[96].mxu0 %v7202_v14  ;;  %v7204_v47 = vsel %vm2725_vm2, %v7201_v55, %v7203_v25  ;;  %v7212_v55 = vsel %vm2725_vm2, %v7209_v3, %v7211_v36 }
 0x6ff   : > { %9796 = vmatprep.mubr.msk.bf16.mxu0 %vm10519_vm3, %v10518_v38  ;;  %9821 = vmatpush3.bf16.msra.mxu0 %v10489_v22  ;;  %v7392_v22 = vrot.slane %v7371_v4, 4 }
 0x700   : > { %9822 = vmatprep.subr.bf16.mxu0 %v10518_v38 }
 0x701   : > { %v6545_v53 = vpop.f32.mrb[248].mxu0 }
 0x702   : > { %v12566_v40 = vadd.f32 %v6545_v53, %v12458_v45  ;;  %v9626_v62 = vpop.f32.mrb[249].mxu0  ;;  %v10492_v45 = vld [vmem:[%s12744_s5 + $0x228] sm:$0xff]  }
 0x703   : > { %v6548_v13 = vpop.f32.mrb[250].mxu0  ;;  %9823 = vmatpush3.bf16.msra.mxu0 %v10490_v28 }
 0x704   : > { %v12572_v42 = vadd.f32 %v6548_v13, %v12464_v24  ;;  %v9627_v32 = vpop.f32.mrb[251].mxu0  ;;  %9824 = vmatprep.subr.bf16.mxu0 %v10518_v38  ;;  %v7205_v24 = vrot.slane %v12502_v0, 2  ;;  %v7395_v13 = vrot.slane %v12467_v5, 4 }
 0x706   : > { %9797 = vmatmul.mubr.bf16.gmra.mrb[100].mxu0 %v7204_v47  ;;  %v7206_v31 = vsel %vm2725_vm2, %v7203_v25, %v7205_v24  ;;  %v7394_v25 = vsel %vm6241_vm4, %v7392_v22, %v7393_v2  ;;  %v7396_v47 = vsel %vm6241_vm4, %v7393_v2, %v7395_v13 }
 0x707   : > { %9800 = vmatprep.mubr.msk.bf16.mxu0 %vm10519_vm3, %v10518_v38  ;;  %9825 = vmatpush3.bf16.msra.mxu0 %v10491_v10 }
 0x708   : > { %9826 = vmatprep.subr.bf16.mxu0 %v10518_v38 }
 0x709   : > { %v6553_v18 = vpop.f32.mrb[252].mxu0 }
 0x70a   : > { %v12584_v58 = vadd.f32 %v6553_v18, %v12477_v54  ;;  %v9630_v56 = vpop.f32.mrb[253].mxu0  ;;  %v10494_v54 = vld [vmem:[%s12744_s5 + $0x238] sm:$0xff]   ;;  %v7397_v18 = vrot.slane %v12486_v59, 4 }
 0x70b   : > { %v6556_v34 = vpop.f32.mrb[254].mxu0  ;;  %9827 = vmatpush3.bf16.msra.mxu0 %v10492_v45 }
 0x70c   : > { %v12590_v43 = vadd.f32 %v6556_v34, %v12483_v12  ;;  %v9631_v63 = vpop.f32.mrb[255].mxu0  ;;  %9828 = vmatprep.subr.bf16.mxu0 %v10518_v38  ;;  %v7207_v12 = vrot.slane %v12513_v9, 2 }
 0x70d   : > { %v7399_v63 = vrot.slane %v12502_v0, 4 }
 0x70e   : > { %9801 = vmatmul.mubr.bf16.gmra.mrb[104].mxu0 %v7206_v31  ;;  %v7208_v46 = vsel %vm2725_vm2, %v7205_v24, %v7207_v12  ;;  %v7210_v15 = vsel %vm2725_vm2, %v7207_v12, %v7209_v3  ;;  %v7403_v3 = vrot.slane %v12524_v48, 4 }
 0x70f   : > { %9804 = vmatprep.mubr.msk.bf16.mxu0 %vm10519_vm3, %v10518_v38  ;;  %9829 = vmatpush3.bf16.msra.mxu0 %v10493_v16  ;;  %v7400_v12 = vsel %vm6241_vm4, %v7397_v18, %v7399_v63 }
 0x710   : > { %9830 = vmatprep.subr.bf16.mxu0 %v10518_v38 }
 0x711   : > { %v6561_v30 = vpop.f32.mrb[0].mxu0 }
 0x712   : > { %v12602_v52 = vadd.f32 %v6561_v30, %v12496_v8  ;;  %v9634_v19 = vpop.f32.mrb[1].mxu0 }
 0x713   : > { %v6564_v26 = vpop.f32.mrb[2].mxu0  ;;  %9831 = vmatpush3.bf16.msra.mxu0 %v10494_v54  ;;  %v7401_v19 = vrot.slane %v12513_v9, 4 }
 0x714   : > { %v12605_v41 = vadd.f32 %v6564_v26, %v12499_v27  ;;  %v9635_v11 = vpop.f32.mrb[3].mxu0  ;;  %9860 = vmatprep.subr.bf16.mxu0 %v10518_v38 }
 0x716   : > { %9805 = vmatmul.mubr.bf16.gmra.mrb[108].mxu0 %v7208_v46 }
 0x717   : > { %9808 = vmatprep.mubr.msk.bf16.mxu0 %vm10519_vm3, %v10518_v38 }
 0x719   : > { %v6569_v51 = vpop.f32.mrb[4].mxu0 }
 0x71a   : > { %v12613_v8 = vadd.f32 %v6569_v51, %v12508_v33  ;;  %v9638_v61 = vpop.f32.mrb[5].mxu0  ;;  %v7402_v51 = vsel %vm6241_vm4, %v7399_v63, %v7401_v19 }
 0x71b   : > { %v6572_v7 = vpop.f32.mrb[6].mxu0 }
 0x71c   : > { %v12616_v27 = vadd.f32 %v6572_v7, %v12511_v44  ;;  %v9639_v49 = vpop.f32.mrb[7].mxu0 }
 0x71e   : > { %9809 = vmatmul.mubr.bf16.gmra.mrb[112].mxu0 %v7210_v15  ;;  %v7404_v15 = vsel %vm6241_vm4, %v7401_v19, %v7403_v3 }
 0x71f   : > { %9812 = vmatprep.mubr.msk.bf16.mxu0 %vm10519_vm3, %v10518_v38 }
 0x721   : > { %v6727_v60 = vpop.f32.mrb[8].mxu0 }
 0x722   : > { %v12622_v6 = vadd.f32 %v6727_v60, %v12519_v37  ;;  %v9658_v33 = vpop.f32.mrb[9].mxu0 }
 0x723   : > { %v6730_v50 = vpop.f32.mrb[10].mxu0 }
 0x724   : > { %v12625_v20 = vadd.f32 %v6730_v50, %v12522_v17  ;;  %v9659_v44 = vpop.f32.mrb[11].mxu0 }
 0x726   : > { %9813 = vmatmul.mubr.bf16.gmra.mrb[116].mxu0 %v7212_v55 }
 0x727   : > { %9832 = vmatprep.mubr.msk.bf16.mxu0 %vm10519_vm3, %v10518_v38 }
 0x729   : > { %v6735_v21 = vpop.f32.mrb[12].mxu0 }
 0x72a   : > { %v12632_v37 = vadd.f32 %v6735_v21, %v12531_v35  ;;  %v9662_v14 = vpop.f32.mrb[13].mxu0 }
 0x72b   : > { %v6738_v28 = vpop.f32.mrb[14].mxu0 }
 0x72c   : > { %v12635_v17 = vadd.f32 %v6738_v28, %v12537_v1  ;;  %v9663_v53 = vpop.f32.mrb[15].mxu0 }
 0x72e   : > { %9833 = vmatmul.mubr.bf16.vlgmr.msra.gmra.mrb[120].mxu0 %v7394_v25 }
 0x72f   : > { %9836 = vmatprep.mubr.msk.bf16.mxu0 %vm10519_vm3, %v10518_v38 }
 0x731   : > { %v6743_v62 = vpop.f32.mrb[16].mxu0 }
 0x732   : > { %v12642_v23 = vadd.f32 %v6743_v62, %v12548_v39  ;;  %v9666_v35 = vpop.f32.mrb[17].mxu0 }
 0x733   : > { %v6746_v10 = vpop.f32.mrb[18].mxu0 }
 0x734   : > { %v12645_v32 = vadd.f32 %v6746_v10, %v12554_v57  ;;  %v9667_v1 = vpop.f32.mrb[19].mxu0  ;;  %v7398_v57 = vsel %vm6241_vm4, %v7395_v13, %v7397_v18 }
 0x736   : > { %9837 = vmatmul.mubr.bf16.gmra.mrb[124].mxu0 %v7396_v47 }
 0x737   : > { %9840 = vmatprep.mubr.msk.bf16.mxu0 %vm10519_vm3, %v10518_v38 }
 0x739   : > { %v6751_v45 = vpop.f32.mrb[20].mxu0 }
 0x73a   : > { %v6788_v5 = vadd.f32 %v6751_v45, %v12566_v40  ;;  %v9670_v24 = vpop.f32.mrb[21].mxu0 }
 0x73b   : > { %v6754_v39 = vpop.f32.mrb[22].mxu0 }
 0x73c   : > { %v6789_v56 = vadd.f32 %v6754_v39, %v12572_v42  ;;  %v9671_v34 = vpop.f32.mrb[23].mxu0 }
 0x73e   : > { %9841 = vmatmul.mubr.bf16.gmra.mrb[128].mxu0 %v7398_v57 }
 0x73f   : > { %9844 = vmatprep.mubr.msk.bf16.mxu0 %vm10519_vm3, %v10518_v38 }
 0x741   : > { %v6759_v16 = vpop.f32.mrb[24].mxu0 }
 0x742   : > { %v6790_v31 = vadd.f32 %v6759_v16, %v12584_v58  ;;  %v9674_v54 = vpop.f32.mrb[25].mxu0 }
 0x743   : > { %v6762_v59 = vpop.f32.mrb[26].mxu0 }
 0x744   : > { %v6791_v40 = vadd.f32 %v6762_v59, %v12590_v43  ;;  %v9675_v30 = vpop.f32.mrb[27].mxu0 }
 0x746   : > { %9845 = vmatmul.mubr.bf16.gmra.mrb[132].mxu0 %v7400_v12 }
 0x747   : > { %9848 = vmatprep.mubr.msk.bf16.mxu0 %vm10519_vm3, %v10518_v38 }
 0x749   : > { %v6767_v42 = vpop.f32.mrb[28].mxu0 }
 0x74a   : > { %v6792_v26 = vadd.f32 %v6767_v42, %v12602_v52  ;;  %v9678_v11 = vpop.f32.mrb[29].mxu0 }
 0x74b   : > { %v6770_v0 = vpop.f32.mrb[30].mxu0 }
 0x74c   : > { %v6793_v58 = vadd.f32 %v6770_v0, %v12605_v41  ;;  %v9679_v46 = vpop.f32.mrb[31].mxu0  ;;  %v7372_v41 = vld [vmem:[#allocation3 + $0x58] sm:$0xf] }
 0x74d   : > { %v7405_v60 = vrot.slane %v7372_v41, 4 }
 0x74e   : > { %9849 = vmatmul.mubr.bf16.gmra.mrb[136].mxu0 %v7402_v51 }
 0x74f   : > { %9852 = vmatprep.mubr.msk.bf16.mxu0 %vm10519_vm3, %v10518_v38  ;;  %v7406_v44 = vsel %vm6241_vm4, %v7403_v3, %v7405_v60 }
 0x751   : > { %v6775_v43 = vpop.f32.mrb[32].mxu0 }
 0x752   : > { %v6794_v61 = vadd.f32 %v6775_v43, %v12613_v8  ;;  %v9682_v7 = vpop.f32.mrb[33].mxu0 }
 0x753   : > { %v6778_v9 = vpop.f32.mrb[34].mxu0 }
 0x754   : > { %v6795_v52 = vadd.f32 %v6778_v9, %v12616_v27  ;;  %v9683_v49 = vpop.f32.mrb[35].mxu0 }
 0x756   : > { %9853 = vmatmul.mubr.bf16.gmra.mrb[140].mxu0 %v7404_v15 }
 0x757   : > { %9856 = vmatprep.mubr.msk.bf16.mxu0 %vm10519_vm3, %v10518_v38 }
 0x759   : > { %v6921_v29 = vpop.f32.mrb[36].mxu0 }
 0x75a   : > { %v6976_v36 = vadd.f32 %v6921_v29, %v12622_v6  ;;  %v9702_v33 = vpop.f32.mrb[37].mxu0 }
 0x75b   : > { %v6924_v48 = vpop.f32.mrb[38].mxu0 }
 0x75c   : > { %v6977_v8 = vadd.f32 %v6924_v48, %v12625_v20  ;;  %v9703_v50 = vpop.f32.mrb[39].mxu0 }
 0x75e   : > { %9857 = vmatmul.mubr.bf16.gmra.mrb[144].mxu0 %v7406_v44 }
 0x75f   : > { %9874 = vmatprep.mubr.msk.bf16.mxu0 %vm10519_vm3, %v10518_v38 }
 0x761   : > { %v6929_v27 = vpop.f32.mrb[40].mxu0 }
 0x762   : > { %v6978_v55 = vadd.f32 %v6929_v27, %v12632_v37  ;;  %v9706_v4 = vpop.f32.mrb[41].mxu0 }
 0x763   : > { %v6932_v21 = vpop.f32.mrb[42].mxu0 }
 0x764   : > { %v6979_v22 = vadd.f32 %v6932_v21, %v12635_v17  ;;  %v9707_v2 = vpop.f32.mrb[43].mxu0 }
 0x769   : > { %v6937_v6 = vpop.f32.mrb[44].mxu0 }
 0x76a   : > { %v6980_v14 = vadd.f32 %v6937_v6, %v12642_v23  ;;  %v9710_v28 = vpop.f32.mrb[45].mxu0 }
 0x76b   : > { %v6940_v20 = vpop.f32.mrb[46].mxu0 }
 0x76c   : > { %v6981_v53 = vadd.f32 %v6940_v20, %v12645_v32  ;;  %v9711_v25 = vpop.f32.mrb[47].mxu0 }
 0x771   : > { %v6945_v62 = vpop.f32.mrb[48].mxu0 }
 0x772   : > { %v6982_v13 = vadd.f32 %v6945_v62, %v6788_v5  ;;  %v9714_v35 = vpop.f32.mrb[49].mxu0 }
 0x773   : > { %v6948_v10 = vpop.f32.mrb[50].mxu0 }
 0x774   : > { %v6983_v1 = vadd.f32 %v6948_v10, %v6789_v56  ;;  %v9715_v47 = vpop.f32.mrb[51].mxu0 }
 0x779   : > { %v6953_v37 = vpop.f32.mrb[52].mxu0 }
 0x77a   : > { %v6984_v45 = vadd.f32 %v6953_v37, %v6790_v31  ;;  %v9718_v18 = vpop.f32.mrb[53].mxu0 }
 0x77b   : > { %v6956_v24 = vpop.f32.mrb[54].mxu0 }
 0x77c   : > { %v6985_v17 = vadd.f32 %v6956_v24, %v6791_v40  ;;  %v9719_v39 = vpop.f32.mrb[55].mxu0 }
 0x781   : > { %v6961_v34 = vpop.f32.mrb[56].mxu0 }
 0x782   : > { %v6986_v57 = vadd.f32 %v6961_v34, %v6792_v26  ;;  %v9722_v23 = vpop.f32.mrb[57].mxu0 }
 0x783   : > { %v6964_v16 = vpop.f32.mrb[58].mxu0 }
 0x784   : > { %v6987_v63 = vadd.f32 %v6964_v16, %v6793_v58  ;;  %v9723_v54 = vpop.f32.mrb[59].mxu0 }
 0x789   : > { %v6969_v32 = vpop.f32.mrb[60].mxu0 }
 0x78a   : > { %v6988_v59 = vadd.f32 %v6969_v32, %v6794_v61  ;;  %v9726_v30 = vpop.f32.mrb[61].mxu0 }
 0x78b   : > { %v6972_v5 = vpop.f32.mrb[62].mxu0 }
 0x78c   : > { %v6989_v12 = vadd.f32 %v6972_v5, %v6795_v52  ;;  %v9727_v42 = vpop.f32.mrb[63].mxu0 }
 0x791   : > { %v7096_v56 = vpop.f32.mrb[64].mxu0 }
 0x792   : > { %v7151_v19 = vadd.f32 %v7096_v56, %v6976_v36  ;;  %v9746_v11 = vpop.f32.mrb[65].mxu0 }
 0x793   : > { %v7099_v31 = vpop.f32.mrb[66].mxu0 }
 0x794   : > { %v7152_v0 = vadd.f32 %v7099_v31, %v6977_v8  ;;  %v9747_v46 = vpop.f32.mrb[67].mxu0 }
 0x799   : > { %v7104_v40 = vpop.f32.mrb[68].mxu0 }
 0x79a   : > { %v7153_v51 = vadd.f32 %v7104_v40, %v6978_v55  ;;  %v9750_v43 = vpop.f32.mrb[69].mxu0 }
 0x79b   : > { %v7107_v26 = vpop.f32.mrb[70].mxu0 }
 0x79c   : > { %v7154_v3 = vadd.f32 %v7107_v26, %v6979_v22  ;;  %v9751_v7 = vpop.f32.mrb[71].mxu0 }
 0x7a1   : > { %v7112_v58 = vpop.f32.mrb[72].mxu0 }
 0x7a2   : > { %v7155_v9 = vadd.f32 %v7112_v58, %v6980_v14  ;;  %v9754_v49 = vpop.f32.mrb[73].mxu0 }
 0x7a3   : > { %v7115_v61 = vpop.f32.mrb[74].mxu0 }
 0x7a4   : > { %v7156_v15 = vadd.f32 %v7115_v61, %v6981_v53  ;;  %v9755_v41 = vpop.f32.mrb[75].mxu0 }
 0x7a9   : > { %v7120_v52 = vpop.f32.mrb[76].mxu0 }
 0x7aa   : > { %v7157_v29 = vadd.f32 %v7120_v52, %v6982_v13  ;;  %v9758_v60 = vpop.f32.mrb[77].mxu0 }
 0x7ab   : > { %v7123_v36 = vpop.f32.mrb[78].mxu0 }
 0x7ac   : > { %v7158_v33 = vadd.f32 %v7123_v36, %v6983_v1  ;;  %v9759_v48 = vpop.f32.mrb[79].mxu0 }
 0x7b1   : > { %v7128_v8 = vpop.f32.mrb[80].mxu0 }
 0x7b2   : > { %v7159_v50 = vadd.f32 %v7128_v8, %v6984_v45  ;;  %v9762_v44 = vpop.f32.mrb[81].mxu0 }
 0x7b3   : > { %v7131_v27 = vpop.f32.mrb[82].mxu0 }
 0x7b4   : > { %v7160_v55 = vadd.f32 %v7131_v27, %v6985_v17  ;;  %v9763_v4 = vpop.f32.mrb[83].mxu0 }
 0x7b9   : > { %v7136_v21 = vpop.f32.mrb[84].mxu0 }
 0x7ba   : > { %v7161_v22 = vadd.f32 %v7136_v21, %v6986_v57  ;;  %v9766_v2 = vpop.f32.mrb[85].mxu0 }
 0x7bb   : > { %v7139_v6 = vpop.f32.mrb[86].mxu0 }
 0x7bc   : > { %v7162_v14 = vadd.f32 %v7139_v6, %v6987_v63  ;;  %v9767_v28 = vpop.f32.mrb[87].mxu0 }
 0x7c1   : > { %v7144_v20 = vpop.f32.mrb[88].mxu0 }
 0x7c2   : > { %v7163_v53 = vadd.f32 %v7144_v20, %v6988_v59  ;;  %v9770_v25 = vpop.f32.mrb[89].mxu0 }
 0x7c3   : > { %v7147_v62 = vpop.f32.mrb[90].mxu0 }
 0x7c4   : > { %v7164_v13 = vadd.f32 %v7147_v62, %v6989_v12  ;;  %v9771_v35 = vpop.f32.mrb[91].mxu0 }
 0x7c9   : > { %v7302_v10 = vpop.f32.mrb[92].mxu0 }
 0x7ca   : > { %v7357_v1 = vadd.f32 %v7302_v10, %v7151_v19  ;;  %v9790_v47 = vpop.f32.mrb[93].mxu0 }
 0x7cb   : > { %v7305_v37 = vpop.f32.mrb[94].mxu0 }
 0x7cc   : > { %v7358_v45 = vadd.f32 %v7305_v37, %v7152_v0  ;;  %v9791_v18 = vpop.f32.mrb[95].mxu0 }
 0x7d1   : > { %v7310_v24 = vpop.f32.mrb[96].mxu0 }
 0x7d2   : > { %v7359_v17 = vadd.f32 %v7310_v24, %v7153_v51  ;;  %v9794_v39 = vpop.f32.mrb[97].mxu0 }
 0x7d3   : > { %v7313_v34 = vpop.f32.mrb[98].mxu0 }
 0x7d4   : > { %v7360_v57 = vadd.f32 %v7313_v34, %v7154_v3  ;;  %v9795_v23 = vpop.f32.mrb[99].mxu0 }
 0x7d9   : > { %v7318_v16 = vpop.f32.mrb[100].mxu0 }
 0x7da   : > { %v7361_v63 = vadd.f32 %v7318_v16, %v7155_v9  ;;  %v9798_v54 = vpop.f32.mrb[101].mxu0 }
 0x7db   : > { %v7321_v32 = vpop.f32.mrb[102].mxu0 }
 0x7dc   : > { %v7362_v59 = vadd.f32 %v7321_v32, %v7156_v15  ;;  %v9799_v30 = vpop.f32.mrb[103].mxu0 }
 0x7e1   : > { %v7326_v5 = vpop.f32.mrb[104].mxu0 }
 0x7e2   : > { %v7363_v12 = vadd.f32 %v7326_v5, %v7157_v29  ;;  %v9802_v42 = vpop.f32.mrb[105].mxu0 }
 0x7e3   : > { %v7329_v56 = vpop.f32.mrb[106].mxu0 }
 0x7e4   : > { %v12683_v19 = vadd.f32 %v7329_v56, %v7158_v33  ;;  %v9803_v11 = vpop.f32.mrb[107].mxu0  ;;  %v12700_v33 = vld [vmem:[%s12745_s6] ss:$0 sm:$0xff] }
 0x7e9   : > { %v7334_v31 = vpop.f32.mrb[108].mxu0 }
 0x7ea   : > { %v12685_v0 = vadd.f32 %v7334_v31, %v7159_v50  ;;  %v9806_v46 = vpop.f32.mrb[109].mxu0 }
 0x7eb   : > { %v7337_v40 = vpop.f32.mrb[110].mxu0 }
 0x7ec   : > { %v12687_v51 = vadd.f32 %v7337_v40, %v7160_v55  ;;  %v9807_v43 = vpop.f32.mrb[111].mxu0 }
 0x7f1   : > { %v7342_v26 = vpop.f32.mrb[112].mxu0 }
 0x7f2   : > { %v12689_v3 = vadd.f32 %v7342_v26, %v7161_v22  ;;  %v9810_v7 = vpop.f32.mrb[113].mxu0 }
 0x7f3   : > { %v7345_v58 = vpop.f32.mrb[114].mxu0 }
 0x7f4   : > { %v12691_v9 = vadd.f32 %v7345_v58, %v7162_v14  ;;  %v9811_v49 = vpop.f32.mrb[115].mxu0 }
 0x7f9   : > { %v7350_v61 = vpop.f32.mrb[116].mxu0 }
 0x7fa   : > { %v12693_v15 = vadd.f32 %v7350_v61, %v7163_v53  ;;  %v9814_v41 = vpop.f32.mrb[117].mxu0 }
 0x7fb   : > { %v7353_v52 = vpop.f32.mrb[118].mxu0 }
 0x7fc   : > { %v12695_v29 = vadd.f32 %v7353_v52, %v7164_v13  ;;  %v9815_v60 = vpop.f32.mrb[119].mxu0 }
 0x801   : > { %v7496_v36 = vpop.f32.mrb[120].mxu0 }
 0x802   : > { %v7551_v48 = vadd.f32 %v7496_v36, %v7357_v1  ;;  %v9834_v8 = vpop.f32.mrb[121].mxu0 }
 0x803   : > { %v7499_v50 = vpop.f32.mrb[122].mxu0 }
 0x804   : > { %v7572_v44 = vadd.f32 %v12700_v33, %v7551_v48  ;;  %v7552_v27 = vadd.f32 %v7499_v50, %v7358_v45  ;;  %v9835_v55 = vpop.f32.mrb[123].mxu0 }
 0x806   : > { %v7573_v4 = vadd.f32 %v12700_v33, %v7552_v27  ;;  %v7586_v21 = vmax.f32 %v7572_v44, 0.0 }
 0x808   : > { %v7587_v22 = vmax.f32 %v7573_v4, 0.0 }
 0x809   : > { %v7504_v2 = vpop.f32.mrb[124].mxu0 }
 0x80a   : > { %v7600_v6 = vpack.c.bf16 %v7587_v22, %v7586_v21  ;;  %v7553_v14 = vadd.f32 %v7504_v2, %v7359_v17  ;;  %v9838_v28 = vpop.f32.mrb[125].mxu0 }
 0x80b   : > { %v7507_v20 = vpop.f32.mrb[126].mxu0 }
 0x80c   : > { %v7574_v53 = vadd.f32 %v12700_v33, %v7553_v14  ;;  %v7554_v25 = vadd.f32 %v7507_v20, %v7360_v57  ;;  %v9839_v62 = vpop.f32.mrb[127].mxu0  ;;  %9861 = vmatpush3.bf16.msra.mxu0 %v7600_v6 }
 0x80d   : > { %9862 = vmatprep.subr.bf16.mxu0 %v10518_v38 }
 0x80e   : > { %v7575_v13 = vadd.f32 %v12700_v33, %v7554_v25  ;;  %v7588_v35 = vmax.f32 %v7574_v53, 0.0 }
 0x810   : > { %v7589_v10 = vmax.f32 %v7575_v13, 0.0 }
 0x811   : > { %v7512_v1 = vpop.f32.mrb[128].mxu0 }
 0x812   : > { %v7601_v47 = vpack.c.bf16 %v7589_v10, %v7588_v35  ;;  %v7555_v37 = vadd.f32 %v7512_v1, %v7361_v63  ;;  %v9842_v45 = vpop.f32.mrb[129].mxu0 }
 0x813   : > { %v7515_v18 = vpop.f32.mrb[130].mxu0 }
 0x814   : > { %v7576_v24 = vadd.f32 %v12700_v33, %v7555_v37  ;;  %v7556_v17 = vadd.f32 %v7515_v18, %v7362_v59  ;;  %v9843_v39 = vpop.f32.mrb[131].mxu0  ;;  %9863 = vmatpush3.bf16.msra.mxu0 %v7601_v47 }
 0x815   : > { %9864 = vmatprep.subr.bf16.mxu0 %v10518_v38 }
 0x816   : > { %v7577_v34 = vadd.f32 %v12700_v33, %v7556_v17  ;;  %v7590_v57 = vmax.f32 %v7576_v24, 0.0 }
 0x818   : > { %v7591_v23 = vmax.f32 %v7577_v34, 0.0 }
 0x819   : > { %v7520_v16 = vpop.f32.mrb[132].mxu0 }
 0x81a   : > { %v7602_v54 = vpack.c.bf16 %v7591_v23, %v7590_v57  ;;  %v7557_v32 = vadd.f32 %v7520_v16, %v7363_v12  ;;  %v9846_v30 = vpop.f32.mrb[133].mxu0 }
 0x81b   : > { %v7523_v5 = vpop.f32.mrb[134].mxu0 }
 0x81c   : > { %v7578_v63 = vadd.f32 %v12700_v33, %v7557_v32  ;;  %v7558_v42 = vadd.f32 %v7523_v5, %v12683_v19  ;;  %v9847_v56 = vpop.f32.mrb[135].mxu0  ;;  %9865 = vmatpush3.bf16.msra.mxu0 %v7602_v54 }
 0x81d   : > { %9866 = vmatprep.subr.bf16.mxu0 %v10518_v38 }
 0x81e   : > { %v7579_v59 = vadd.f32 %v12700_v33, %v7558_v42  ;;  %v7592_v11 = vmax.f32 %v7578_v63, 0.0 }
 0x820   : > { %v7593_v31 = vmax.f32 %v7579_v59, 0.0 }
 0x821   : > { %v7528_v46 = vpop.f32.mrb[136].mxu0 }
 0x822   : > { %v7603_v40 = vpack.c.bf16 %v7593_v31, %v7592_v11  ;;  %v7559_v43 = vadd.f32 %v7528_v46, %v12685_v0  ;;  %v9850_v26 = vpop.f32.mrb[137].mxu0 }
 0x823   : > { %v7531_v12 = vpop.f32.mrb[138].mxu0 }
 0x824   : > { %v7580_v7 = vadd.f32 %v12700_v33, %v7559_v43  ;;  %v7560_v58 = vadd.f32 %v7531_v12, %v12687_v51  ;;  %v9851_v49 = vpop.f32.mrb[139].mxu0  ;;  %9867 = vmatpush3.bf16.msra.mxu0 %v7603_v40 }
 0x825   : > { %9868 = vmatprep.subr.bf16.mxu0 %v10518_v38 }
 0x826   : > { %v7581_v19 = vadd.f32 %v12700_v33, %v7560_v58  ;;  %v7594_v61 = vmax.f32 %v7580_v7, 0.0 }
 0x828   : > { %v7595_v41 = vmax.f32 %v7581_v19, 0.0 }
 0x829   : > { %v7536_v52 = vpop.f32.mrb[140].mxu0 }
 0x82a   : > { %v7604_v60 = vpack.c.bf16 %v7595_v41, %v7594_v61  ;;  %v7561_v36 = vadd.f32 %v7536_v52, %v12689_v3  ;;  %v9854_v48 = vpop.f32.mrb[141].mxu0 }
 0x82b   : > { %v7539_v0 = vpop.f32.mrb[142].mxu0 }
 0x82c   : > { %v7582_v8 = vadd.f32 %v12700_v33, %v7561_v36  ;;  %v7562_v50 = vadd.f32 %v7539_v0, %v12691_v9  ;;  %v9855_v44 = vpop.f32.mrb[143].mxu0  ;;  %9869 = vmatpush3.bf16.msra.mxu0 %v7604_v60 }
 0x82d   : > { %9870 = vmatprep.subr.bf16.mxu0 %v10518_v38 }
 0x82e   : > { %v7583_v51 = vadd.f32 %v12700_v33, %v7562_v50  ;;  %v7596_v27 = vmax.f32 %v7582_v8, 0.0 }
 0x830   : > { %v7597_v55 = vmax.f32 %v7583_v51, 0.0 }
 0x831   : > { %v7544_v4 = vpop.f32.mrb[144].mxu0 }
 0x832   : > { %v7605_v21 = vpack.c.bf16 %v7597_v55, %v7596_v27  ;;  %v7563_v22 = vadd.f32 %v7544_v4, %v12693_v15  ;;  %v9858_v3 = vpop.f32.mrb[145].mxu0  ;;  %v10495_v15 = vld [vmem:[%s12746_s7] sm:$0xff]  }
 0x833   : > { %v7547_v2 = vpop.f32.mrb[146].mxu0 }
 0x834   : > { %v7584_v6 = vadd.f32 %v12700_v33, %v7563_v22  ;;  %v7564_v14 = vadd.f32 %v7547_v2, %v12695_v29  ;;  %v9859_v9 = vpop.f32.mrb[147].mxu0  ;;  %9871 = vmatpush3.bf16.msra.mxu0 %v7605_v21 }
 0x835   : > { %9872 = vmatprep.subr.bf16.mxu0 %v10518_v38 }
 0x836   : > { %v7585_v28 = vadd.f32 %v12700_v33, %v7564_v14  ;;  %v7598_v20 = vmax.f32 %v7584_v6, 0.0 }
 0x838   : > { %v7599_v53 = vmax.f32 %v7585_v28, 0.0 }
 0x83a   : > { %v7606_v25 = vpack.c.bf16 %v7599_v53, %v7598_v20 }
 0x83c   : > { %9873 = vmatpush3.bf16.msra.mxu0 %v7606_v25 }
 0x83f   : > { %9875 = vmatmul.mubr.msk.bf16.vlgmr.msra.gmra.mrb[148].mxu0 %vm7614_vm5, %v10495_v15 }
 0x912   : > { %v7652_v62 = vpop.f32.mrb[148].mxu0 }
 0x913   : > { %v9876_v13 = vpop.f32.mrb[149].mxu0 }
 0x914   : > { %v7655_v38 = vpop.f32.mrb[150].mxu0 }
 0x915   : > { %v8269_v29 = vpack.c.bf16 %v7655_v38, %v7652_v62  ;;  %v9877_v33 = vpop.f32.mrb[151].mxu0 }
 0x917   : > { %8270 = vst [vmem:[%s305_s16] sm:$0xff] %v8269_v29  }
 0x918 PF: > { %s18_s27 = sadd.s32 1, %s10516_s27  }
 0x919   : > { %p15_p4 = scmp.ge.s32.totalorder %s18_s27, 4  }
 0x91b   :  { %17 = sbr.rel (!%p15_p4) target bundleno = 1 (0x1), region = 98 }

</bundles_post_ra>
